<compile_context>
chip_gen: v7x
topology: tpu7x:2x2x1
jax: 0.10.0
libtpu: 0.0.40
codegen_flags: <defaults>
</compile_context>

<pallas_src>
import functools

import jax
import jax.numpy as jnp
from jax.experimental import pallas as pl
from jax.experimental.pallas import tpu as pltpu


# ----------------------------- small math helpers -----------------------------

def _softplus(x):
    # numerically-stable softplus with only ops that have proven Mosaic lowering
    return jnp.maximum(x, 0.0) + jnp.log(1.0 + jnp.exp(-jnp.abs(x)))


def _sigmoid(x):
    # EUP approximate reciprocal instead of a VPU Newton divide
    return pl.reciprocal(1.0 + jnp.exp(-x), approx=True)


# ------------------------------- fused Pallas kernel ---------------------------

def fused_render_kernel(feat_ref, w1_ref, w2_ref, b2_ref, out_ref, dec_ref,
                        *, ray_start, ray_end):
    """Fused OSGDecoder + MipRayMarcher2 for one tile of rays.

    Layout (lane axis = depth*TR + ray within the tile):
      feat_ref : (1, C_AUG, D*TR) bf16  triplane feats (plane-major) + ones row
      w1_ref   : (H, C_AUG)       bf16  layer 1 (3-plane mean + b1 folded in)
      w2_ref   : (C_dec, H)       bf16  layer 2; row C_dec-1 is the sigma head
      b2_ref   : (C_dec, 1)       f32
      out_ref  : (N_OUT, TR)      f32   rows 0:C_rgb feat, C_rgb depth, C_rgb+1 weight
      dec_ref  : (C_dec, D*TR)    f32   VMEM scratch: activated rgb + raw sigma
    """
    n_out, tr = out_ref.shape
    c_dec = w2_ref.shape[0]
    n_rgb = c_dec - 1
    cols = feat_ref.shape[2]
    d_res = cols // tr

    x = feat_ref[0]                        # (C_AUG, D*TR) bf16
    w1 = w1_ref[...]                       # (H, C_AUG)    bf16
    w2 = w2_ref[...]                       # (C_dec, H)    bf16

    # ---- decode ALL depth samples with two long-N MXU matmuls (f32 accumulate) ----
    z1 = jnp.dot(w1, x, preferred_element_type=jnp.float32)          # (H, cols)
    h = _softplus(z1)                                                 # f32
    o = jnp.dot(w2, h.astype(jnp.bfloat16),
                preferred_element_type=jnp.float32)                   # (C_dec, cols)
    o = o + b2_ref[...]                    # single, immediately-consumed bias add

    # per-sample activations applied once, staged to VMEM scratch
    rgb = _sigmoid(o[:n_rgb]) * (1.0 + 2 * 0.001) - 0.001
    dec_ref[0:n_rgb, :] = rgb                       # aligned 32-row store
    dec_ref[n_rgb:c_dec, :] = o[n_rgb:c_dec]        # raw sigma row

    # ---- mid-point alpha compositing (pure VPU/EUP, f32) ----
    delta = (ray_end - ray_start) / (d_res - 1)

    def read(d):
        start = d * tr
        if not isinstance(start, int):
            start = pl.multiple_of(start, 128)      # lane-aligned dynamic slice
        return (dec_ref[0:n_rgb, pl.ds(start, tr)],
                dec_ref[n_rgb:c_dec, pl.ds(start, tr)])

    def step(d, carry):
        acc_rgb, acc_d, acc_w, trans = carry
        rgb_p, sig_p = read(d)
        rgb_c, sig_c = read(d + 1)
        c_mid = 0.5 * (rgb_p + rgb_c)
        s_mid = 0.5 * (sig_p + sig_c)
        s_act = _softplus(s_mid - 1.0)              # 'softplus' clamp mode
        alpha = 1.0 - jnp.exp(-s_act * delta)
        wgt = alpha * trans
        t_mid = ray_start + (d + 0.5) * delta
        return (acc_rgb + wgt * c_mid,
                acc_d + wgt * t_mid,
                acc_w + wgt,
                trans * (1.0 - alpha + 1e-10))

    init = (jnp.zeros((n_rgb, tr), jnp.float32),
            jnp.zeros((1, tr), jnp.float32),
            jnp.zeros((1, tr), jnp.float32),
            jnp.ones((1, tr), jnp.float32))
    if d_res - 1 <= 8:
        carry = init
        for dd in range(d_res - 1):                 # small: full unroll is fine
            carry = step(dd, carry)
    else:
        carry = jax.lax.fori_loop(0, d_res - 1, step, init)
    acc_rgb, acc_d, acc_w, _ = carry

    depth = jnp.clip(acc_d / jnp.maximum(acc_w, 1e-10), ray_start, ray_end)

    # two aligned, lane-dense slice stores (no masked 34-row concat store)
    out_ref[0:n_rgb, :] = acc_rgb * 2.0 - 1.0
    pad_rows = n_out - n_rgb - 2
    tail = [depth, acc_w]
    if pad_rows:
        tail.append(jnp.zeros((pad_rows, tr), jnp.float32))
    out_ref[n_rgb:n_out, :] = jnp.concatenate(tail, axis=0)


# ------------------------------ kernel wrapper ----------------------------------

def _pick_ray_tile(num_rays, target=1024):
    """num_rays must be a multiple of 128.  Prefer the largest tile <= target
    whose grid count is even and >= 4 (v7x dual-TC balance + pipeline slack),
    else >= 2 steps, else the largest dividing tile."""
    cands = [t for t in range(128, min(target, num_rays) + 1, 128)
             if num_rays % t == 0]
    if not cands:
        return num_rays
    for pred in (lambda g: g >= 4 and g % 2 == 0, lambda g: g >= 2):
        ok = [t for t in cands if pred(num_rays // t)]
        if ok:
            return max(ok)
    return max(cands)


def run_fused_renderer(feats_cdr, w1t, w2t, b2, ray_start, ray_end, tile_target=1024):
    """feats_cdr: (3*C_in, D, R) bf16 -> (N_OUT, R) f32
       rows: 0:C_rgb composited feats, C_rgb depth, C_rgb+1 weight_sum."""
    c_feat, d_res, num_rays = feats_cdr.shape
    hidden, c_aug = w1t.shape
    assert c_aug == c_feat + 1, "w1 must carry the folded-bias ones channel"
    assert d_res >= 2, "depth_resolution must be >= 2"
    c_dec = w2t.shape[0]
    n_out = ((c_dec + 1 + 7) // 8) * 8          # pad to full sublane tiles

    # pad rays to a multiple of 128 (padded lanes give finite junk, sliced off)
    r_pad = ((num_rays + 127) // 128) * 128
    tr = _pick_ray_tile(r_pad, tile_target)
    nb = r_pad // tr

    x = feats_cdr
    if r_pad != num_rays:
        x = jnp.pad(x, ((0, 0), (0, 0), (0, r_pad - num_rays)))
    # constant-1 channel folds b1 into the first matmul
    x = jnp.concatenate([x, jnp.ones((1, d_res, r_pad), x.dtype)], axis=0)
    # block layout: lane index within a tile = depth*tr + ray
    x = (x.reshape(c_aug, d_res, nb, tr)
          .transpose(2, 0, 1, 3)
          .reshape(nb, c_aug, d_res * tr))

    kernel = functools.partial(fused_render_kernel,
                               ray_start=float(ray_start), ray_end=float(ray_end))
    out = pl.pallas_call(
        kernel,
        out_shape=jax.ShapeDtypeStruct((n_out, r_pad), jnp.float32),
        grid_spec=pltpu.PrefetchScalarGridSpec(
            num_scalar_prefetch=0, grid=(nb,),
            in_specs=[
                pl.BlockSpec((1, c_aug, d_res * tr), lambda i: (i, 0, 0)),
                pl.BlockSpec((hidden, c_aug), lambda i: (0, 0)),
                pl.BlockSpec((c_dec, hidden), lambda i: (0, 0)),
                pl.BlockSpec((c_dec, 1), lambda i: (0, 0)),
            ],
            out_specs=pl.BlockSpec((n_out, tr), lambda i: (0, i)),
            scratch_shapes=[pltpu.VMEM((c_dec, d_res * tr), jnp.float32)],
        ),
        compiler_params=pltpu.CompilerParams(
            dimension_semantics=("parallel",),
            vmem_limit_bytes=32 * 1024 * 1024),
    )(x, w1t, w2t, b2)
    return out[:, :num_rays]


# ------------------------------ plain-JAX glue ----------------------------------

def generate_planes():
    return jnp.array([[[1., 0., 0.], [0., 1., 0.], [0., 0., 1.]],
                      [[1., 0., 0.], [0., 0., 1.], [0., 1., 0.]],
                      [[0., 0., 1.], [1., 0., 0.], [0., 1., 0.]]], jnp.float32)


def grid_sample_bilinear(img, x, y):
    """F.grid_sample(mode='bilinear', padding='zeros', align_corners=False).

    img: (C, H, W); x, y: (P,) normalized coords in [-1, 1]. Returns (C, P)."""
    c, h, w = img.shape
    ix = ((x + 1.0) * w - 1.0) * 0.5
    iy = ((y + 1.0) * h - 1.0) * 0.5
    x0 = jnp.floor(ix)
    y0 = jnp.floor(iy)
    x1, y1 = x0 + 1.0, y0 + 1.0
    wx1, wy1 = ix - x0, iy - y0
    wx0, wy0 = 1.0 - wx1, 1.0 - wy1

    def gather(xi, yi):
        inb = ((xi >= 0) & (xi <= w - 1) & (yi >= 0) & (yi <= h - 1)).astype(img.dtype)
        xc = jnp.clip(xi, 0, w - 1).astype(jnp.int32)
        yc = jnp.clip(yi, 0, h - 1).astype(jnp.int32)
        return img[:, yc, xc] * inb[None, :]          # (C, P)

    return (gather(x0, y0) * (wx0 * wy0)[None]
            + gather(x1, y0) * (wx1 * wy0)[None]
            + gather(x0, y1) * (wx0 * wy1)[None]
            + gather(x1, y1) * (wx1 * wy1)[None])


def sample_from_planes(planes5, coords, box_warp):
    """planes5: (N, 3, C, Hp, Wp); coords: (N, P, 3) -> (N, 3, C, P)."""
    n, n_planes, c, hp, wp = planes5.shape
    coords = coords * (2.0 / box_warp)
    inv_axes = jnp.linalg.inv(generate_planes())                   # (3, 3, 3)
    proj = jnp.einsum('npk,akj->napj', coords, inv_axes)[..., :2]  # (N, 3, P, 2)
    imgs = planes5.reshape(n * n_planes, c, hp, wp)
    xs = proj[..., 0].reshape(n * n_planes, -1)
    ys = proj[..., 1].reshape(n * n_planes, -1)
    # TODO(synk): the bilinear grid_sample is a data-dependent gather with no clean
    # Pallas TPU equivalent; it stays in plain JAX (flagged as the next kernel target).
    feats = jax.vmap(grid_sample_bilinear)(imgs, xs, ys)           # (N*3, C, P)
    return feats.reshape(n, n_planes, c, -1)


def ray_sampler(cam2world, intrinsics, resolution):
    """EG3D-style RaySampler: returns (origins (N, H*W, 3), dirs (N, H*W, 3))."""
    n = cam2world.shape[0]
    fx, fy = intrinsics[:, 0, 0], intrinsics[:, 1, 1]
    cx, cy = intrinsics[:, 0, 2], intrinsics[:, 1, 2]
    sk = intrinsics[:, 0, 1]
    u = (jnp.arange(resolution, dtype=jnp.float32) + 0.5) / resolution
    yy, xx = jnp.meshgrid(u, u, indexing='ij')
    x_cam = jnp.broadcast_to(xx.reshape(1, -1), (n, resolution * resolution))
    y_cam = jnp.broadcast_to(yy.reshape(1, -1), (n, resolution * resolution))
    z_cam = jnp.ones_like(x_cam)
    x_lift = (x_cam - cx[:, None] + cy[:, None] * sk[:, None] / fy[:, None]
              - sk[:, None] * y_cam / fy[:, None]) / fx[:, None] * z_cam
    y_lift = (y_cam - cy[:, None]) / fy[:, None] * z_cam
    cam_rel = jnp.stack([x_lift, y_lift, z_cam, jnp.ones_like(z_cam)], axis=-1)
    world = jnp.einsum('nij,nmj->nmi', cam2world, cam_rel)[..., :3]
    origins = jnp.broadcast_to(cam2world[:, None, :3, 3], world.shape)
    dirs = world - origins
    dirs = dirs / jnp.linalg.norm(dirs, axis=-1, keepdims=True)
    return origins, dirs


class TriplanePallas:
    """JAX/Pallas reimplementation of Triplane.forward (OSGDecoder path,
    superresolution=None, single uniform-depth rendering pass)."""

    def __init__(self, key, img_resolution=16, out_chans=96, decoder_in_chans=32,
                 decoder_output_dim=32, rendering_kwargs=None):
        self.img_resolution = img_resolution
        self.out_chans = out_chans
        self.decoder_in_chans = decoder_in_chans
        self.decoder_output_dim = decoder_output_dim
        self.neural_rendering_resolution = img_resolution
        self.rendering_kwargs = rendering_kwargs or {}

        hidden = 64
        c_in = decoder_in_chans
        c_out = 1 + decoder_output_dim
        lr_mul = float(self.rendering_kwargs.get('decoder_lr_mul', 1.0))
        k1, k2 = jax.random.split(key)
        # EG3D FullyConnectedLayer: weight ~ randn(out,in)/lr_mul, bias = 0,
        # forward applies weight_gain = lr_mul / sqrt(fan_in), bias_gain = lr_mul.
        w1 = jax.random.normal(k1, (hidden, c_in), jnp.float32) / lr_mul
        w2 = jax.random.normal(k2, (c_out, hidden), jnp.float32) / lr_mul
        b1 = jnp.zeros((hidden,), jnp.float32)
        b2 = jnp.zeros((c_out,), jnp.float32)
        w1_eff = (w1 * (lr_mul / jnp.sqrt(float(c_in)))).T       # (c_in, hidden)
        w2_eff = (w2 * (lr_mul / jnp.sqrt(float(hidden)))).T     # (hidden, c_out)
        b1_eff = b1 * lr_mul
        b2_eff = b2 * lr_mul

        # fold the mean over 3 planes into layer 1, fold b1 via the ones channel
        w1_stacked = jnp.concatenate([w1_eff, w1_eff, w1_eff], axis=0) / 3.0  # (3*c_in, hidden)
        w1_aug = jnp.concatenate([w1_stacked, b1_eff[None, :]], axis=0)       # (3*c_in+1, hidden)
        self.w1t = w1_aug.T.astype(jnp.bfloat16)                  # (hidden, 3*c_in+1)

        # reorder layer 2 so the sigma head (originally column 0) is the LAST row
        w2_ro = jnp.concatenate([w2_eff[:, 1:], w2_eff[:, 0:1]], axis=1)      # (hidden, c_out)
        b2_ro = jnp.concatenate([b2_eff[1:], b2_eff[0:1]])
        self.w2t = w2_ro.T.astype(jnp.bfloat16)                   # (c_out, hidden)
        self.b2 = b2_ro.reshape(c_out, 1).astype(jnp.float32)

    def forward(self, planes, c):
        n = c.shape[0]
        cam2world = c[:, :16].reshape(n, 4, 4)
        intrinsics = c[:, 16:25].reshape(n, 3, 3)
        h = w = self.neural_rendering_resolution
        ray_origins, ray_directions = ray_sampler(cam2world, intrinsics, h)

        planes5 = planes.reshape(n, 3, -1, planes.shape[-2], planes.shape[-1])
        rk = self.rendering_kwargs
        d = int(rk['depth_resolution'])
        m = h * w
        depths = jnp.linspace(rk['ray_start'], rk['ray_end'], d, dtype=jnp.float32)

        # TODO(synk): only the coarse uniform pass of ImportanceRenderer is implemented;
        # the importance-sampled second pass and the superresolution module are omitted.
        # Depth-major sample order so the gather already emits the kernel's lane order.
        pts = (ray_origins[:, None, :, :]
               + depths[None, :, None, None] * ray_directions[:, None, :, :])  # (n, d, m, 3)
        pts_flat = pts.reshape(n, d * m, 3)

        feats = sample_from_planes(planes5, pts_flat, rk.get('box_warp', 1.0))  # (n,3,c_in,d*m)
        c_in = feats.shape[2]
        # bf16 halves the dominant HBM stream; the single relayout pass runs at bf16 width.
        # TODO(synk): emit this layout directly from the sampling gather to drop the extra pass.
        feats_cdr = (feats.astype(jnp.bfloat16)
                          .reshape(n, 3, c_in, d, m)
                          .transpose(1, 2, 3, 0, 4)       # (3, c_in, d, n, m)
                          .reshape(3 * c_in, d, n * m))   # (3*c_in, D, R)

        out = run_fused_renderer(feats_cdr, self.w1t, self.w2t, self.b2,
                                 rk['ray_start'], rk['ray_end'])   # (N_OUT, N*M)

        c_rgb = self.decoder_output_dim
        feature_samples = out[:c_rgb]                  # (C_rgb, N*M)
        depth_samples = out[c_rgb]                     # (N*M,)
        weights_samples = out[c_rgb + 1]               # (N*M,)

        feature_image = feature_samples.reshape(c_rgb, n, h, w).transpose(1, 0, 2, 3)
        depth_image = depth_samples.reshape(n, 1, h, w)
        weights_image = weights_samples.reshape(n, 1, h, w)
        mask_image = weights_image * (1 + 2 * 0.001) - 0.001
        rgb_image = feature_image[:, :3]

        return {'feature_image': feature_image,
                'image_raw': rgb_image,
                'image_depth': depth_image,
                'weights_samples': weights_image,
                'shape_synthesized': None,
                'image_mask': mask_image}


def make_c(n):
    rot = jnp.array([[1., 0., 0.], [0., -1., 0.], [0., 0., -1.]], jnp.float32)
    cam2world = jnp.zeros((4, 4), jnp.float32)
    cam2world = cam2world.at[:3, :3].set(rot)
    cam2world = cam2world.at[:3, 3].set(jnp.array([0., 0., 2.7]))
    cam2world = cam2world.at[3, 3].set(1.0)
    intr = jnp.array([[4.26, 0., 0.5], [0., 4.26, 0.5], [0., 0., 1.]], jnp.float32)
    c = jnp.concatenate([cam2world.reshape(-1), intr.reshape(-1)])
    return jnp.broadcast_to(c, (n, 25))


if __name__ == "__main__":
    key = jax.random.PRNGKey(0)
    k_model, k_planes = jax.random.split(key)

    N = 2
    IMG_RES = 16
    rendering_kwargs = {'ray_start': 2.25, 'ray_end': 3.3, 'depth_resolution': 8,
                        'box_warp': 1.0, 'decoder_lr_mul': 1.0, 'clamp_mode': 'softplus'}

    model = TriplanePallas(k_model, img_resolution=IMG_RES, out_chans=96,
                           decoder_in_chans=32, decoder_output_dim=32,
                           rendering_kwargs=rendering_kwargs)

    planes = jax.random.normal(k_planes, (N, 96, 64, 64), jnp.float32)
    c = make_c(N)

    out = model.forward(planes, c)
    jax.block_until_ready(out['feature_image'])

    assert out['feature_image'].shape == (N, 32, IMG_RES, IMG_RES)
    assert out['image_raw'].shape == (N, 3, IMG_RES, IMG_RES)
    assert out['image_depth'].shape == (N, 1, IMG_RES, IMG_RES)
    assert out['image_mask'].shape == (N, 1, IMG_RES, IMG_RES)
    assert bool(jnp.all(jnp.isfinite(out['feature_image'])))
    assert bool(jnp.all(jnp.isfinite(out['image_depth'])))
    assert bool(jnp.all(jnp.isfinite(out['image_mask'])))
    print("KERNEL_OK")
</pallas_src>

<mosaic_0001>
module attributes {stable_mosaic.version = 11 : i64} {
  func.func @fused_render_kernel(%arg0: i32, %arg1: memref<1x97x1024xbf16, #tpu.memory_space<vmem>>, %arg2: memref<64x97xbf16, #tpu.memory_space<vmem>>, %arg3: memref<33x64xbf16, #tpu.memory_space<vmem>>, %arg4: memref<33x1xf32, #tpu.memory_space<vmem>>, %arg5: memref<40x128xf32, #tpu.memory_space<vmem>>, %arg6: memref<33x1024xf32, #tpu.memory_space<vmem>>) attributes {dimension_semantics = [#tpu.dimension_semantics<parallel>], iteration_bounds = array<i64: 4>, scalar_prefetch = 0 : i64, scratch_operands = 1 : i64, tpu.core_type = #tpu.core_type<tc>, window_params = [{transform_indices = @transform_0, window_bounds = array<i64: 1, 97, 1024>}, {pipeline_mode = #tpu.pipeline_mode<synchronous>, transform_indices = @transform_1, window_bounds = array<i64: 64, 97>}, {pipeline_mode = #tpu.pipeline_mode<synchronous>, transform_indices = @transform_2, window_bounds = array<i64: 33, 64>}, {pipeline_mode = #tpu.pipeline_mode<synchronous>, transform_indices = @transform_3, window_bounds = array<i64: 33, 1>}, {transform_indices = @transform_4, window_bounds = array<i64: 40, 128>}]} {
    %c0 = arith.constant 0 : index
    %c0_0 = arith.constant 0 : index
    %c0_1 = arith.constant 0 : index
    %0 = vector.load %arg1[%c0, %c0_0, %c0_1] : memref<1x97x1024xbf16, #tpu.memory_space<vmem>>, vector<1x97x1024xbf16>
    %1 = vector.shape_cast %0 : vector<1x97x1024xbf16> to vector<97x1024xbf16>
    %c0_2 = arith.constant 0 : index
    %c0_3 = arith.constant 0 : index
    %2 = vector.load %arg2[%c0_2, %c0_3] : memref<64x97xbf16, #tpu.memory_space<vmem>>, vector<64x97xbf16>
    %c0_4 = arith.constant 0 : index
    %c0_5 = arith.constant 0 : index
    %3 = vector.load %arg3[%c0_4, %c0_5] : memref<33x64xbf16, #tpu.memory_space<vmem>>, vector<33x64xbf16>
    %cst = arith.constant dense<0.000000e+00> : vector<64x1024xf32>
    %4 = tpu.matmul %2, %1, %cst {dimension_numbers = #tpu.dot_dimension_numbers<[1], [0], [0], [1], [0, 0, 1, 1], [], []>} : vector<64x97xbf16>, vector<97x1024xbf16>, vector<64x1024xf32> -> vector<64x1024xf32>
    %cst_6 = arith.constant 0.000000e+00 : f32
    %5 = vector.broadcast %cst_6 : f32 to vector<64x1024xf32>
    %6 = arith.maximumf %4, %5 : vector<64x1024xf32>
    %7 = math.absf %4 : vector<64x1024xf32>
    %cst_7 = arith.constant 0.000000e+00 : f32
    %8 = vector.broadcast %cst_7 : f32 to vector<64x1024xf32>
    %9 = arith.subf %8, %7 : vector<64x1024xf32>
    %10 = math.exp %9 : vector<64x1024xf32>
    %cst_8 = arith.constant 1.000000e+00 : f32
    %11 = vector.broadcast %cst_8 : f32 to vector<64x1024xf32>
    %12 = arith.addf %11, %10 : vector<64x1024xf32>
    %13 = math.log %12 : vector<64x1024xf32>
    %14 = arith.addf %6, %13 : vector<64x1024xf32>
    %15 = arith.truncf %14 : vector<64x1024xf32> to vector<64x1024xbf16>
    %cst_9 = arith.constant dense<0.000000e+00> : vector<33x1024xf32>
    %16 = tpu.matmul %3, %15, %cst_9 {dimension_numbers = #tpu.dot_dimension_numbers<[1], [0], [0], [1], [0, 0, 1, 1], [], []>} : vector<33x64xbf16>, vector<64x1024xbf16>, vector<33x1024xf32> -> vector<33x1024xf32>
    %c0_10 = arith.constant 0 : index
    %c0_11 = arith.constant 0 : index
    %17 = vector.load %arg4[%c0_10, %c0_11] : memref<33x1xf32, #tpu.memory_space<vmem>>, vector<33x1xf32>
    %18 = vector.broadcast %17 : vector<33x1xf32> to vector<33x1024xf32>
    %19 = arith.addf %16, %18 : vector<33x1024xf32>
    %20 = vector.extract_strided_slice %19 {offsets = [0, 0], sizes = [32, 1024], strides = [1, 1]} : vector<33x1024xf32> to vector<32x1024xf32>
    %cst_12 = arith.constant 0.000000e+00 : f32
    %21 = vector.broadcast %cst_12 : f32 to vector<32x1024xf32>
    %22 = arith.subf %21, %20 : vector<32x1024xf32>
    %23 = math.exp %22 : vector<32x1024xf32>
    %cst_13 = arith.constant 1.000000e+00 : f32
    %24 = vector.broadcast %cst_13 : f32 to vector<32x1024xf32>
    %25 = arith.addf %24, %23 : vector<32x1024xf32>
    %26 = tpu.reciprocal %25 {approx = true} : vector<32x1024xf32> -> vector<32x1024xf32>
    %cst_14 = arith.constant 1.002000e+00 : f32
    %27 = vector.broadcast %cst_14 : f32 to vector<32x1024xf32>
    %28 = arith.mulf %26, %27 : vector<32x1024xf32>
    %cst_15 = arith.constant 1.000000e-03 : f32
    %29 = vector.broadcast %cst_15 : f32 to vector<32x1024xf32>
    %30 = arith.subf %28, %29 : vector<32x1024xf32>
    %c0_16 = arith.constant 0 : index
    %c0_17 = arith.constant 0 : index
    %31 = vector.load %arg6[%c0_16, %c0_17] : memref<33x1024xf32, #tpu.memory_space<vmem>>, vector<32x1024xf32>
    tpu.vector_store %arg6[%c0_16, %c0_17], %30 {strides = array<i32>} : memref<33x1024xf32, #tpu.memory_space<vmem>>, vector<32x1024xf32>,
    %32 = vector.extract_strided_slice %19 {offsets = [32, 0], sizes = [1, 1024], strides = [1, 1]} : vector<33x1024xf32> to vector<1x1024xf32>
    %c32 = arith.constant 32 : index
    %c0_18 = arith.constant 0 : index
    %33 = vector.load %arg6[%c32, %c0_18] : memref<33x1024xf32, #tpu.memory_space<vmem>>, vector<1x1024xf32>
    tpu.vector_store %arg6[%c32, %c0_18], %32 {strides = array<i32>} : memref<33x1024xf32, #tpu.memory_space<vmem>>, vector<1x1024xf32>,
    %cst_19 = arith.constant 0.000000e+00 : f32
    %34 = vector.broadcast %cst_19 : f32 to vector<32x128xf32>
    %cst_20 = arith.constant 0.000000e+00 : f32
    %35 = vector.broadcast %cst_20 : f32 to vector<1x128xf32>
    %cst_21 = arith.constant 0.000000e+00 : f32
    %36 = vector.broadcast %cst_21 : f32 to vector<1x128xf32>
    %cst_22 = arith.constant 1.000000e+00 : f32
    %37 = vector.broadcast %cst_22 : f32 to vector<1x128xf32>
    %c0_23 = arith.constant 0 : index
    %c0_24 = arith.constant 0 : index
    %38 = vector.load %arg6[%c0_23, %c0_24] : memref<33x1024xf32, #tpu.memory_space<vmem>>, vector<32x128xf32>
    %c32_25 = arith.constant 32 : index
    %c0_26 = arith.constant 0 : index
    %39 = vector.load %arg6[%c32_25, %c0_26] : memref<33x1024xf32, #tpu.memory_space<vmem>>, vector<1x128xf32>
    %c0_27 = arith.constant 0 : index
    %c128 = arith.constant 128 : index
    %40 = vector.load %arg6[%c0_27, %c128] : memref<33x1024xf32, #tpu.memory_space<vmem>>, vector<32x128xf32>
    %c32_28 = arith.constant 32 : index
    %c128_29 = arith.constant 128 : index
    %41 = vector.load %arg6[%c32_28, %c128_29] : memref<33x1024xf32, #tpu.memory_space<vmem>>, vector<1x128xf32>
    %42 = arith.addf %38, %40 : vector<32x128xf32>
    %cst_30 = arith.constant 5.000000e-01 : f32
    %43 = vector.broadcast %cst_30 : f32 to vector<32x128xf32>
    %44 = arith.mulf %43, %42 : vector<32x128xf32>
    %45 = arith.addf %39, %41 : vector<1x128xf32>
    %cst_31 = arith.constant 5.000000e-01 : f32
    %46 = vector.broadcast %cst_31 : f32 to vector<1x128xf32>
    %47 = arith.mulf %46, %45 : vector<1x128xf32>
    %cst_32 = arith.constant 1.000000e+00 : f32
    %48 = vector.broadcast %cst_32 : f32 to vector<1x128xf32>
    %49 = arith.subf %47, %48 : vector<1x128xf32>
    %cst_33 = arith.constant 0.000000e+00 : f32
    %50 = vector.broadcast %cst_33 : f32 to vector<1x128xf32>
    %51 = arith.maximumf %49, %50 : vector<1x128xf32>
    %52 = math.absf %49 : vector<1x128xf32>
    %cst_34 = arith.constant 0.000000e+00 : f32
    %53 = vector.broadcast %cst_34 : f32 to vector<1x128xf32>
    %54 = arith.subf %53, %52 : vector<1x128xf32>
    %55 = math.exp %54 : vector<1x128xf32>
    %cst_35 = arith.constant 1.000000e+00 : f32
    %56 = vector.broadcast %cst_35 : f32 to vector<1x128xf32>
    %57 = arith.addf %56, %55 : vector<1x128xf32>
    %58 = math.log %57 : vector<1x128xf32>
    %59 = arith.addf %51, %58 : vector<1x128xf32>
    %cst_36 = arith.constant 0.000000e+00 : f32
    %60 = vector.broadcast %cst_36 : f32 to vector<1x128xf32>
    %61 = arith.subf %60, %59 : vector<1x128xf32>
    %cst_37 = arith.constant 1.500000e-01 : f32
    %62 = vector.broadcast %cst_37 : f32 to vector<1x128xf32>
    %63 = arith.mulf %61, %62 : vector<1x128xf32>
    %64 = math.exp %63 : vector<1x128xf32>
    %cst_38 = arith.constant 1.000000e+00 : f32
    %65 = vector.broadcast %cst_38 : f32 to vector<1x128xf32>
    %66 = arith.subf %65, %64 : vector<1x128xf32>
    %67 = arith.mulf %66, %37 : vector<1x128xf32>
    %68 = vector.broadcast %67 : vector<1x128xf32> to vector<32x128xf32>
    %69 = arith.mulf %68, %44 : vector<32x128xf32>
    %70 = arith.addf %34, %69 : vector<32x128xf32>
    %cst_39 = arith.constant 2.325000e+00 : f32
    %71 = vector.broadcast %cst_39 : f32 to vector<1x128xf32>
    %72 = arith.mulf %67, %71 : vector<1x128xf32>
    %73 = arith.addf %35, %72 : vector<1x128xf32>
    %74 = arith.addf %36, %67 : vector<1x128xf32>
    %cst_40 = arith.constant 1.000000e+00 : f32
    %75 = vector.broadcast %cst_40 : f32 to vector<1x128xf32>
    %76 = arith.subf %75, %66 : vector<1x128xf32>
    %cst_41 = arith.constant 1.000000e-10 : f32
    %77 = vector.broadcast %cst_41 : f32 to vector<1x128xf32>
    %78 = arith.addf %76, %77 : vector<1x128xf32>
    %79 = arith.mulf %37, %78 : vector<1x128xf32>
    %c0_42 = arith.constant 0 : index
    %c128_43 = arith.constant 128 : index
    %80 = vector.load %arg6[%c0_42, %c128_43] : memref<33x1024xf32, #tpu.memory_space<vmem>>, vector<32x128xf32>
    %c32_44 = arith.constant 32 : index
    %c128_45 = arith.constant 128 : index
    %81 = vector.load %arg6[%c32_44, %c128_45] : memref<33x1024xf32, #tpu.memory_space<vmem>>, vector<1x128xf32>
    %c0_46 = arith.constant 0 : index
    %c256 = arith.constant 256 : index
    %82 = vector.load %arg6[%c0_46, %c256] : memref<33x1024xf32, #tpu.memory_space<vmem>>, vector<32x128xf32>
    %c32_47 = arith.constant 32 : index
    %c256_48 = arith.constant 256 : index
    %83 = vector.load %arg6[%c32_47, %c256_48] : memref<33x1024xf32, #tpu.memory_space<vmem>>, vector<1x128xf32>
    %84 = arith.addf %80, %82 : vector<32x128xf32>
    %cst_49 = arith.constant 5.000000e-01 : f32
    %85 = vector.broadcast %cst_49 : f32 to vector<32x128xf32>
    %86 = arith.mulf %85, %84 : vector<32x128xf32>
    %87 = arith.addf %81, %83 : vector<1x128xf32>
    %cst_50 = arith.constant 5.000000e-01 : f32
    %88 = vector.broadcast %cst_50 : f32 to vector<1x128xf32>
    %89 = arith.mulf %88, %87 : vector<1x128xf32>
    %cst_51 = arith.constant 1.000000e+00 : f32
    %90 = vector.broadcast %cst_51 : f32 to vector<1x128xf32>
    %91 = arith.subf %89, %90 : vector<1x128xf32>
    %cst_52 = arith.constant 0.000000e+00 : f32
    %92 = vector.broadcast %cst_52 : f32 to vector<1x128xf32>
    %93 = arith.maximumf %91, %92 : vector<1x128xf32>
    %94 = math.absf %91 : vector<1x128xf32>
    %cst_53 = arith.constant 0.000000e+00 : f32
    %95 = vector.broadcast %cst_53 : f32 to vector<1x128xf32>
    %96 = arith.subf %95, %94 : vector<1x128xf32>
    %97 = math.exp %96 : vector<1x128xf32>
    %cst_54 = arith.constant 1.000000e+00 : f32
    %98 = vector.broadcast %cst_54 : f32 to vector<1x128xf32>
    %99 = arith.addf %98, %97 : vector<1x128xf32>
    %100 = math.log %99 : vector<1x128xf32>
    %101 = arith.addf %93, %100 : vector<1x128xf32>
    %cst_55 = arith.constant 0.000000e+00 : f32
    %102 = vector.broadcast %cst_55 : f32 to vector<1x128xf32>
    %103 = arith.subf %102, %101 : vector<1x128xf32>
    %cst_56 = arith.constant 1.500000e-01 : f32
    %104 = vector.broadcast %cst_56 : f32 to vector<1x128xf32>
    %105 = arith.mulf %103, %104 : vector<1x128xf32>
    %106 = math.exp %105 : vector<1x128xf32>
    %cst_57 = arith.constant 1.000000e+00 : f32
    %107 = vector.broadcast %cst_57 : f32 to vector<1x128xf32>
    %108 = arith.subf %107, %106 : vector<1x128xf32>
    %109 = arith.mulf %108, %79 : vector<1x128xf32>
    %110 = vector.broadcast %109 : vector<1x128xf32> to vector<32x128xf32>
    %111 = arith.mulf %110, %86 : vector<32x128xf32>
    %112 = arith.addf %70, %111 : vector<32x128xf32>
    %cst_58 = arith.constant 2.475000e+00 : f32
    %113 = vector.broadcast %cst_58 : f32 to vector<1x128xf32>
    %114 = arith.mulf %109, %113 : vector<1x128xf32>
    %115 = arith.addf %73, %114 : vector<1x128xf32>
    %116 = arith.addf %74, %109 : vector<1x128xf32>
    %cst_59 = arith.constant 1.000000e+00 : f32
    %117 = vector.broadcast %cst_59 : f32 to vector<1x128xf32>
    %118 = arith.subf %117, %108 : vector<1x128xf32>
    %cst_60 = arith.constant 1.000000e-10 : f32
    %119 = vector.broadcast %cst_60 : f32 to vector<1x128xf32>
    %120 = arith.addf %118, %119 : vector<1x128xf32>
    %121 = arith.mulf %79, %120 : vector<1x128xf32>
    %c0_61 = arith.constant 0 : index
    %c256_62 = arith.constant 256 : index
    %122 = vector.load %arg6[%c0_61, %c256_62] : memref<33x1024xf32, #tpu.memory_space<vmem>>, vector<32x128xf32>
    %c32_63 = arith.constant 32 : index
    %c256_64 = arith.constant 256 : index
    %123 = vector.load %arg6[%c32_63, %c256_64] : memref<33x1024xf32, #tpu.memory_space<vmem>>, vector<1x128xf32>
    %c0_65 = arith.constant 0 : index
    %c384 = arith.constant 384 : index
    %124 = vector.load %arg6[%c0_65, %c384] : memref<33x1024xf32, #tpu.memory_space<vmem>>, vector<32x128xf32>
    %c32_66 = arith.constant 32 : index
    %c384_67 = arith.constant 384 : index
    %125 = vector.load %arg6[%c32_66, %c384_67] : memref<33x1024xf32, #tpu.memory_space<vmem>>, vector<1x128xf32>
    %126 = arith.addf %122, %124 : vector<32x128xf32>
    %cst_68 = arith.constant 5.000000e-01 : f32
    %127 = vector.broadcast %cst_68 : f32 to vector<32x128xf32>
    %128 = arith.mulf %127, %126 : vector<32x128xf32>
    %129 = arith.addf %123, %125 : vector<1x128xf32>
    %cst_69 = arith.constant 5.000000e-01 : f32
    %130 = vector.broadcast %cst_69 : f32 to vector<1x128xf32>
    %131 = arith.mulf %130, %129 : vector<1x128xf32>
    %cst_70 = arith.constant 1.000000e+00 : f32
    %132 = vector.broadcast %cst_70 : f32 to vector<1x128xf32>
    %133 = arith.subf %131, %132 : vector<1x128xf32>
    %cst_71 = arith.constant 0.000000e+00 : f32
    %134 = vector.broadcast %cst_71 : f32 to vector<1x128xf32>
    %135 = arith.maximumf %133, %134 : vector<1x128xf32>
    %136 = math.absf %133 : vector<1x128xf32>
    %cst_72 = arith.constant 0.000000e+00 : f32
    %137 = vector.broadcast %cst_72 : f32 to vector<1x128xf32>
    %138 = arith.subf %137, %136 : vector<1x128xf32>
    %139 = math.exp %138 : vector<1x128xf32>
    %cst_73 = arith.constant 1.000000e+00 : f32
    %140 = vector.broadcast %cst_73 : f32 to vector<1x128xf32>
    %141 = arith.addf %140, %139 : vector<1x128xf32>
    %142 = math.log %141 : vector<1x128xf32>
    %143 = arith.addf %135, %142 : vector<1x128xf32>
    %cst_74 = arith.constant 0.000000e+00 : f32
    %144 = vector.broadcast %cst_74 : f32 to vector<1x128xf32>
    %145 = arith.subf %144, %143 : vector<1x128xf32>
    %cst_75 = arith.constant 1.500000e-01 : f32
    %146 = vector.broadcast %cst_75 : f32 to vector<1x128xf32>
    %147 = arith.mulf %145, %146 : vector<1x128xf32>
    %148 = math.exp %147 : vector<1x128xf32>
    %cst_76 = arith.constant 1.000000e+00 : f32
    %149 = vector.broadcast %cst_76 : f32 to vector<1x128xf32>
    %150 = arith.subf %149, %148 : vector<1x128xf32>
    %151 = arith.mulf %150, %121 : vector<1x128xf32>
    %152 = vector.broadcast %151 : vector<1x128xf32> to vector<32x128xf32>
    %153 = arith.mulf %152, %128 : vector<32x128xf32>
    %154 = arith.addf %112, %153 : vector<32x128xf32>
    %cst_77 = arith.constant 2.625000e+00 : f32
    %155 = vector.broadcast %cst_77 : f32 to vector<1x128xf32>
    %156 = arith.mulf %151, %155 : vector<1x128xf32>
    %157 = arith.addf %115, %156 : vector<1x128xf32>
    %158 = arith.addf %116, %151 : vector<1x128xf32>
    %cst_78 = arith.constant 1.000000e+00 : f32
    %159 = vector.broadcast %cst_78 : f32 to vector<1x128xf32>
    %160 = arith.subf %159, %150 : vector<1x128xf32>
    %cst_79 = arith.constant 1.000000e-10 : f32
    %161 = vector.broadcast %cst_79 : f32 to vector<1x128xf32>
    %162 = arith.addf %160, %161 : vector<1x128xf32>
    %163 = arith.mulf %121, %162 : vector<1x128xf32>
    %c0_80 = arith.constant 0 : index
    %c384_81 = arith.constant 384 : index
    %164 = vector.load %arg6[%c0_80, %c384_81] : memref<33x1024xf32, #tpu.memory_space<vmem>>, vector<32x128xf32>
    %c32_82 = arith.constant 32 : index
    %c384_83 = arith.constant 384 : index
    %165 = vector.load %arg6[%c32_82, %c384_83] : memref<33x1024xf32, #tpu.memory_space<vmem>>, vector<1x128xf32>
    %c0_84 = arith.constant 0 : index
    %c512 = arith.constant 512 : index
    %166 = vector.load %arg6[%c0_84, %c512] : memref<33x1024xf32, #tpu.memory_space<vmem>>, vector<32x128xf32>
    %c32_85 = arith.constant 32 : index
    %c512_86 = arith.constant 512 : index
    %167 = vector.load %arg6[%c32_85, %c512_86] : memref<33x1024xf32, #tpu.memory_space<vmem>>, vector<1x128xf32>
    %168 = arith.addf %164, %166 : vector<32x128xf32>
    %cst_87 = arith.constant 5.000000e-01 : f32
    %169 = vector.broadcast %cst_87 : f32 to vector<32x128xf32>
    %170 = arith.mulf %169, %168 : vector<32x128xf32>
    %171 = arith.addf %165, %167 : vector<1x128xf32>
    %cst_88 = arith.constant 5.000000e-01 : f32
    %172 = vector.broadcast %cst_88 : f32 to vector<1x128xf32>
    %173 = arith.mulf %172, %171 : vector<1x128xf32>
    %cst_89 = arith.constant 1.000000e+00 : f32
    %174 = vector.broadcast %cst_89 : f32 to vector<1x128xf32>
    %175 = arith.subf %173, %174 : vector<1x128xf32>
    %cst_90 = arith.constant 0.000000e+00 : f32
    %176 = vector.broadcast %cst_90 : f32 to vector<1x128xf32>
    %177 = arith.maximumf %175, %176 : vector<1x128xf32>
    %178 = math.absf %175 : vector<1x128xf32>
    %cst_91 = arith.constant 0.000000e+00 : f32
    %179 = vector.broadcast %cst_91 : f32 to vector<1x128xf32>
    %180 = arith.subf %179, %178 : vector<1x128xf32>
    %181 = math.exp %180 : vector<1x128xf32>
    %cst_92 = arith.constant 1.000000e+00 : f32
    %182 = vector.broadcast %cst_92 : f32 to vector<1x128xf32>
    %183 = arith.addf %182, %181 : vector<1x128xf32>
    %184 = math.log %183 : vector<1x128xf32>
    %185 = arith.addf %177, %184 : vector<1x128xf32>
    %cst_93 = arith.constant 0.000000e+00 : f32
    %186 = vector.broadcast %cst_93 : f32 to vector<1x128xf32>
    %187 = arith.subf %186, %185 : vector<1x128xf32>
    %cst_94 = arith.constant 1.500000e-01 : f32
    %188 = vector.broadcast %cst_94 : f32 to vector<1x128xf32>
    %189 = arith.mulf %187, %188 : vector<1x128xf32>
    %190 = math.exp %189 : vector<1x128xf32>
    %cst_95 = arith.constant 1.000000e+00 : f32
    %191 = vector.broadcast %cst_95 : f32 to vector<1x128xf32>
    %192 = arith.subf %191, %190 : vector<1x128xf32>
    %193 = arith.mulf %192, %163 : vector<1x128xf32>
    %194 = vector.broadcast %193 : vector<1x128xf32> to vector<32x128xf32>
    %195 = arith.mulf %194, %170 : vector<32x128xf32>
    %196 = arith.addf %154, %195 : vector<32x128xf32>
    %cst_96 = arith.constant 2.775000e+00 : f32
    %197 = vector.broadcast %cst_96 : f32 to vector<1x128xf32>
    %198 = arith.mulf %193, %197 : vector<1x128xf32>
    %199 = arith.addf %157, %198 : vector<1x128xf32>
    %200 = arith.addf %158, %193 : vector<1x128xf32>
    %cst_97 = arith.constant 1.000000e+00 : f32
    %201 = vector.broadcast %cst_97 : f32 to vector<1x128xf32>
    %202 = arith.subf %201, %192 : vector<1x128xf32>
    %cst_98 = arith.constant 1.000000e-10 : f32
    %203 = vector.broadcast %cst_98 : f32 to vector<1x128xf32>
    %204 = arith.addf %202, %203 : vector<1x128xf32>
    %205 = arith.mulf %163, %204 : vector<1x128xf32>
    %c0_99 = arith.constant 0 : index
    %c512_100 = arith.constant 512 : index
    %206 = vector.load %arg6[%c0_99, %c512_100] : memref<33x1024xf32, #tpu.memory_space<vmem>>, vector<32x128xf32>
    %c32_101 = arith.constant 32 : index
    %c512_102 = arith.constant 512 : index
    %207 = vector.load %arg6[%c32_101, %c512_102] : memref<33x1024xf32, #tpu.memory_space<vmem>>, vector<1x128xf32>
    %c0_103 = arith.constant 0 : index
    %c640 = arith.constant 640 : index
    %208 = vector.load %arg6[%c0_103, %c640] : memref<33x1024xf32, #tpu.memory_space<vmem>>, vector<32x128xf32>
    %c32_104 = arith.constant 32 : index
    %c640_105 = arith.constant 640 : index
    %209 = vector.load %arg6[%c32_104, %c640_105] : memref<33x1024xf32, #tpu.memory_space<vmem>>, vector<1x128xf32>
    %210 = arith.addf %206, %208 : vector<32x128xf32>
    %cst_106 = arith.constant 5.000000e-01 : f32
    %211 = vector.broadcast %cst_106 : f32 to vector<32x128xf32>
    %212 = arith.mulf %211, %210 : vector<32x128xf32>
    %213 = arith.addf %207, %209 : vector<1x128xf32>
    %cst_107 = arith.constant 5.000000e-01 : f32
    %214 = vector.broadcast %cst_107 : f32 to vector<1x128xf32>
    %215 = arith.mulf %214, %213 : vector<1x128xf32>
    %cst_108 = arith.constant 1.000000e+00 : f32
    %216 = vector.broadcast %cst_108 : f32 to vector<1x128xf32>
    %217 = arith.subf %215, %216 : vector<1x128xf32>
    %cst_109 = arith.constant 0.000000e+00 : f32
    %218 = vector.broadcast %cst_109 : f32 to vector<1x128xf32>
    %219 = arith.maximumf %217, %218 : vector<1x128xf32>
    %220 = math.absf %217 : vector<1x128xf32>
    %cst_110 = arith.constant 0.000000e+00 : f32
    %221 = vector.broadcast %cst_110 : f32 to vector<1x128xf32>
    %222 = arith.subf %221, %220 : vector<1x128xf32>
    %223 = math.exp %222 : vector<1x128xf32>
    %cst_111 = arith.constant 1.000000e+00 : f32
    %224 = vector.broadcast %cst_111 : f32 to vector<1x128xf32>
    %225 = arith.addf %224, %223 : vector<1x128xf32>
    %226 = math.log %225 : vector<1x128xf32>
    %227 = arith.addf %219, %226 : vector<1x128xf32>
    %cst_112 = arith.constant 0.000000e+00 : f32
    %228 = vector.broadcast %cst_112 : f32 to vector<1x128xf32>
    %229 = arith.subf %228, %227 : vector<1x128xf32>
    %cst_113 = arith.constant 1.500000e-01 : f32
    %230 = vector.broadcast %cst_113 : f32 to vector<1x128xf32>
    %231 = arith.mulf %229, %230 : vector<1x128xf32>
    %232 = math.exp %231 : vector<1x128xf32>
    %cst_114 = arith.constant 1.000000e+00 : f32
    %233 = vector.broadcast %cst_114 : f32 to vector<1x128xf32>
    %234 = arith.subf %233, %232 : vector<1x128xf32>
    %235 = arith.mulf %234, %205 : vector<1x128xf32>
    %236 = vector.broadcast %235 : vector<1x128xf32> to vector<32x128xf32>
    %237 = arith.mulf %236, %212 : vector<32x128xf32>
    %238 = arith.addf %196, %237 : vector<32x128xf32>
    %cst_115 = arith.constant 2.925000e+00 : f32
    %239 = vector.broadcast %cst_115 : f32 to vector<1x128xf32>
    %240 = arith.mulf %235, %239 : vector<1x128xf32>
    %241 = arith.addf %199, %240 : vector<1x128xf32>
    %242 = arith.addf %200, %235 : vector<1x128xf32>
    %cst_116 = arith.constant 1.000000e+00 : f32
    %243 = vector.broadcast %cst_116 : f32 to vector<1x128xf32>
    %244 = arith.subf %243, %234 : vector<1x128xf32>
    %cst_117 = arith.constant 1.000000e-10 : f32
    %245 = vector.broadcast %cst_117 : f32 to vector<1x128xf32>
    %246 = arith.addf %244, %245 : vector<1x128xf32>
    %247 = arith.mulf %205, %246 : vector<1x128xf32>
    %c0_118 = arith.constant 0 : index
    %c640_119 = arith.constant 640 : index
    %248 = vector.load %arg6[%c0_118, %c640_119] : memref<33x1024xf32, #tpu.memory_space<vmem>>, vector<32x128xf32>
    %c32_120 = arith.constant 32 : index
    %c640_121 = arith.constant 640 : index
    %249 = vector.load %arg6[%c32_120, %c640_121] : memref<33x1024xf32, #tpu.memory_space<vmem>>, vector<1x128xf32>
    %c0_122 = arith.constant 0 : index
    %c768 = arith.constant 768 : index
    %250 = vector.load %arg6[%c0_122, %c768] : memref<33x1024xf32, #tpu.memory_space<vmem>>, vector<32x128xf32>
    %c32_123 = arith.constant 32 : index
    %c768_124 = arith.constant 768 : index
    %251 = vector.load %arg6[%c32_123, %c768_124] : memref<33x1024xf32, #tpu.memory_space<vmem>>, vector<1x128xf32>
    %252 = arith.addf %248, %250 : vector<32x128xf32>
    %cst_125 = arith.constant 5.000000e-01 : f32
    %253 = vector.broadcast %cst_125 : f32 to vector<32x128xf32>
    %254 = arith.mulf %253, %252 : vector<32x128xf32>
    %255 = arith.addf %249, %251 : vector<1x128xf32>
    %cst_126 = arith.constant 5.000000e-01 : f32
    %256 = vector.broadcast %cst_126 : f32 to vector<1x128xf32>
    %257 = arith.mulf %256, %255 : vector<1x128xf32>
    %cst_127 = arith.constant 1.000000e+00 : f32
    %258 = vector.broadcast %cst_127 : f32 to vector<1x128xf32>
    %259 = arith.subf %257, %258 : vector<1x128xf32>
    %cst_128 = arith.constant 0.000000e+00 : f32
    %260 = vector.broadcast %cst_128 : f32 to vector<1x128xf32>
    %261 = arith.maximumf %259, %260 : vector<1x128xf32>
    %262 = math.absf %259 : vector<1x128xf32>
    %cst_129 = arith.constant 0.000000e+00 : f32
    %263 = vector.broadcast %cst_129 : f32 to vector<1x128xf32>
    %264 = arith.subf %263, %262 : vector<1x128xf32>
    %265 = math.exp %264 : vector<1x128xf32>
    %cst_130 = arith.constant 1.000000e+00 : f32
    %266 = vector.broadcast %cst_130 : f32 to vector<1x128xf32>
    %267 = arith.addf %266, %265 : vector<1x128xf32>
    %268 = math.log %267 : vector<1x128xf32>
    %269 = arith.addf %261, %268 : vector<1x128xf32>
    %cst_131 = arith.constant 0.000000e+00 : f32
    %270 = vector.broadcast %cst_131 : f32 to vector<1x128xf32>
    %271 = arith.subf %270, %269 : vector<1x128xf32>
    %cst_132 = arith.constant 1.500000e-01 : f32
    %272 = vector.broadcast %cst_132 : f32 to vector<1x128xf32>
    %273 = arith.mulf %271, %272 : vector<1x128xf32>
    %274 = math.exp %273 : vector<1x128xf32>
    %cst_133 = arith.constant 1.000000e+00 : f32
    %275 = vector.broadcast %cst_133 : f32 to vector<1x128xf32>
    %276 = arith.subf %275, %274 : vector<1x128xf32>
    %277 = arith.mulf %276, %247 : vector<1x128xf32>
    %278 = vector.broadcast %277 : vector<1x128xf32> to vector<32x128xf32>
    %279 = arith.mulf %278, %254 : vector<32x128xf32>
    %280 = arith.addf %238, %279 : vector<32x128xf32>
    %cst_134 = arith.constant 3.075000e+00 : f32
    %281 = vector.broadcast %cst_134 : f32 to vector<1x128xf32>
    %282 = arith.mulf %277, %281 : vector<1x128xf32>
    %283 = arith.addf %241, %282 : vector<1x128xf32>
    %284 = arith.addf %242, %277 : vector<1x128xf32>
    %cst_135 = arith.constant 1.000000e+00 : f32
    %285 = vector.broadcast %cst_135 : f32 to vector<1x128xf32>
    %286 = arith.subf %285, %276 : vector<1x128xf32>
    %cst_136 = arith.constant 1.000000e-10 : f32
    %287 = vector.broadcast %cst_136 : f32 to vector<1x128xf32>
    %288 = arith.addf %286, %287 : vector<1x128xf32>
    %289 = arith.mulf %247, %288 : vector<1x128xf32>
    %c0_137 = arith.constant 0 : index
    %c768_138 = arith.constant 768 : index
    %290 = vector.load %arg6[%c0_137, %c768_138] : memref<33x1024xf32, #tpu.memory_space<vmem>>, vector<32x128xf32>
    %c32_139 = arith.constant 32 : index
    %c768_140 = arith.constant 768 : index
    %291 = vector.load %arg6[%c32_139, %c768_140] : memref<33x1024xf32, #tpu.memory_space<vmem>>, vector<1x128xf32>
    %c0_141 = arith.constant 0 : index
    %c896 = arith.constant 896 : index
    %292 = vector.load %arg6[%c0_141, %c896] : memref<33x1024xf32, #tpu.memory_space<vmem>>, vector<32x128xf32>
    %c32_142 = arith.constant 32 : index
    %c896_143 = arith.constant 896 : index
    %293 = vector.load %arg6[%c32_142, %c896_143] : memref<33x1024xf32, #tpu.memory_space<vmem>>, vector<1x128xf32>
    %294 = arith.addf %290, %292 : vector<32x128xf32>
    %cst_144 = arith.constant 5.000000e-01 : f32
    %295 = vector.broadcast %cst_144 : f32 to vector<32x128xf32>
    %296 = arith.mulf %295, %294 : vector<32x128xf32>
    %297 = arith.addf %291, %293 : vector<1x128xf32>
    %cst_145 = arith.constant 5.000000e-01 : f32
    %298 = vector.broadcast %cst_145 : f32 to vector<1x128xf32>
    %299 = arith.mulf %298, %297 : vector<1x128xf32>
    %cst_146 = arith.constant 1.000000e+00 : f32
    %300 = vector.broadcast %cst_146 : f32 to vector<1x128xf32>
    %301 = arith.subf %299, %300 : vector<1x128xf32>
    %cst_147 = arith.constant 0.000000e+00 : f32
    %302 = vector.broadcast %cst_147 : f32 to vector<1x128xf32>
    %303 = arith.maximumf %301, %302 : vector<1x128xf32>
    %304 = math.absf %301 : vector<1x128xf32>
    %cst_148 = arith.constant 0.000000e+00 : f32
    %305 = vector.broadcast %cst_148 : f32 to vector<1x128xf32>
    %306 = arith.subf %305, %304 : vector<1x128xf32>
    %307 = math.exp %306 : vector<1x128xf32>
    %cst_149 = arith.constant 1.000000e+00 : f32
    %308 = vector.broadcast %cst_149 : f32 to vector<1x128xf32>
    %309 = arith.addf %308, %307 : vector<1x128xf32>
    %310 = math.log %309 : vector<1x128xf32>
    %311 = arith.addf %303, %310 : vector<1x128xf32>
    %cst_150 = arith.constant 0.000000e+00 : f32
    %312 = vector.broadcast %cst_150 : f32 to vector<1x128xf32>
    %313 = arith.subf %312, %311 : vector<1x128xf32>
    %cst_151 = arith.constant 1.500000e-01 : f32
    %314 = vector.broadcast %cst_151 : f32 to vector<1x128xf32>
    %315 = arith.mulf %313, %314 : vector<1x128xf32>
    %316 = math.exp %315 : vector<1x128xf32>
    %cst_152 = arith.constant 1.000000e+00 : f32
    %317 = vector.broadcast %cst_152 : f32 to vector<1x128xf32>
    %318 = arith.subf %317, %316 : vector<1x128xf32>
    %319 = arith.mulf %318, %289 : vector<1x128xf32>
    %320 = vector.broadcast %319 : vector<1x128xf32> to vector<32x128xf32>
    %321 = arith.mulf %320, %296 : vector<32x128xf32>
    %322 = arith.addf %280, %321 : vector<32x128xf32>
    %cst_153 = arith.constant 3.225000e+00 : f32
    %323 = vector.broadcast %cst_153 : f32 to vector<1x128xf32>
    %324 = arith.mulf %319, %323 : vector<1x128xf32>
    %325 = arith.addf %283, %324 : vector<1x128xf32>
    %326 = arith.addf %284, %319 : vector<1x128xf32>
    %cst_154 = arith.constant 1.000000e-10 : f32
    %327 = vector.broadcast %cst_154 : f32 to vector<1x128xf32>
    %328 = arith.maximumf %326, %327 : vector<1x128xf32>
    %329 = arith.divf %325, %328 : vector<1x128xf32>
    %cst_155 = arith.constant 2.250000e+00 : f32
    %cst_156 = arith.constant 3.300000e+00 : f32
    %330 = vector.broadcast %cst_155 : f32 to vector<1x128xf32>
    %331 = arith.maximumf %330, %329 : vector<1x128xf32>
    %332 = vector.broadcast %cst_156 : f32 to vector<1x128xf32>
    %333 = arith.minimumf %332, %331 : vector<1x128xf32>
    %cst_157 = arith.constant 2.000000e+00 : f32
    %334 = vector.broadcast %cst_157 : f32 to vector<32x128xf32>
    %335 = arith.mulf %322, %334 : vector<32x128xf32>
    %cst_158 = arith.constant 1.000000e+00 : f32
    %336 = vector.broadcast %cst_158 : f32 to vector<32x128xf32>
    %337 = arith.subf %335, %336 : vector<32x128xf32>
    %c0_159 = arith.constant 0 : index
    %c0_160 = arith.constant 0 : index
    %338 = vector.load %arg5[%c0_159, %c0_160] : memref<40x128xf32, #tpu.memory_space<vmem>>, vector<32x128xf32>
    tpu.vector_store %arg5[%c0_159, %c0_160], %337 {strides = array<i32>} : memref<40x128xf32, #tpu.memory_space<vmem>>, vector<32x128xf32>,
    %cst_161 = arith.constant 0.000000e+00 : f32
    %339 = vector.broadcast %cst_161 : f32 to vector<6x128xf32>
    %340 = tpu.concatenate %333, %326, %339 in 0 : vector<1x128xf32>, vector<1x128xf32>, vector<6x128xf32> -> vector<8x128xf32>
    %c32_162 = arith.constant 32 : index
    %c0_163 = arith.constant 0 : index
    %341 = vector.load %arg5[%c32_162, %c0_163] : memref<40x128xf32, #tpu.memory_space<vmem>>, vector<8x128xf32>
    tpu.vector_store %arg5[%c32_162, %c0_163], %340 {strides = array<i32>} : memref<40x128xf32, #tpu.memory_space<vmem>>, vector<8x128xf32>,
    return
  }
  func.func @transform_0(%arg0: i32) -> (i32, i32, i32) {
    %c0_i32 = arith.constant 0 : i32
    %c0_i32_0 = arith.constant 0 : i32
    %c0_i32_1 = arith.constant 0 : i32
    return %arg0, %c0_i32, %c0_i32_0 : i32, i32, i32
  }
  func.func @transform_1(%arg0: i32) -> (i32, i32) {
    %c0_i32 = arith.constant 0 : i32
    %c0_i32_0 = arith.constant 0 : i32
    %c0_i32_1 = arith.constant 0 : i32
    return %c0_i32, %c0_i32_0 : i32, i32
  }
  func.func @transform_2(%arg0: i32) -> (i32, i32) {
    %c0_i32 = arith.constant 0 : i32
    %c0_i32_0 = arith.constant 0 : i32
    %c0_i32_1 = arith.constant 0 : i32
    return %c0_i32, %c0_i32_0 : i32, i32
  }
  func.func @transform_3(%arg0: i32) -> (i32, i32) {
    %c0_i32 = arith.constant 0 : i32
    %c0_i32_0 = arith.constant 0 : i32
    %c0_i32_1 = arith.constant 0 : i32
    return %c0_i32, %c0_i32_0 : i32, i32
  }
  func.func @transform_4(%arg0: i32) -> (i32, i32) {
    %c0_i32 = arith.constant 0 : i32
    %c0_i32_0 = arith.constant 0 : i32
    return %c0_i32, %arg0 : i32, i32
  }
}

</mosaic_0001>

<bundles_post_ra>
// kernel: tpu_custom_call.1
= control target key start
LH: loop header
LB: loop body
LE: loop exit
PB: predicated region body
PF: predicated region fallthrough
CT: control target
= control target key end

     0   :  { %9 = vsyncpa [#allocation4], 0  ;;  %s4313_s0 = inlined_call_operand.vmem [shape: bf16[4,97,1024], index: 0, kind: input, shape index: {}]   ;;  %s4314_s1 = inlined_call_operand.vmem [shape: bf16[64,97], index: 1, kind: input, shape index: {}]   ;;  %s4315_s2 = inlined_call_operand.vmem [shape: bf16[33,64], index: 2, kind: input, shape index: {}]   ;;  %s4316_s3 = inlined_call_operand.vmem [shape: f32[33,1], index: 3, kind: input, shape index: {}]   ;;  %s4317_s4 = inlined_call_operand.hbm [shape: f32[40,512], index: 4, kind: output, shape index: {}]  }
   0x1   :  { %11 = vsyncpa [#allocation4 + $0x1], 0  ;;  %s3235_s15 = smov 0   ;;  %s3237_s16 = smov 0  }
   0x2   :  { %s3239_s17 = smov 0   ;;  %s3241_s18 = smov 0  }
   0x3 LB: > { %s3256_s19 = sadd.s32 4294967295, %s3202_s18   ;;  %s2507_s20 = sadd.s32 4294967294, %s3202_s18   ;;  %s3202_s18 = sphi %s3241_s18, %s4474_s18   ;;  %s3198_s17 = sphi %s3239_s17, %s4473_s17   ;;  %s3194_s16 = sphi %s3237_s16, %s4472_s16   ;;  %s3190_s15 = sphi %s3235_s15, %s4471_s15  }
   0x4   : > { %s3260_s21 = sadd.s32 1, %s3202_s18   ;;  %s113_s22 = sadd.s32 1, %s3198_s17 }
   0x5   : > { %s110_s23 = ssub.s32 %s3202_s18, %s3260_s21  ;;  %p123_p0 = scmp.ne.s32.totalorder %s3198_s17, %s3194_s16 }
   0x6   : > { %p111_p1 = scmp.eq.s32.totalorder %s110_s23, 0  ;;  %p124_p2 = scmp.eq.s32.totalorder %s3256_s19, 3 }
   0x7   : > { %p129_p3 = scmp.ne.s32.totalorder %s3194_s16, %s3190_s15  ;;  %p130_p4 = scmp.eq.s32.totalorder %s2507_s20, 3 }
   0x8   : > { %s3271_s24 = scalar_select %p111_p1, %s3198_s17, %s113_s22  }
   0x9   : > { %p3273_p5 = por %p124_p2, %p123_p0  ;;  %p3277_p6 = por %p130_p4, %p129_p3 }
   0xa   : > { %p2510_p7 = scmp.ge.s32.totalorder %s3202_s18, 1  ;;  %p165_p8 = scmp.lt.s32.totalorder %s3202_s18, 5 }
   0xc   : > { %p166_p9 = pnand %p2510_p7, %p165_p8 }
   0xe   : > { %169 = sbr.rel (%p166_p9) target bundleno = 839 (0x347), region = 36 }
  0x15   : > { %p191_p10 = scmp.lt.s32.totalorder %s3256_s19, 3  ;;  %v4318_v0 = vmov 0   ;;  %vm555_vm0 = vcmask 1040384   ;;  %vm542_vm1 = vcmask 793600   ;;  %vm1525_vm2 = vcmask 523264   ;;  %s188_s13 = sand.u32 1, %s3194_s16  }
  0x16   : > { %614 = vmatprep.mubr.bf16.mxu0 %v4318_v0  ;;  %687 = vmatprep.mubr.bf16.mxu1 %v4318_v0  ;;  %v3322_v50 = vsel %vm555_vm0, 65535, %v4318_v0  ;;  %s2649_s14 = smul.u32 40, %s188_s13  ;;  %s2646_s22 = sshll.u32 %s3256_s19, 7  ;;  %vm2429_vm3 = vcmask 1041408  }
  0x17   : > { %s192_s27 = scalar_select %p191_p10, %s3256_s19, 3  ;;  %2695 = vset.pattern.permute.xlu0 %v4318_v0  ;;  %2696 = vset.pattern.permute.xlu1 %v4318_v0 }
  0x18   : > { %s190_s20 = scalar_lea.vmem [#allocation3], %s2649_s14  ;;  %s4265_s29 = scalar_lea.hbm %s4317_s4, %s2646_s22 }
  0x19   : > { %s2650_s28 = smul.u32 416, %s192_s27  ;;  %s2445_s23 = sshll.u32 %s190_s20, 4  ;;  %s4267_s23 = int_to_ptr.vmem [resolvable:$true] %s2445_s23 }
  0x1a   : > { %s4272_s19 = scalar_lea.sflag [#allocation4], %s188_s13  ;;  %s3140_s30 = scalar_lea.vmem %s4267_s23, 640 }
  0x1b   : > { %s3292_s5 = scalar_lea.vmem %s4313_s0, %s2650_s28  ;;  %p3141_p11 = scmp.ne.s32.totalorder %s4267_s23, %s3140_s30 }
  0x1c   : > { %v197_v1 = vld [vmem:[%s3292_s5] sm:$0xff]  ;;  %v198_v3 = vld [vmem:[%s3292_s5 + $0x8] sm:$0xff]  ;;  %v199_v58 = vld [vmem:[%s3292_s5 + $0x10] sm:$0xff] }
  0x1d   : > { %v201_v2 = vld [vmem:[%s3292_s5 + $0x20] sm:$0xff]  ;;  %v202_v5 = vld [vmem:[%s3292_s5 + $0x28] sm:$0xff]  ;;  %v203_v59 = vld [vmem:[%s3292_s5 + $0x30] sm:$0xff]  ;;  %p3142_p12 = pnand %p3141_p11, %p3273_p5 }
  0x1e   : > { %v2517_v4 = vcombine.high %v197_v1, %v201_v2  ;;  %v2516_v6 = vcombine.low %v197_v1, %v201_v2  ;;  %v205_v7 = vld [vmem:[%s3292_s5 + $0x40] sm:$0xff]  ;;  %v2519_v9 = vcombine.high %v198_v3, %v202_v5  ;;  %v2518_v10 = vcombine.low %v198_v3, %v202_v5  ;;  %v206_v12 = vld [vmem:[%s3292_s5 + $0x48] sm:$0xff]  ;;  %v200_v60 = vld [vmem:[%s3292_s5 + $0x18] sm:$0xff] }
  0x1f   : > { %v209_v8 = vld [vmem:[%s3292_s5 + $0x60] sm:$0xff]  ;;  %v210_v13 = vld [vmem:[%s3292_s5 + $0x68] sm:$0xff]  ;;  %v204_v61 = vld [vmem:[%s3292_s5 + $0x38] sm:$0xff]  ;;  %v2521_v1 = vcombine.high %v199_v58, %v203_v59  ;;  %p3143_p13 = pneg %p3142_p12 }
  0x20   : > { %v2525_v11 = vcombine.high %v205_v7, %v209_v8  ;;  %v213_v14 = vld [vmem:[%s3292_s5 + $0x80] sm:$0xff]  ;;  %582 = vmatprep.subr.bf16.mxu0 %v2517_v4  ;;  %v2527_v15 = vcombine.high %v206_v12, %v210_v13  ;;  %v214_v17 = vld [vmem:[%s3292_s5 + $0x88] sm:$0xff]  ;;  %655 = vmatprep.subr.bf16.mxu1 %v2519_v9  ;;  %v2524_v19 = vcombine.low %v205_v7, %v209_v8  ;;  %v207_v4 = vld [vmem:[%s3292_s5 + $0x50] sm:$0xff] }
  0x21   : > { %v217_v16 = vld [vmem:[%s3292_s5 + $0xa0] sm:$0xff]  ;;  %v218_v18 = vld [vmem:[%s3292_s5 + $0xa8] sm:$0xff]  ;;  %583 = vmatpush1.bf16.msra.mxu0 %v2516_v6  ;;  %656 = vmatpush1.bf16.msra.mxu1 %v2518_v10  ;;  %v2526_v20 = vcombine.low %v206_v12, %v210_v13  ;;  %v2523_v2 = vcombine.high %v200_v60, %v204_v61  ;;  %v211_v5 = vld [vmem:[%s3292_s5 + $0x70] sm:$0xff]  ;;  %v2520_v6 = vcombine.low %v199_v58, %v203_v59 }
  0x22   : > { %584 = vmatprep.subr.bf16.mxu0 %v2525_v11  ;;  %v2533_v21 = vcombine.high %v213_v14, %v217_v16  ;;  %657 = vmatprep.subr.bf16.mxu1 %v2527_v15  ;;  %v2535_v22 = vcombine.high %v214_v17, %v218_v18  ;;  %v221_v23 = vld [vmem:[%s3292_s5 + $0xc0] sm:$0xff]  ;;  %v222_v25 = vld [vmem:[%s3292_s5 + $0xc8] sm:$0xff]  ;;  %v2532_v27 = vcombine.low %v213_v14, %v217_v16  ;;  %v208_v7 = vld [vmem:[%s3292_s5 + $0x58] sm:$0xff] }
  0x23   : > { %v225_v24 = vld [vmem:[%s3292_s5 + $0xe0] sm:$0xff]  ;;  %v226_v26 = vld [vmem:[%s3292_s5 + $0xe8] sm:$0xff]  ;;  %v2534_v28 = vcombine.low %v214_v17, %v218_v18  ;;  %v212_v8 = vld [vmem:[%s3292_s5 + $0x78] sm:$0xff]  ;;  %v2522_v9 = vcombine.low %v200_v60, %v204_v61  ;;  %v2529_v10 = vcombine.high %v207_v4, %v211_v5  ;;  %v2528_v16 = vcombine.low %v207_v4, %v211_v5 }
  0x24   : > { %v2541_v29 = vcombine.high %v221_v23, %v225_v24  ;;  %v2543_v30 = vcombine.high %v222_v25, %v226_v26  ;;  %v229_v31 = vld [vmem:[%s3292_s5 + $0x100] sm:$0xff]  ;;  %v230_v33 = vld [vmem:[%s3292_s5 + $0x108] sm:$0xff]  ;;  %v2540_v35 = vcombine.low %v221_v23, %v225_v24  ;;  %v2542_v36 = vcombine.low %v222_v25, %v226_v26  ;;  %v215_v11 = vld [vmem:[%s3292_s5 + $0x90] sm:$0xff] }
  0x25   : > { %585 = vmatpush1.bf16.msra.mxu0 %v2524_v19  ;;  %658 = vmatpush1.bf16.msra.mxu1 %v2526_v20  ;;  %v233_v32 = vld [vmem:[%s3292_s5 + $0x120] sm:$0xff]  ;;  %v234_v34 = vld [vmem:[%s3292_s5 + $0x128] sm:$0xff]  ;;  %v219_v12 = vld [vmem:[%s3292_s5 + $0xb0] sm:$0xff]  ;;  %v2531_v13 = vcombine.high %v208_v7, %v212_v8  ;;  %v2530_v17 = vcombine.low %v208_v7, %v212_v8 }
  0x26   : > { %586 = vmatprep.subr.bf16.mxu0 %v2533_v21  ;;  %659 = vmatprep.subr.bf16.mxu1 %v2535_v22  ;;  %v2549_v37 = vcombine.high %v229_v31, %v233_v32  ;;  %v2551_v38 = vcombine.high %v230_v33, %v234_v34  ;;  %v237_v39 = vld [vmem:[%s3292_s5 + $0x140] sm:$0xff]  ;;  %v238_v42 = vld [vmem:[%s3292_s5 + $0x148] sm:$0xff]  ;;  %v2548_v45 = vcombine.low %v229_v31, %v233_v32  ;;  %v216_v14 = vld [vmem:[%s3292_s5 + $0x98] sm:$0xff] }
  0x27   : > { %v241_v40 = vld [vmem:[%s3292_s5 + $0x160] sm:$0xff]  ;;  %v242_v43 = vld [vmem:[%s3292_s5 + $0x168] sm:$0xff]  ;;  %v2550_v46 = vcombine.low %v230_v33, %v234_v34  ;;  %v220_v15 = vld [vmem:[%s3292_s5 + $0xb8] sm:$0xff]  ;;  %v2537_v18 = vcombine.high %v215_v11, %v219_v12  ;;  %v2536_v23 = vcombine.low %v215_v11, %v219_v12 }
  0x28   : > { %v245_v41 = vld [vmem:[%s3292_s5 + $0x180] sm:$0x11]  ;;  %v246_v44 = vld [vmem:[%s3292_s5 + $0x188] sm:$0x11]  ;;  %v2557_v47 = vcombine.high %v237_v39, %v241_v40  ;;  %v2559_v49 = vcombine.high %v238_v42, %v242_v43  ;;  %v2556_v52 = vcombine.low %v237_v39, %v241_v40  ;;  %v2558_v54 = vcombine.low %v238_v42, %v242_v43  ;;  %v223_v21 = vld [vmem:[%s3292_s5 + $0xd0] sm:$0xff] }
  0x29   : > { %587 = vmatpush1.bf16.msra.mxu0 %v2532_v27  ;;  %660 = vmatpush1.bf16.msra.mxu1 %v2534_v28  ;;  %v2565_v48 = vcombine.high %v245_v41, %v245_v41  ;;  %v2567_v51 = vcombine.high %v246_v44, %v246_v44  ;;  %v2564_v53 = vcombine.low %v245_v41, %v245_v41  ;;  %v3335_v3 = vld [vmem:[%s4314_s1] sm:$0xff]   ;;  %v3354_v20 = vld [vmem:[%s4314_s1 + $0x8] sm:$0xff]   ;;  %v227_v22 = vld [vmem:[%s3292_s5 + $0xf0] sm:$0xff] }
  0x2a   : > { %588 = vmatprep.subr.bf16.mxu0 %v2541_v29  ;;  %661 = vmatprep.subr.bf16.mxu1 %v2543_v30  ;;  %v2566_v56 = vcombine.low %v246_v44, %v246_v44  ;;  %v2539_v19 = vcombine.high %v216_v14, %v220_v15  ;;  %v224_v24 = vld [vmem:[%s3292_s5 + $0xd8] sm:$0xff]  ;;  %v2538_v26 = vcombine.low %v216_v14, %v220_v15  ;;  %v231_v28 = vld [vmem:[%s3292_s5 + $0x110] sm:$0xff] }
  0x2b   : > { %v562_v55 = vand.u32 %v2565_v48, %v3322_v50  ;;  %v568_v57 = vand.u32 %v2567_v51, %v3322_v50  ;;  %v559_v62 = vand.u32 %v2564_v53, %v3322_v50  ;;  %v228_v25 = vld [vmem:[%s3292_s5 + $0xf8] sm:$0xff]  ;;  %v2545_v27 = vcombine.high %v223_v21, %v227_v22  ;;  %v235_v29 = vld [vmem:[%s3292_s5 + $0x130] sm:$0xff] }
  0x2c   : > { %v565_v63 = vand.u32 %v2566_v56, %v3322_v50  ;;  %v2547_v30 = vcombine.high %v224_v24, %v228_v25  ;;  %v232_v31 = vld [vmem:[%s3292_s5 + $0x118] sm:$0xff]  ;;  %v2544_v33 = vcombine.low %v223_v21, %v227_v22  ;;  %v2546_v34 = vcombine.low %v224_v24, %v228_v25  ;;  %v239_v39 = vld [vmem:[%s3292_s5 + $0x150] sm:$0xff] }
  0x2d   : > { %589 = vmatpush1.bf16.msra.mxu0 %v2540_v35  ;;  %662 = vmatpush1.bf16.msra.mxu1 %v2542_v36  ;;  %v236_v32 = vld [vmem:[%s3292_s5 + $0x138] sm:$0xff]  ;;  %v2553_v35 = vcombine.high %v231_v28, %v235_v29  ;;  %v2703_v36 = vld [vmem:[%s4314_s1 + $0x10] sm:$0xff]   ;;  %v2552_v42 = vcombine.low %v231_v28, %v235_v29 }
  0x2e   : > { %590 = vmatprep.subr.bf16.mxu0 %v2549_v37  ;;  %663 = vmatprep.subr.bf16.mxu1 %v2551_v38  ;;  %v2555_v37 = vcombine.high %v232_v31, %v236_v32  ;;  %v247_v38 = vld [vmem:[%s3292_s5 + $0x190] sm:$0x11]  ;;  %v248_v41 = vld [vmem:[%s3292_s5 + $0x198] sm:$0x11] }
  0x2f   : > { %v243_v40 = vld [vmem:[%s3292_s5 + $0x170] sm:$0xff]  ;;  %v240_v43 = vld [vmem:[%s3292_s5 + $0x158] sm:$0xff]  ;;  %v2571_v48 = vcombine.high %v248_v41, %v248_v41 }
  0x30   : > { %v244_v44 = vld [vmem:[%s3292_s5 + $0x178] sm:$0xff]  ;;  %v2560_v51 = vcombine.low %v239_v39, %v243_v40  ;;  %s3206_s5 = smov [#allocation3]  }
  0x31   : > { %591 = vmatpush1.bf16.msra.mxu0 %v2548_v45  ;;  %664 = vmatpush1.bf16.msra.mxu1 %v2550_v46  ;;  %v2554_v45 = vcombine.low %v232_v31, %v236_v32  ;;  %v2569_v46 = vcombine.high %v247_v38, %v247_v38  ;;  %v2562_v53 = vcombine.low %v240_v43, %v244_v44  ;;  %s3144_s6 = sshll.u32 %s3206_s5, 4  ;;  %s3145_s6 = int_to_ptr.vmem [resolvable:$false] %s3144_s6 }
  0x32   : > { %592 = vmatprep.subr.bf16.mxu0 %v2557_v47  ;;  %665 = vmatprep.subr.bf16.mxu1 %v2559_v49  ;;  %v2561_v47 = vcombine.high %v239_v39, %v243_v40  ;;  %v2563_v49 = vcombine.high %v240_v43, %v244_v44  ;;  %v580_v56 = vand.u32 %v2571_v48, %v3322_v50  ;;  %s3146_s7 = scalar_lea.vmem %s3145_s6, 1280  ;;  %p3147_p0 = scmp.lt.s32.totalorder %s4267_s23, %s3145_s6 }
  0x33   : > { %p3148_p1 = scmp.lt.s32.totalorder %s3146_s7, %s3140_s30 }
  0x35   : > { %593 = vmatpush1.bf16.msra.mxu0 %v2556_v52  ;;  %666 = vmatpush1.bf16.msra.mxu1 %v2558_v54  ;;  %v2568_v52 = vcombine.low %v247_v38, %v247_v38  ;;  %v574_v54 = vand.u32 %v2569_v46, %v3322_v50  ;;  %p3149_p2 = por %p3148_p1, %p3147_p0 }
  0x36   : > { %594 = vmatprep.subr.bf16.mxu0 %v562_v55  ;;  %667 = vmatprep.subr.bf16.mxu1 %v568_v57  ;;  %v2570_v55 = vcombine.low %v248_v41, %v248_v41  ;;  %v2704_v57 = vld [vmem:[%s4314_s1 + $0x18] sm:$0xff]  }
  0x37   : > { %v571_v58 = vand.u32 %v2568_v52, %v3322_v50  ;;  %p3150_p3 = pnand %p3149_p2, %p3143_p13 }
  0x38   : > { %v577_v59 = vand.u32 %v2570_v55, %v3322_v50 }
  0x39   : > { %595 = vmatpush1.bf16.msra.mxu0 %v559_v62  ;;  %668 = vmatpush1.bf16.msra.mxu1 %v565_v63 }
  0x3a   : > { %728 = vmatprep.subr.bf16.mxu0 %v2521_v1  ;;  %801 = vmatprep.subr.bf16.mxu1 %v2523_v2 }
  0x3c   : > { %2572 = vmatmul.mubr.msk.bf16.vlgmr.msra.gmra.mrb[0].mxu0 %vm542_vm1, %v3335_v3  ;;  %2576 = vmatmul.mubr.msk.bf16.vlgmr.msra.gmra.mrb[0].mxu1 %vm542_vm1, %v3335_v3 }
  0x3d   : > { %729 = vmatpush1.bf16.msra.mxu0 %v2520_v6  ;;  %802 = vmatpush1.bf16.msra.mxu1 %v2522_v9 }
  0x3e   : > { %624 = vmatprep.mubr.bf16.mxu0 %v4318_v0  ;;  %697 = vmatprep.mubr.bf16.mxu1 %v4318_v0 }
  0x3f   : > { %730 = vmatprep.subr.bf16.mxu0 %v2529_v10  ;;  %803 = vmatprep.subr.bf16.mxu1 %v2531_v13 }
  0x41   : > { %731 = vmatpush1.bf16.msra.mxu0 %v2528_v16  ;;  %804 = vmatpush1.bf16.msra.mxu1 %v2530_v17 }
  0x42   : > { %732 = vmatprep.subr.bf16.mxu0 %v2537_v18  ;;  %805 = vmatprep.subr.bf16.mxu1 %v2539_v19 }
  0x44   : > { %2573 = vmatmul.mubr.msk.bf16.gmra.mrb[4].mxu0 %vm542_vm1, %v3354_v20  ;;  %2577 = vmatmul.mubr.msk.bf16.gmra.mrb[4].mxu1 %vm542_vm1, %v3354_v20 }
  0x45   : > { %733 = vmatpush1.bf16.msra.mxu0 %v2536_v23  ;;  %806 = vmatpush1.bf16.msra.mxu1 %v2538_v26 }
  0x46   : > { %634 = vmatprep.mubr.bf16.mxu0 %v4318_v0  ;;  %707 = vmatprep.mubr.bf16.mxu1 %v4318_v0 }
  0x47   : > { %734 = vmatprep.subr.bf16.mxu0 %v2545_v27  ;;  %807 = vmatprep.subr.bf16.mxu1 %v2547_v30 }
  0x49   : > { %735 = vmatpush1.bf16.msra.mxu0 %v2544_v33  ;;  %808 = vmatpush1.bf16.msra.mxu1 %v2546_v34 }
  0x4a   : > { %736 = vmatprep.subr.bf16.mxu0 %v2553_v35  ;;  %809 = vmatprep.subr.bf16.mxu1 %v2555_v37 }
  0x4c   : > { %2574 = vmatmul.mubr.msk.bf16.gmra.mrb[8].mxu0 %vm542_vm1, %v2703_v36  ;;  %2578 = vmatmul.mubr.msk.bf16.gmra.mrb[8].mxu1 %vm542_vm1, %v2703_v36 }
  0x4d   : > { %737 = vmatpush1.bf16.msra.mxu0 %v2552_v42  ;;  %810 = vmatpush1.bf16.msra.mxu1 %v2554_v45 }
  0x4e   : > { %644 = vmatprep.mubr.bf16.mxu0 %v4318_v0  ;;  %717 = vmatprep.mubr.bf16.mxu1 %v4318_v0 }
  0x4f   : > { %738 = vmatprep.subr.bf16.mxu0 %v2561_v47  ;;  %811 = vmatprep.subr.bf16.mxu1 %v2563_v49 }
  0x51   : > { %739 = vmatpush1.bf16.msra.mxu0 %v2560_v51  ;;  %812 = vmatpush1.bf16.msra.mxu1 %v2562_v53 }
  0x52   : > { %740 = vmatprep.subr.bf16.mxu0 %v574_v54  ;;  %813 = vmatprep.subr.bf16.mxu1 %v580_v56 }
  0x54   : > { %2575 = vmatmul.mubr.msk.bf16.gmra.mrb[12].mxu0 %vm542_vm1, %v2704_v57  ;;  %2579 = vmatmul.mubr.msk.bf16.gmra.mrb[12].mxu1 %vm542_vm1, %v2704_v57 }
  0x55   : > { %741 = vmatpush1.bf16.msra.mxu0 %v571_v58  ;;  %814 = vmatpush1.bf16.msra.mxu1 %v577_v59 }
  0x56   : > { %760 = vmatprep.mubr.bf16.mxu0 %v4318_v0  ;;  %833 = vmatprep.mubr.bf16.mxu1 %v4318_v0 }
  0x5c   : > { %2580 = vmatmul.mubr.msk.bf16.vlgmr.msra.gmra.mrb[16].mxu0 %vm542_vm1, %v3335_v3  ;;  %2584 = vmatmul.mubr.msk.bf16.vlgmr.msra.gmra.mrb[16].mxu1 %vm542_vm1, %v3335_v3 }
  0x5d   : > { %770 = vmatprep.mubr.bf16.mxu0 %v4318_v0  ;;  %843 = vmatprep.mubr.bf16.mxu1 %v4318_v0 }
  0x64   : > { %2581 = vmatmul.mubr.msk.bf16.gmra.mrb[20].mxu0 %vm542_vm1, %v3354_v20  ;;  %2585 = vmatmul.mubr.msk.bf16.gmra.mrb[20].mxu1 %vm542_vm1, %v3354_v20 }
  0x65   : > { %780 = vmatprep.mubr.bf16.mxu0 %v4318_v0  ;;  %853 = vmatprep.mubr.bf16.mxu1 %v4318_v0 }
  0x6c   : > { %2582 = vmatmul.mubr.msk.bf16.gmra.mrb[24].mxu0 %vm542_vm1, %v2703_v36  ;;  %2586 = vmatmul.mubr.msk.bf16.gmra.mrb[24].mxu1 %vm542_vm1, %v2703_v36 }
  0x6d   : > { %790 = vmatprep.mubr.bf16.mxu0 %v4318_v0  ;;  %863 = vmatprep.mubr.bf16.mxu1 %v4318_v0 }
  0x74   : > { %2583 = vmatmul.mubr.msk.bf16.gmra.mrb[28].mxu0 %vm542_vm1, %v2704_v57  ;;  %2587 = vmatmul.mubr.msk.bf16.gmra.mrb[28].mxu1 %vm542_vm1, %v2704_v57 }
  0x75   : > { %1567 = vmatprep.mubr.bf16.mxu0 %v4318_v0  ;;  %1628 = vmatprep.mubr.bf16.mxu1 %v4318_v0 }
 0x10f   : > { %v3414_v50 = vpop.f32.mrb[0].mxu0  ;;  %v3417_v61 = vpop.f32.mrb[0].mxu1 }
 0x110   : > { %v938_v60 = vand.u32 2147483647, %v3414_v50  ;;  %v3419_v62 = vpop.f32.mrb[1].mxu0  ;;  %v940_v63 = vand.u32 2147483647, %v3417_v61  ;;  %v3423_v3 = vpop.f32.mrb[1].mxu1 }
 0x111   : > { %v939_v1 = vand.u32 2147483647, %v3419_v62  ;;  %v3425_v4 = vpop.f32.mrb[2].mxu0  ;;  %v941_v7 = vand.u32 2147483647, %v3423_v3  ;;  %v3428_v8 = vpop.f32.mrb[2].mxu1 }
 0x112   : > { %v1002_v2 = vsub.f32 0.0, %v938_v60  ;;  %v1004_v5 = vsub.f32 0.0, %v940_v63  ;;  %v946_v10 = vand.u32 2147483647, %v3425_v4  ;;  %v3431_v14 = vpop.f32.mrb[3].mxu0  ;;  %v3434_v17 = vpop.f32.mrb[3].mxu1 }
 0x113   : > { %v1003_v6 = vsub.f32 0.0, %v939_v1  ;;  %v1005_v13 = vsub.f32 0.0, %v941_v7  ;;  %v948_v16 = vand.u32 2147483647, %v3428_v8  ;;  %v947_v19 = vand.u32 2147483647, %v3431_v14 }
 0x114   : > { %v1066_v9 = vmul.f32 1.442695, %v1002_v2  ;;  %v1070_v11 = vmul.f32 1.442695, %v1004_v5  ;;  %v1010_v15 = vsub.f32 0.0, %v946_v10  ;;  %v876_v7 = vmax.f32 %v3417_v61, 0.0 }
 0x115   : > { %v1068_v12 = vmul.f32 1.442695, %v1003_v6  ;;  %v1072_v18 = vmul.f32 1.442695, %v1005_v13  ;;  %v1012_v22 = vsub.f32 0.0, %v948_v16  ;;  %v1011_v25 = vsub.f32 0.0, %v947_v19 }
 0x116   : > { %2712 = vpow2.f32 %v1066_v9  ;;  %v1082_v21 = vmul.f32 1.442695, %v1010_v15  ;;  %v949_v23 = vand.u32 2147483647, %v3434_v17  ;;  %v874_v6 = vmax.f32 %v3414_v50, 0.0 }
 0x117   : > { %2714 = vpow2.f32 %v1070_v11  ;;  %v3437_v20 = vpop.f32.mrb[4].mxu0  ;;  %v3440_v24 = vpop.f32.mrb[4].mxu1  ;;  %v1086_v29 = vmul.f32 1.442695, %v1012_v22  ;;  %v1084_v33 = vmul.f32 1.442695, %v1011_v25 }
 0x118   : > { %2716 = vpow2.f32 %v1068_v12  ;;  %v954_v26 = vand.u32 2147483647, %v3437_v20  ;;  %v3443_v27 = vpop.f32.mrb[5].mxu0  ;;  %v3445_v28 = vpop.f32.mrb[5].mxu1  ;;  %v1013_v30 = vsub.f32 0.0, %v949_v23 }
 0x119   : > { %2718 = vpow2.f32 %v1072_v18  ;;  %v3447_v31 = vpop.f32.mrb[6].mxu0  ;;  %v3449_v32 = vpop.f32.mrb[6].mxu1  ;;  %v956_v35 = vand.u32 2147483647, %v3440_v24  ;;  %v955_v37 = vand.u32 2147483647, %v3443_v27 }
 0x11a   : > { %2720 = vpow2.f32 %v1082_v21  ;;  %v1018_v34 = vsub.f32 0.0, %v954_v26  ;;  %v1088_v36 = vmul.f32 1.442695, %v1013_v30  ;;  %v3453_v38 = vpop.f32.mrb[7].mxu0  ;;  %v957_v41 = vand.u32 2147483647, %v3445_v28 }
 0x11b   : > { %2722 = vpow2.f32 %v1086_v29  ;;  %v1020_v40 = vsub.f32 0.0, %v956_v35  ;;  %v3456_v42 = vpop.f32.mrb[7].mxu1  ;;  %v1019_v43 = vsub.f32 0.0, %v955_v37  ;;  %v962_v44 = vand.u32 2147483647, %v3447_v31 }
 0x11c   : > { %2724 = vpow2.f32 %v1084_v33  ;;  %v1098_v39 = vmul.f32 1.442695, %v1018_v34  ;;  %v1021_v52 = vsub.f32 0.0, %v957_v41  ;;  %v964_v63 = vand.u32 2147483647, %v3449_v32 }
 0x11d   : > { %2726 = vpow2.f32 %v1088_v36  ;;  %v1102_v45 = vmul.f32 1.442695, %v1020_v40  ;;  %v1100_v48 = vmul.f32 1.442695, %v1019_v43  ;;  %v1026_v56 = vsub.f32 0.0, %v962_v44 }
 0x11e   : > { %2728 = vpow2.f32 %v1098_v39  ;;  %v1104_v15 = vmul.f32 1.442695, %v1021_v52  ;;  %v963_v21 = vand.u32 2147483647, %v3453_v38  ;;  %v1028_v26 = vsub.f32 0.0, %v964_v63 }
 0x11f   : > { %v3459_v46 = vpop.f32.mrb[8].mxu0  ;;  %2730 = vpow2.f32 %v1102_v45  ;;  %v3461_v53 = vpop.f32.mrb[8].mxu1  ;;  %v1114_v19 = vmul.f32 1.442695, %v1026_v56  ;;  %v965_v29 = vand.u32 2147483647, %v3456_v42 }
 0x120   : > { %v2713_v47 = vpop.eup %2712  ;;  %2732 = vpow2.f32 %v1100_v48  ;;  %v3463_v57 = vpop.f32.mrb[9].mxu0  ;;  %v970_v22 = vand.u32 2147483647, %v3459_v46  ;;  %v882_v34 = vmax.f32 %v3425_v4, 0.0  ;;  %v972_v36 = vand.u32 2147483647, %v3461_v53 }
 0x121   : > { %v2715_v49 = vpop.eup %2714  ;;  %v1194_v51 = vadd.f32 1.0, %v2713_v47  ;;  %v3465_v58 = vpop.f32.mrb[9].mxu1  ;;  %v971_v44 = vand.u32 2147483647, %v3463_v57 }
 0x122   : > { %v2717_v54 = vpop.eup %2716  ;;  %v1196_v55 = vadd.f32 1.0, %v2715_v49  ;;  %4355 = vst [vmem:[#allocation6_spill] sm:$0xff] %v3465_v58  ;;  %v3468_v1 = vpop.f32.mrb[10].mxu0  ;;  %v1027_v49 = vsub.f32 0.0, %v963_v21 }
 0x123   : > { %v2719_v59 = vpop.eup %2718  ;;  %2734 = vlog2.f32 %v1194_v51  ;;  %v1195_v60 = vadd.f32 1.0, %v2717_v54  ;;  %v3470_v2 = vpop.f32.mrb[10].mxu1  ;;  %v1034_v51 = vsub.f32 0.0, %v970_v22 }
 0x124   : > { %v2721_v5 = vpop.eup %2720  ;;  %v1197_v10 = vadd.f32 1.0, %v2719_v59  ;;  %v3475_v11 = vpop.f32.mrb[11].mxu0  ;;  %2736 = vlog2.f32 %v1196_v55  ;;  %v1118_v59 = vmul.f32 1.442695, %v1028_v26  ;;  %v973_v26 = vand.u32 2147483647, %v3465_v58 }
 0x125   : > { %4356 = vst [vmem:[#allocation7_spill] sm:$0xff] %v3475_v11  ;;  %v1202_v13 = vadd.f32 1.0, %v2721_v5  ;;  %v3478_v16 = vpop.f32.mrb[11].mxu1  ;;  %v2723_v18 = vpop.eup %2722  ;;  %2738 = vlog2.f32 %v1195_v60  ;;  %v1029_v60 = vsub.f32 0.0, %v965_v29 }
 0x126   : > { %v2725_v23 = vpop.eup %2724  ;;  %v1204_v25 = vadd.f32 1.0, %v2723_v18 }
 0x127   : > { %2740 = vlog2.f32 %v1202_v13  ;;  %v3483_v30 = vpop.f32.mrb[12].mxu0  ;;  %v2727_v33 = vpop.eup %2726  ;;  %v1203_v35 = vadd.f32 1.0, %v2725_v23  ;;  %v1036_v13 = vsub.f32 0.0, %v972_v36  ;;  %v1035_v23 = vsub.f32 0.0, %v971_v44 }
 0x128   : > { %2742 = vlog2.f32 %v1197_v10  ;;  %v3487_v37 = vpop.f32.mrb[12].mxu1  ;;  %v3489_v39 = vpop.f32.mrb[13].mxu0  ;;  %v1205_v43 = vadd.f32 1.0, %v2727_v33  ;;  %v1130_v33 = vmul.f32 1.442695, %v1034_v51 }
 0x129   : > { %v2729_v40 = vpop.eup %2728  ;;  %2744 = vlog2.f32 %v1204_v25  ;;  %v3493_v45 = vpop.f32.mrb[13].mxu1  ;;  %v1116_v25 = vmul.f32 1.442695, %v1027_v49  ;;  %v1134_v0 = vmul.f32 1.442695, %v1036_v13 }
 0x12a   : > { %v3495_v47 = vpop.f32.mrb[14].mxu0  ;;  %v1210_v48 = vadd.f32 1.0, %v2729_v40  ;;  %2746 = vpow2.f32 %v1104_v15  ;;  %v3497_v52 = vpop.f32.mrb[14].mxu1  ;;  %v978_v15 = vand.u32 2147483647, %v3468_v1 }
 0x12b   : > { %v3499_v54 = vpop.f32.mrb[15].mxu0  ;;  %v2731_v55 = vpop.eup %2730  ;;  %2748 = vlog2.f32 %v1203_v35  ;;  %v1132_v49 = vmul.f32 1.442695, %v1035_v23 }
 0x12c   : > { %v3502_v63 = vpop.f32.mrb[15].mxu1  ;;  %v2733_v5 = vpop.eup %2732  ;;  %2750 = vlog2.f32 %v1205_v43  ;;  %v1212_v10 = vadd.f32 1.0, %v2731_v55  ;;  %v1042_v40 = vsub.f32 0.0, %v978_v15  ;;  %v980_v43 = vand.u32 2147483647, %v3470_v2 }
 0x12d   : > { %v2735_v18 = vpop.eup %2734  ;;  %v1211_v22 = vadd.f32 1.0, %v2733_v5  ;;  %2752 = vpow2.f32 %v1114_v19  ;;  %v1120_v55 = vmul.f32 1.442695, %v1029_v60 }
 0x12e   : > { %2754 = vlog2.f32 %v1210_v48  ;;  %v2737_v29 = vpop.eup %2736  ;;  %v1259_v35 = vmul.f32 0.6931472, %v2735_v18  ;;  %v1044_v51 = vsub.f32 0.0, %v980_v43  ;;  %v1146_v23 = vmul.f32 1.442695, %v1042_v40 }
 0x12f   : > { %2756 = vlog2.f32 %v1212_v10  ;;  %v3508_v36 = vpop.eup %2738  ;;  %v3510_v21 = vpop.f32.mrb[16].mxu0  ;;  %v1263_v18 = vmul.f32 0.6931472, %v2737_v29 }
 0x130   : > { %2758 = vpow2.f32 %v1118_v59  ;;  %v3512_v19 = vpop.f32.mrb[16].mxu1  ;;  %v3515_v5 = vpop.f32.mrb[17].mxu0  ;;  %v3527_v48 = vadd.f32 %v1259_v35, %v874_v6  ;;  %v1261_v6 = vmul.f32 0.6931472, %v3508_v36  ;;  %v988_v36 = vand.u32 2147483647, %v3487_v37 }
 0x131   : > { %v2741_v44 = vpop.eup %2740  ;;  %2760 = vlog2.f32 %v1211_v22  ;;  %v3517_v10 = vpop.f32.mrb[17].mxu1  ;;  %v1037_v22 = vsub.f32 0.0, %v973_v26  ;;  %v1150_v26 = vmul.f32 1.442695, %v1044_v51  ;;  %v3543_v40 = vadd.f32 %v1263_v18, %v876_v7 }
 0x132   : > { %v3519_v15 = vpop.eup %2742  ;;  %v1275_v59 = vmul.f32 0.6931472, %v2741_v44  ;;  %2762 = vpow2.f32 %v1116_v25  ;;  %v3521_v60 = vpop.f32.mrb[18].mxu0  ;;  %4357 = vst [vmem:[#allocation8_spill] sm:$0xff] %v3527_v48  ;;  %v979_v44 = vand.u32 2147483647, %v3475_v11 }
 0x133   : > { %v3523_v13 = vpop.f32.mrb[18].mxu1  ;;  %v2745_v56 = vpop.eup %2744  ;;  %2764 = vpow2.f32 %v1130_v33  ;;  %4361 = vst [vmem:[#allocation12_spill] sm:$0xff] %v3543_v40  ;;  %v1136_v4 = vmul.f32 1.442695, %v1037_v22 }
 0x134   : > { %v3529_v43 = vpop.f32.mrb[19].mxu0  ;;  %v3531_v12 = vpop.f32.mrb[19].mxu1  ;;  %v3535_v25 = vadd.f32 %v1275_v59, %v882_v34  ;;  %v1279_v29 = vmul.f32 0.6931472, %v2745_v56  ;;  %2766 = vpow2.f32 %v1134_v0  ;;  %v4362_v0 = vmax.f32 %v3428_v8, 0.0 }
 0x135   : > { %4358 = vst [vmem:[#allocation9_spill] sm:$0xff] %v3529_v43  ;;  %4359 = vst [vmem:[#allocation10_spill] sm:$0xff] %v3531_v12  ;;  %v2747_v9 = vpop.eup %2746  ;;  %2768 = vpow2.f32 %v1120_v55  ;;  %v1043_v51 = vsub.f32 0.0, %v979_v44 }
 0x136   : > { %4360 = vst [vmem:[#allocation11_spill] sm:$0xff] %v3535_v25  ;;  %v2749_v41 = vpop.eup %2748  ;;  %v3549_v34 = vadd.f32 %v1279_v29, %v4362_v0  ;;  %2770 = vpow2.f32 %v1132_v49 }
 0x137   : > { %v2751_v35 = vpop.eup %2750  ;;  %v3553_v33 = vpop.f32.mrb[20].mxu0  ;;  %2772 = vpow2.f32 %v1146_v23 }
 0x138   : > { %4363 = vst [vmem:[#allocation13_spill] sm:$0xff] %v3549_v34  ;;  %v2753_v56 = vpop.eup %2752  ;;  %v3557_v8 = vpop.f32.mrb[20].mxu1  ;;  %2774 = vpow2.f32 %v1150_v26  ;;  %v986_v26 = vand.u32 2147483647, %v3483_v30  ;;  %v3583_v34 = vmul.f32 0.6931472, %v2749_v41 }
 0x139   : > { %v2755_v61 = vpop.eup %2754  ;;  %v1218_v18 = vadd.f32 1.0, %v2753_v56  ;;  %4364 = vst [vmem:[#allocation14_spill] sm:$0xff] %v3557_v8  ;;  %v3559_v29 = vpop.f32.mrb[21].mxu0  ;;  %v1148_v56 = vmul.f32 1.442695, %v1043_v51  ;;  %v1052_v41 = vsub.f32 0.0, %v988_v36 }
 0x13a   : > { %4365 = vst [vmem:[#allocation15_spill] sm:$0xff] %v3559_v29  ;;  %v2757_v55 = vpop.eup %2756  ;;  %v3564_v44 = vpop.f32.mrb[21].mxu1  ;;  %v1291_v22 = vmul.f32 0.6931472, %v2755_v61  ;;  %v1050_v58 = vsub.f32 0.0, %v986_v26 }
 0x13b   : > { %4366 = vst [vmem:[#allocation16_spill] sm:$0xff] %v3564_v44  ;;  %v3566_v50 = vpop.f32.mrb[22].mxu0  ;;  %v2759_v7 = vpop.eup %2758  ;;  %2776 = vlog2.f32 %v1218_v18  ;;  %v1295_v8 = vmul.f32 0.6931472, %v2757_v55 }
 0x13c   : > { %4367 = vst [vmem:[#allocation17_spill] sm:$0xff] %v3566_v50  ;;  %v3570_v59 = vpop.f32.mrb[22].mxu1  ;;  %v3572_v40 = vpop.f32.mrb[23].mxu0  ;;  %v1220_v49 = vadd.f32 1.0, %v2759_v7  ;;  %2778 = vpow2.f32 %v1136_v4  ;;  %v4371_v4 = vmax.f32 %v3419_v62, 0.0 }
 0x13d   : > { %4368 = vst [vmem:[#allocation18_spill] sm:$0xff] %v3570_v59  ;;  %4369 = vst [vmem:[#allocation19_spill] sm:$0xff] %v3572_v40  ;;  %v2761_v0 = vpop.eup %2760  ;;  %v3576_v44 = vpop.f32.mrb[23].mxu1  ;;  %v1265_v59 = vmul.f32 0.6931472, %v3519_v15  ;;  %v1213_v40 = vadd.f32 1.0, %v2747_v9 }
 0x13e   : > { %4370 = vst [vmem:[#allocation20_spill] sm:$0xff] %v3576_v44  ;;  %v2763_v50 = vpop.eup %2762  ;;  %2780 = vlog2.f32 %v1220_v49  ;;  %v981_v44 = vand.u32 2147483647, %v3478_v16  ;;  %v3588_v18 = vadd.f32 %v1261_v6, %v4371_v4  ;;  %v3592_v15 = vmul.f32 0.6931472, %v2751_v35 }
 0x13f   : > { %v2765_v23 = vpop.eup %2764  ;;  %2782 = vpow2.f32 %v1148_v56  ;;  %v3590_v25 = vpop.f32.mrb[24].mxu0  ;;  %v1219_v49 = vadd.f32 1.0, %v2763_v50  ;;  %v3598_v62 = vmul.f32 0.6931472, %v2761_v0  ;;  %v4376_v35 = vmax.f32 %v3423_v3, 0.0 }
 0x140   : > { %v2767_v7 = vpop.eup %2766  ;;  %v1226_v48 = vadd.f32 1.0, %v2765_v23  ;;  %4372 = vst [vmem:[#allocation21_spill] sm:$0xff] %v3590_v25  ;;  %v3594_v29 = vpop.f32.mrb[24].mxu1  ;;  %v987_v50 = vand.u32 2147483647, %v3489_v39  ;;  %v4379_v0 = vmax.f32 %v3437_v20, 0.0 }
 0x141   : > { %v1228_v51 = vadd.f32 1.0, %v2767_v7  ;;  %v2769_v9 = vpop.eup %2768  ;;  %4373 = vst [vmem:[#allocation22_spill] sm:$0xff] %v3594_v29  ;;  %v3596_v23 = vpop.f32.mrb[25].mxu0  ;;  %v3605_v7 = vadd.f32 %v1265_v59, %v4376_v35  ;;  %v994_v35 = vand.u32 2147483647, %v3495_v47 }
 0x142   : > { %2784 = vlog2.f32 %v1226_v48  ;;  %4374 = vst [vmem:[#allocation23_spill] sm:$0xff] %v3596_v23  ;;  %v2771_v56 = vpop.eup %2770  ;;  %v3601_v61 = vpop.f32.mrb[25].mxu1  ;;  %v1045_v48 = vsub.f32 0.0, %v981_v44  ;;  %v1221_v6 = vadd.f32 1.0, %v2769_v9  ;;  %v1162_v23 = vmul.f32 1.442695, %v1050_v58 }
 0x143   : > { %2786 = vlog2.f32 %v1228_v51  ;;  %4375 = vst [vmem:[#allocation24_spill] sm:$0xff] %v3601_v61  ;;  %v2773_v26 = vpop.eup %2772  ;;  %v3608_v36 = vpop.f32.mrb[26].mxu0  ;;  %v3614_v51 = vadd.f32 %v1291_v22, %v4379_v0  ;;  %v1166_v44 = vmul.f32 1.442695, %v1052_v41  ;;  %v996_v20 = vand.u32 2147483647, %v3497_v52 }
 0x144   : > { %2788 = vlog2.f32 %v1213_v40  ;;  %4377 = vst [vmem:[#allocation25_spill] sm:$0xff] %v3608_v36  ;;  %v3610_v4 = vpop.f32.mrb[26].mxu1  ;;  %v2775_v55 = vpop.eup %2774  ;;  %v1234_v61 = vadd.f32 1.0, %v2773_v26  ;;  %v1227_v9 = vadd.f32 1.0, %v2771_v56  ;;  %v1152_v58 = vmul.f32 1.442695, %v1045_v48 }
 0x145   : > { %4378 = vst [vmem:[#allocation26_spill] sm:$0xff] %v3610_v4  ;;  %v3616_v29 = vpop.f32.mrb[27].mxu0  ;;  %v3618_v3 = vpop.f32.mrb[27].mxu1  ;;  %2790 = vlog2.f32 %v1219_v49  ;;  %v1236_v59 = vadd.f32 1.0, %v2775_v55  ;;  %v989_v4 = vand.u32 2147483647, %v3493_v45 }
 0x146   : > { %4380 = vst [vmem:[#allocation27_spill] sm:$0xff] %v3616_v29  ;;  %4381 = vst [vmem:[#allocation28_spill] sm:$0xff] %v3618_v3  ;;  %v2777_v40 = vpop.eup %2776  ;;  %2792 = vlog2.f32 %v1234_v61  ;;  %v1058_v26 = vsub.f32 0.0, %v994_v35  ;;  %v4382_v3 = vmax.f32 %v3447_v31, 0.0  ;;  %v1060_v49 = vsub.f32 0.0, %v996_v20 }
 0x147   : > { %v1307_v36 = vmul.f32 0.6931472, %v2777_v40  ;;  %v2779_v22 = vpop.eup %2778  ;;  %2794 = vlog2.f32 %v1236_v59  ;;  %v995_v41 = vand.u32 2147483647, %v3499_v54  ;;  %v3628_v55 = vpop.f32.mrb[28].mxu0  ;;  %v1051_v25 = vsub.f32 0.0, %v987_v50 }
 0x148   : > { %v2781_v0 = vpop.eup %2780  ;;  %2796 = vpow2.f32 %v1162_v23  ;;  %v1178_v11 = vmul.f32 1.442695, %v1058_v26  ;;  %v3630_v56 = vpop.f32.mrb[28].mxu1  ;;  %v1053_v31 = vsub.f32 0.0, %v989_v4  ;;  %v4385_v35 = vmax.f32 %v3440_v24, 0.0 }
 0x149   : > { %v3625_v29 = vadd.f32 %v1307_v36, %v4382_v3  ;;  %v2783_v61 = vpop.eup %2782  ;;  %v1311_v40 = vmul.f32 0.6931472, %v2781_v0  ;;  %2798 = vlog2.f32 %v1221_v6  ;;  %v1182_v36 = vmul.f32 1.442695, %v1060_v49  ;;  %v3634_v3 = vpop.f32.mrb[29].mxu0 }
 0x14a   : > { %2800 = vpow2.f32 %v1166_v44  ;;  %4383 = vst [vmem:[#allocation29_spill] sm:$0xff] %v3634_v3  ;;  %v3636_v23 = vpop.f32.mrb[29].mxu1  ;;  %v3640_v20 = vadd.f32 %v1295_v8, %v4385_v35  ;;  %v4386_v6 = vmax.f32 %v3449_v32, 0.0  ;;  %v1229_v26 = vadd.f32 1.0, %v2779_v22  ;;  %v3646_v0 = vpop.f32.mrb[30].mxu0 }
 0x14b   : > { %4384 = vst [vmem:[#allocation30_spill] sm:$0xff] %v3636_v23  ;;  %2802 = vpow2.f32 %v1152_v58  ;;  %4387 = vst [vmem:[#allocation31_spill] sm:$0xff] %v3646_v0  ;;  %v3648_v44 = vpop.f32.mrb[30].mxu1  ;;  %v1235_v49 = vadd.f32 1.0, %v2783_v61  ;;  %v1059_v23 = vsub.f32 0.0, %v995_v41  ;;  %v3651_v3 = vpop.f32.mrb[31].mxu0 }
 0x14c   : > { %v2785_v59 = vpop.eup %2784  ;;  %v3644_v50 = vadd.f32 %v1311_v40, %v4386_v6  ;;  %4388 = vst [vmem:[#allocation32_spill] sm:$0xff] %v3648_v44  ;;  %2804 = vlog2.f32 %v1227_v9  ;;  %4389 = vst [vmem:[#allocation33_spill] sm:$0xff] %v3651_v3  ;;  %v3653_v24 = vpop.f32.mrb[31].mxu1  ;;  %v4391_v32 = vmax.f32 %v3431_v14, 0.0  ;;  %v1164_v40 = vmul.f32 1.442695, %v1051_v25 }
 0x14d   : > { %v2787_v4 = vpop.eup %2786  ;;  %4390 = vst [vmem:[#allocation34_spill] sm:$0xff] %v3653_v24  ;;  %2806 = vpow2.f32 %v1178_v11  ;;  %v4392_v9 = vmax.f32 %v3434_v17, 0.0  ;;  %v1168_v35 = vmul.f32 1.442695, %v1053_v31  ;;  %v4393_v14 = vmax.f32 %v3443_v27, 0.0 }
 0x14e   : > { %v2789_v8 = vpop.eup %2788  ;;  %v3658_v22 = vadd.f32 %v3583_v34, %v4391_v32  ;;  %2808 = vpow2.f32 %v1182_v36  ;;  %v1323_v32 = vmul.f32 0.6931472, %v2785_v59  ;;  %v1327_v48 = vmul.f32 0.6931472, %v2787_v4 }
 0x14f   : > { %v3665_v61 = vadd.f32 %v3592_v15, %v4392_v9  ;;  %v2791_v6 = vpop.eup %2790  ;;  %v3671_v34 = vadd.f32 %v3598_v62, %v4393_v14  ;;  %2810 = vlog2.f32 %v1229_v26  ;;  %v1180_v11 = vmul.f32 1.442695, %v1059_v23 }
 0x150   : > { %v2793_v25 = vpop.eup %2792  ;;  %2812 = vlog2.f32 %v1235_v49  ;;  %v942_v15 = vand.u32 2147483647, %v3510_v21  ;;  %v1297_v58 = vmul.f32 0.6931472, %v2789_v8  ;;  %v997_v36 = vand.u32 2147483647, %v3502_v63 }
 0x151   : > { %v2795_v9 = vpop.eup %2794  ;;  %v1339_v31 = vmul.f32 0.6931472, %v2793_v25  ;;  %2814 = vpow2.f32 %v1164_v40  ;;  %v944_v59 = vand.u32 2147483647, %v3512_v19  ;;  %v4394_v4 = vmax.f32 %v3459_v46, 0.0 }
 0x152   : > { %v2797_v27 = vpop.eup %2796  ;;  %v1343_v41 = vmul.f32 0.6931472, %v2795_v9  ;;  %2816 = vpow2.f32 %v1168_v35  ;;  %v1006_v62 = vsub.f32 0.0, %v942_v15  ;;  %v4395_v23 = vmax.f32 %v3461_v53, 0.0  ;;  %v1486_v35 = vld [vmem:[%s4316_s3 + $0x20] sm:$0x1] }
 0x153   : > { %v2799_v26 = vpop.eup %2798  ;;  %v3679_v49 = vadd.f32 %v1323_v32, %v4394_v4  ;;  %v4396_v8 = vmax.f32 %v3468_v1, 0.0  ;;  %v1242_v25 = vadd.f32 1.0, %v2797_v27  ;;  %v1483_v15 = vld [vmem:[%s4316_s3 + $0x8] sm:$0xff]  ;;  %v4397_v32 = vmax.f32 %v3470_v2, 0.0  ;;  %1509 = vperm.xlu0 %2695, %v1486_v35   ;;  %v1484_v2 = vld [vmem:[%s4316_s3 + $0x10] sm:$0xff] }
 0x154   : > { %v3683_v14 = vadd.f32 %v1327_v48, %v4395_v23  ;;  %v2801_v46 = vpop.eup %2800  ;;  %2818 = vpow2.f32 %v1180_v11  ;;  %v1074_v53 = vmul.f32 1.442695, %v1006_v62  ;;  %v1008_v48 = vsub.f32 0.0, %v944_v59  ;;  %1494 = vperm.xlu1 %2696, %v1483_v15   ;;  %v1482_v23 = vld [vmem:[%s4316_s3] sm:$0xff] }
 0x155   : > { %v3687_v40 = vadd.f32 %v1339_v31, %v4396_v8  ;;  %v3697_v9 = vadd.f32 %v1343_v41, %v4397_v32  ;;  %v2803_v1 = vpop.eup %2802  ;;  %2820 = vlog2.f32 %v1242_v25  ;;  %v1244_v27 = vadd.f32 1.0, %v2801_v46 }
 0x156   : > { %v943_v4 = vand.u32 2147483647, %v3515_v5  ;;  %v2805_v41 = vpop.eup %2804  ;;  %v1061_v59 = vsub.f32 0.0, %v997_v36  ;;  %2822 = vpow2.f32 %v1074_v53  ;;  %v1309_v25 = vmul.f32 0.6931472, %v2791_v6 }
 0x157   : > { %v2807_v8 = vpop.eup %2806  ;;  %2824 = vlog2.f32 %v1244_v27  ;;  %v4398_v32 = vmax.f32 %v3445_v28, 0.0  ;;  %v1078_v24 = vmul.f32 1.442695, %v1008_v48  ;;  %v945_v3 = vand.u32 2147483647, %v3517_v10  ;;  %1489 = vperm.xlu0 %2695, %v1482_v23  }
 0x158   : > { %v1007_v15 = vsub.f32 0.0, %v943_v4  ;;  %v2809_v46 = vpop.eup %2808  ;;  %v1250_v17 = vadd.f32 1.0, %v2807_v8  ;;  %1499 = vperm.xlu1 %2696, %v1484_v2   ;;  %v1313_v36 = vmul.f32 0.6931472, %v2799_v26  ;;  %v1237_v53 = vadd.f32 1.0, %v2803_v1  ;;  %v1485_v4 = vld [vmem:[%s4316_s3 + $0x18] sm:$0xff] }
 0x159   : > { %v3714_v31 = vadd.f32 %v1297_v58, %v4398_v32  ;;  %v2811_v11 = vpop.eup %2810  ;;  %v1252_v27 = vadd.f32 1.0, %v2809_v46  ;;  %v1184_v28 = vmul.f32 1.442695, %v1061_v59  ;;  %v1009_v58 = vsub.f32 0.0, %v945_v3 }
 0x15a   : > { %v2813_v35 = vpop.eup %2812  ;;  %2826 = vlog2.f32 %v1250_v17  ;;  %v950_v48 = vand.u32 2147483647, %v3521_v60  ;;  %v1076_v2 = vmul.f32 1.442695, %v1007_v15  ;;  %v952_v26 = vand.u32 2147483647, %v3523_v13 }
 0x15b   : > { %v2815_v8 = vpop.eup %2814  ;;  %2828 = vlog2.f32 %v1252_v27  ;;  %v1080_v32 = vmul.f32 1.442695, %v1009_v58  ;;  %1504 = vperm.xlu0 %2695, %v1485_v4   ;;  %v951_v59 = vand.u32 2147483647, %v3529_v43  ;;  %v4399_v23 = vmax.f32 %v3453_v38, 0.0  ;;  %v4429_v43 = vld [vmem:[#allocation22_spill] sm:$0xff] }
 0x15c   : > { %v2817_v1 = vpop.eup %2816  ;;  %2830 = vpow2.f32 %v1078_v24  ;;  %v1014_v62 = vsub.f32 0.0, %v950_v48  ;;  %v1016_v3 = vsub.f32 0.0, %v952_v26  ;;  %v4400_v15 = vmax.f32 %v3456_v42, 0.0 }
 0x15d   : > { %2832 = vlog2.f32 %v1237_v53  ;;  %v3729_v27 = vadd.f32 %v1309_v25, %v4399_v23  ;;  %v1325_v48 = vmul.f32 0.6931472, %v2805_v41  ;;  %v1243_v4 = vadd.f32 1.0, %v2815_v8  ;;  %v4428_v23 = vld [vmem:[#allocation21_spill] sm:$0xff] }
 0x15e   : > { %v2819_v6 = vpop.eup %2818  ;;  %v3733_v44 = vadd.f32 %v1313_v36, %v4400_v15  ;;  %2834 = vpow2.f32 %v1184_v28  ;;  %v1090_v24 = vmul.f32 1.442695, %v1014_v62  ;;  %v1094_v53 = vmul.f32 1.442695, %v1016_v3 }
 0x15f   : > { %v2821_v58 = vpop.eup %2820  ;;  %2836 = vpow2.f32 %v1076_v2  ;;  %v1245_v26 = vadd.f32 1.0, %v2817_v1  ;;  %v1015_v46 = vsub.f32 0.0, %v951_v59  ;;  %v958_v0 = vand.u32 2147483647, %v3553_v33 }
 0x160   : > { %v2823_v17 = vpop.eup %2822  ;;  %2838 = vpow2.f32 %v1080_v32  ;;  %v1251_v25 = vadd.f32 1.0, %v2819_v6  ;;  %v953_v42 = vand.u32 2147483647, %v3531_v12  ;;  %v1329_v36 = vmul.f32 0.6931472, %v2811_v11 }
 0x161   : > { %v2825_v38 = vpop.eup %2824  ;;  %2840 = vpow2.f32 %v1090_v24  ;;  %v1355_v62 = vmul.f32 0.6931472, %v2821_v58  ;;  %v1022_v41 = vsub.f32 0.0, %v958_v0  ;;  %v4401_v28 = vmax.f32 %v3463_v57, 0.0  ;;  %v4402_v58 = vld [vmem:[#allocation14_spill] sm:$0xff] }
 0x162   : > { %2842 = vpow2.f32 %v1094_v53  ;;  %v1341_v2 = vmul.f32 0.6931472, %v2813_v35  ;;  %v1359_v3 = vmul.f32 0.6931472, %v2825_v38  ;;  %v1198_v6 = vadd.f32 1.0, %v2823_v17 }
 0x163   : > { %v3740_v8 = vadd.f32 %v1325_v48, %v4401_v28  ;;  %2844 = vlog2.f32 %v1243_v4  ;;  %v1092_v59 = vmul.f32 1.442695, %v1015_v46  ;;  %v1017_v11 = vsub.f32 0.0, %v953_v42 }
 0x164   : > { %v2827_v32 = vpop.eup %2826  ;;  %2846 = vlog2.f32 %v1245_v26  ;;  %v960_v53 = vand.u32 2147483647, %v4402_v58  ;;  %v4403_v57 = vmax.f32 %v3483_v30, 0.0  ;;  %v1106_v4 = vmul.f32 1.442695, %v1022_v41 }
 0x165   : > { %v2829_v15 = vpop.eup %2828  ;;  %v1371_v24 = vmul.f32 0.6931472, %v2827_v32  ;;  %2848 = vlog2.f32 %v1251_v25  ;;  %v1451_v28 = vpack.c.bf16 %v3658_v22, %v3588_v18  ;;  %v4405_v17 = vmax.f32 %v3495_v47, 0.0  ;;  %v4411_v18 = vld [vmem:[#allocation15_spill] sm:$0xff] }
 0x166   : > { %v2831_v0 = vpop.eup %2830  ;;  %v3746_v48 = vadd.f32 %v1355_v62, %v4403_v57  ;;  %v1375_v35 = vmul.f32 0.6931472, %v2829_v15  ;;  %v1024_v25 = vsub.f32 0.0, %v960_v53  ;;  %v1453_v42 = vpack.c.bf16 %v3665_v61, %v3605_v7  ;;  %v4412_v61 = vld [vmem:[#allocation11_spill] sm:$0xff] }
 0x167   : > { %v2833_v38 = vpop.eup %2832  ;;  %v3752_v46 = vadd.f32 %v1371_v24, %v4405_v17  ;;  %v1200_v26 = vadd.f32 1.0, %v2831_v0  ;;  %v4407_v30 = vmax.f32 %v3487_v37, 0.0  ;;  %v4409_v41 = vmax.f32 %v3497_v52, 0.0  ;;  %1535 = vmatprep.subr.bf16.mxu0 %v1451_v28  ;;  %v4413_v37 = vld [vmem:[#allocation8_spill] sm:$0xff]  ;;  %v4415_v52 = vld [vmem:[#allocation6_spill] sm:$0xff]  ;;  %v4417_v17 = vld [vmem:[#allocation13_spill] sm:$0xff] }
 0x168   : > { %4404 = vst [vmem:[#allocation14_spill] sm:$0xff] %v3746_v48  ;;  %v2835_v32 = vpop.eup %2834  ;;  %2850 = vlog2.f32 %v1198_v6  ;;  %v959_v47 = vand.u32 2147483647, %v4411_v18  ;;  %v1096_v53 = vmul.f32 1.442695, %v1017_v11  ;;  %1596 = vmatprep.subr.bf16.mxu1 %v1453_v42  ;;  %v4416_v57 = vmax.f32 %v4415_v52, 0.0 }
 0x169   : > { %4406 = vst [vmem:[#allocation35_spill] sm:$0xff] %v3752_v46  ;;  %v3758_v62 = vadd.f32 %v1359_v3, %v4407_v30  ;;  %v3762_v15 = vadd.f32 %v1375_v35, %v4409_v41  ;;  %v2837_v22 = vpop.eup %2836  ;;  %2852 = vpow2.f32 %v1092_v59  ;;  %v1110_v7 = vmul.f32 1.442695, %v1024_v25  ;;  %v4418_v30 = vld [vmem:[#allocation12_spill] sm:$0xff]  ;;  %v4420_v25 = vld [vmem:[#allocation7_spill] sm:$0xff] }
 0x16a   : > { %v4414_v3 = vpack.c.bf16 %v4412_v61, %v4413_v37  ;;  %v2839_v0 = vpop.eup %2838  ;;  %v3772_v35 = vadd.f32 %v1329_v36, %v4416_v57  ;;  %2854 = vpow2.f32 %v1106_v4  ;;  %v1023_v28 = vsub.f32 0.0, %v959_v47  ;;  %v4422_v4 = vld [vmem:[#allocation16_spill] sm:$0xff] }
 0x16b   : > { %4408 = vst [vmem:[#allocation36_spill] sm:$0xff] %v3758_v62  ;;  %4410 = vst [vmem:[#allocation37_spill] sm:$0xff] %v3762_v15  ;;  %v4419_v59 = vpack.c.bf16 %v4417_v17, %v4418_v30  ;;  %v2841_v11 = vpop.eup %2840  ;;  %v4421_v42 = vmax.f32 %v4420_v25, 0.0  ;;  %2856 = vlog2.f32 %v1200_v26  ;;  %v961_v47 = vand.u32 2147483647, %v4422_v4  ;;  %v4423_v30 = vld [vmem:[#allocation17_spill] sm:$0xff] }
 0x16c   : > { %1536 = vmatpush1.bf16.msra.mxu0 %v4414_v3  ;;  %v2843_v37 = vpop.eup %2842  ;;  %v1206_v3 = vadd.f32 1.0, %v2841_v11  ;;  %2858 = vpow2.f32 %v1110_v7  ;;  %v1108_v52 = vmul.f32 1.442695, %v1023_v28  ;;  %v1253_v6 = vadd.f32 1.0, %v2835_v32  ;;  %v4424_v11 = vld [vmem:[#allocation18_spill] sm:$0xff] }
 0x16d   : > { %1597 = vmatpush1.bf16.msra.mxu1 %v4419_v59  ;;  %v3781_v41 = vadd.f32 %v1341_v2, %v4421_v42  ;;  %v2845_v57 = vpop.eup %2844  ;;  %v1208_v17 = vadd.f32 1.0, %v2843_v37  ;;  %2860 = vpow2.f32 %v1096_v53  ;;  %v966_v59 = vand.u32 2147483647, %v4423_v30 }
 0x16e   : > { %v2847_v25 = vpop.eup %2846  ;;  %v1345_v2 = vmul.f32 0.6931472, %v2833_v38  ;;  %v1199_v42 = vadd.f32 1.0, %v2837_v22  ;;  %2862 = vlog2.f32 %v1206_v3  ;;  %v1025_v26 = vsub.f32 0.0, %v961_v47 }
 0x16f   : > { %v2849_v24 = vpop.eup %2848  ;;  %v1201_v61 = vadd.f32 1.0, %v2839_v0  ;;  %2864 = vlog2.f32 %v1208_v17  ;;  %v1030_v36 = vsub.f32 0.0, %v966_v59  ;;  %v968_v7 = vand.u32 2147483647, %v4424_v11  ;;  %v4426_v17 = vld [vmem:[#allocation19_spill] sm:$0xff] }
 0x170   : > { %v886_v28 = vmax.f32 %v3521_v60, 0.0  ;;  %2866 = vpow2.f32 %v1108_v52  ;;  %v1112_v32 = vmul.f32 1.442695, %v1025_v26  ;;  %v4425_v3 = vmax.f32 %v3478_v16, 0.0 }
 0x171   : > { %2868 = vlog2.f32 %v1253_v6  ;;  %v1122_v37 = vmul.f32 1.442695, %v1030_v36  ;;  %v1032_v38 = vsub.f32 0.0, %v968_v7  ;;  %v967_v59 = vand.u32 2147483647, %v4426_v17  ;;  %v4427_v6 = vld [vmem:[#allocation20_spill] sm:$0xff] }
 0x172   : > { %v2851_v22 = vpop.eup %2850  ;;  %v3793_v47 = vadd.f32 %v1345_v2, %v4425_v3  ;;  %2870 = vlog2.f32 %v1199_v42  ;;  %v969_v1 = vand.u32 2147483647, %v4427_v6  ;;  %v1357_v36 = vmul.f32 0.6931472, %v2845_v57 }
 0x173   : > { %v2853_v60 = vpop.eup %2852  ;;  %2872 = vlog2.f32 %v1201_v61  ;;  %v1126_v26 = vmul.f32 1.442695, %v1032_v38  ;;  %v1031_v7 = vsub.f32 0.0, %v967_v59  ;;  %v974_v16 = vand.u32 2147483647, %v4428_v23 }
 0x174   : > { %v2855_v53 = vpop.eup %2854  ;;  %2874 = vpow2.f32 %v1112_v32  ;;  %v1267_v3 = vmul.f32 0.6931472, %v2851_v22  ;;  %v896_v42 = vmax.f32 %v4402_v58, 0.0  ;;  %v1033_v0 = vsub.f32 0.0, %v969_v1  ;;  %v4450_v58 = vld [vmem:[#allocation30_spill] sm:$0xff] }
 0x175   : > { %v2857_v2 = vpop.eup %2856  ;;  %2876 = vpow2.f32 %v1122_v37  ;;  %v1361_v15 = vmul.f32 0.6931472, %v2847_v25  ;;  %v1373_v61 = vmul.f32 0.6931472, %v2849_v24  ;;  %v1124_v52 = vmul.f32 1.442695, %v1031_v7 }
 0x176   : > { %v2859_v62 = vpop.eup %2858  ;;  %2878 = vpow2.f32 %v1126_v26  ;;  %v1207_v48 = vadd.f32 1.0, %v2853_v60  ;;  %v1214_v46 = vadd.f32 1.0, %v2855_v53  ;;  %v1128_v12 = vmul.f32 1.442695, %v1033_v0 }
 0x177   : > { %v2861_v38 = vpop.eup %2860  ;;  %v1038_v57 = vsub.f32 0.0, %v974_v16  ;;  %v1271_v59 = vmul.f32 0.6931472, %v2857_v2  ;;  %v976_v23 = vand.u32 2147483647, %v4429_v43  ;;  %v1459_v22 = vpack.c.bf16 %v3729_v27, %v3671_v34 }
 0x178   : > { %v2863_v32 = vpop.eup %2862  ;;  %v1461_v1 = vpack.c.bf16 %v3733_v44, %v3714_v31  ;;  %v4430_v24 = vmax.f32 %v3510_v21, 0.0  ;;  %v1216_v60 = vadd.f32 1.0, %v2859_v62  ;;  %2880 = vpow2.f32 %v1124_v52  ;;  %v4431_v31 = vld [vmem:[#allocation23_spill] sm:$0xff] }
 0x179   : > { %v2865_v37 = vpop.eup %2864  ;;  %v1283_v26 = vmul.f32 0.6931472, %v2863_v32  ;;  %2882 = vpow2.f32 %v1128_v12  ;;  %v1138_v7 = vmul.f32 1.442695, %v1038_v57  ;;  %v1040_v16 = vsub.f32 0.0, %v976_v23  ;;  %1537 = vmatprep.subr.bf16.mxu0 %v1459_v22 }
 0x17a   : > { %v3808_v25 = vadd.f32 %v1267_v3, %v4430_v24  ;;  %v2867_v53 = vpop.eup %2866  ;;  %v1287_v0 = vmul.f32 0.6931472, %v2865_v37  ;;  %1598 = vmatprep.subr.bf16.mxu1 %v1461_v1  ;;  %2884 = vlog2.f32 %v1207_v48  ;;  %v1209_v44 = vadd.f32 1.0, %v2861_v38  ;;  %v4438_v37 = vld [vmem:[#allocation24_spill] sm:$0xff] }
 0x17b   : > { %v2869_v2 = vpop.eup %2868  ;;  %v3810_v34 = vadd.f32 %v1283_v26, %v886_v28  ;;  %v975_v27 = vand.u32 2147483647, %v4431_v31  ;;  %v4432_v21 = vpack.c.bf16 %v3625_v29, %v3614_v51  ;;  %v4433_v62 = vpack.c.bf16 %v3644_v50, %v3640_v20 }
 0x17c   : > { %v2871_v12 = vpop.eup %2870  ;;  %v4434_v23 = vmax.f32 %v3512_v19, 0.0  ;;  %v4435_v28 = vmax.f32 %v3523_v13, 0.0  ;;  %2886 = vlog2.f32 %v1214_v46  ;;  %v1142_v48 = vmul.f32 1.442695, %v1040_v16 }
 0x17d   : > { %1538 = vmatpush1.bf16.msra.mxu0 %v4432_v21  ;;  %1599 = vmatpush1.bf16.msra.mxu1 %v4433_v62  ;;  %v3827_v38 = vpop.eup %2872  ;;  %2888 = vlog2.f32 %v1216_v60  ;;  %v1215_v51 = vadd.f32 1.0, %v2867_v53  ;;  %v1039_v20 = vsub.f32 0.0, %v975_v27  ;;  %v4436_v57 = vmax.f32 %v3489_v39, 0.0  ;;  %v4439_v60 = vld [vmem:[#allocation25_spill] sm:$0xff]  ;;  %v4441_v27 = vld [vmem:[#allocation26_spill] sm:$0xff] }
 0x17e   : > { %v3821_v52 = vadd.f32 %v1271_v59, %v4434_v23  ;;  %v3825_v3 = vadd.f32 %v1287_v0, %v4435_v28  ;;  %v2875_v50 = vpop.eup %2874  ;;  %v4437_v32 = vmax.f32 %v3493_v45, 0.0  ;;  %2890 = vpow2.f32 %v1138_v7  ;;  %v4442_v28 = vld [vmem:[#allocation27_spill] sm:$0xff] }
 0x17f   : > { %v3833_v19 = vadd.f32 %v1357_v36, %v4436_v57  ;;  %v2877_v59 = vpop.eup %2876  ;;  %v1377_v22 = vmul.f32 0.6931472, %v2869_v2  ;;  %v895_v1 = vmax.f32 %v4411_v18, 0.0  ;;  %2892 = vpow2.f32 %v1142_v48 }
 0x180   : > { %v3837_v13 = vadd.f32 %v1361_v15, %v4437_v32  ;;  %v977_v24 = vand.u32 2147483647, %v4438_v37  ;;  %v2879_v26 = vpop.eup %2878  ;;  %2894 = vlog2.f32 %v1209_v44  ;;  %v1222_v39 = vadd.f32 1.0, %v2877_v59 }
 0x181   : > { %v1140_v36 = vmul.f32 1.442695, %v1039_v20  ;;  %v982_v53 = vand.u32 2147483647, %v4439_v60  ;;  %v4440_v45 = vmax.f32 %v3499_v54, 0.0  ;;  %2896 = vlog2.f32 %v1215_v51 }
 0x182   : > { %v1224_v0 = vadd.f32 1.0, %v2879_v26  ;;  %v1041_v7 = vsub.f32 0.0, %v977_v24  ;;  %v1217_v16 = vadd.f32 1.0, %v2875_v50  ;;  %2898 = vlog2.f32 %v1222_v39  ;;  %v2881_v62 = vpop.eup %2880 }
 0x183   : > { %v3846_v15 = vadd.f32 %v1373_v61, %v4440_v45  ;;  %v1046_v2 = vsub.f32 0.0, %v982_v53  ;;  %v984_v21 = vand.u32 2147483647, %v4441_v27  ;;  %v983_v48 = vand.u32 2147483647, %v4442_v28  ;;  %v2883_v20 = vpop.eup %2882 }
 0x184   : > { %2900 = vlog2.f32 %v1224_v0  ;;  %v1144_v44 = vmul.f32 1.442695, %v1041_v7  ;;  %v4443_v54 = vmax.f32 %v3502_v63, 0.0  ;;  %v1223_v51 = vadd.f32 1.0, %v2881_v62  ;;  %v3855_v50 = vpop.eup %2884 }
 0x185   : > { %2902 = vpow2.f32 %v1140_v36  ;;  %v1048_v57 = vsub.f32 0.0, %v984_v21  ;;  %v1225_v32 = vadd.f32 1.0, %v2883_v20  ;;  %v1154_v59 = vmul.f32 1.442695, %v1046_v2  ;;  %v4444_v36 = vld [vmem:[#allocation28_spill] sm:$0xff] }
 0x186   : > { %v3853_v61 = vadd.f32 %v1377_v22, %v4443_v54  ;;  %2904 = vpow2.f32 %v1144_v44  ;;  %v1047_v24 = vsub.f32 0.0, %v983_v48  ;;  %v2887_v26 = vpop.eup %2886  ;;  %v902_v39 = vmax.f32 %v4423_v30, 0.0 }
 0x187   : > { %2906 = vlog2.f32 %v1217_v16  ;;  %v904_v53 = vmax.f32 %v4424_v11, 0.0  ;;  %v1158_v45 = vmul.f32 1.442695, %v1048_v57  ;;  %v2889_v0 = vpop.eup %2888  ;;  %v903_v63 = vmax.f32 %v4426_v17, 0.0 }
 0x188   : > { %2908 = vlog2.f32 %v1223_v51  ;;  %v905_v22 = vmax.f32 %v4427_v6, 0.0  ;;  %v985_v7 = vand.u32 2147483647, %v4444_v36  ;;  %v2891_v21 = vpop.eup %2890  ;;  %v1269_v62 = vmul.f32 0.6931472, %v2871_v12 }
 0x189   : > { %2910 = vlog2.f32 %v1225_v32  ;;  %v1156_v2 = vmul.f32 1.442695, %v1047_v24  ;;  %v990_v44 = vand.u32 2147483647, %v3628_v55  ;;  %v2893_v16 = vpop.eup %2892  ;;  %v1299_v48 = vmul.f32 0.6931472, %v2887_v26 }
 0x18a   : > { %2912 = vpow2.f32 %v1154_v59  ;;  %v1049_v30 = vsub.f32 0.0, %v985_v7  ;;  %v992_v11 = vand.u32 2147483647, %v3630_v56  ;;  %v2895_v20 = vpop.eup %2894  ;;  %v1303_v54 = vmul.f32 0.6931472, %v2889_v0 }
 0x18b   : > { %2914 = vpow2.f32 %v1158_v45  ;;  %v1054_v51 = vsub.f32 0.0, %v990_v44  ;;  %v1467_v57 = vpack.c.bf16 %v3781_v41, %v3740_v8  ;;  %v2897_v46 = vpop.eup %2896  ;;  %v1230_v29 = vadd.f32 1.0, %v2891_v21  ;;  %v4446_v41 = vld [vmem:[#allocation29_spill] sm:$0xff] }
 0x18c   : > { %v1160_v12 = vmul.f32 1.442695, %v1049_v30  ;;  %v1056_v32 = vsub.f32 0.0, %v992_v11  ;;  %v1469_v24 = vpack.c.bf16 %v3793_v47, %v3772_v35  ;;  %v2899_v23 = vpop.eup %2898  ;;  %v4445_v59 = vmax.f32 %v3515_v5, 0.0 }
 0x18d   : > { %v1273_v7 = vmul.f32 0.6931472, %v3827_v38  ;;  %v1232_v0 = vadd.f32 1.0, %v2893_v16  ;;  %2916 = vpow2.f32 %v1156_v2  ;;  %1539 = vmatprep.subr.bf16.mxu0 %v1467_v57  ;;  %v1315_v44 = vmul.f32 0.6931472, %v2899_v23 }
 0x18e   : > { %v3870_v26 = vadd.f32 %v1269_v62, %v4445_v59  ;;  %v2901_v45 = vpop.eup %2900  ;;  %2918 = vpow2.f32 %v1160_v12  ;;  %v1170_v8 = vmul.f32 1.442695, %v1054_v51  ;;  %1600 = vmatprep.subr.bf16.mxu1 %v1469_v24  ;;  %v991_v21 = vand.u32 2147483647, %v4446_v41 }
 0x18f   : > { %v4447_v35 = vpack.c.bf16 %v3687_v40, %v3679_v49  ;;  %v2903_v47 = vpop.eup %2902  ;;  %v4448_v5 = vmax.f32 %v3553_v33, 0.0  ;;  %v3883_v38 = vadd.f32 %v1303_v54, %v896_v42  ;;  %v1319_v2 = vmul.f32 0.6931472, %v2901_v45 }
 0x190   : > { %v1174_v23 = vmul.f32 1.442695, %v1056_v32  ;;  %v4449_v16 = vpack.c.bf16 %v3697_v9, %v3683_v14  ;;  %v2905_v30 = vpop.eup %2904  ;;  %v3888_v11 = vadd.f32 %v1315_v44, %v902_v39  ;;  %2920 = vlog2.f32 %v1230_v29 }
 0x191   : > { %1540 = vmatpush1.bf16.msra.mxu0 %v4447_v35  ;;  %v3879_v62 = vadd.f32 %v1299_v48, %v4448_v5  ;;  %v1231_v49 = vadd.f32 1.0, %v2903_v47  ;;  %v1055_v40 = vsub.f32 0.0, %v991_v21  ;;  %v2907_v51 = vpop.eup %2906  ;;  %v3890_v33 = vadd.f32 %v1319_v2, %v904_v53 }
 0x192   : > { %1601 = vmatpush1.bf16.msra.mxu1 %v4449_v16  ;;  %2922 = vlog2.f32 %v1232_v0  ;;  %v1233_v48 = vadd.f32 1.0, %v2905_v30  ;;  %v993_v42 = vand.u32 2147483647, %v4450_v58  ;;  %v2909_v54 = vpop.eup %2908  ;;  %v4451_v57 = vmax.f32 %v3517_v10, 0.0  ;;  %v4452_v10 = vld [vmem:[#allocation31_spill] sm:$0xff]  ;;  %v4454_v16 = vld [vmem:[#allocation9_spill] sm:$0xff] }
 0x193   : > { %v1462_v14 = vpack.c.bf16 %v3888_v11, %v3879_v62  ;;  %2924 = vpow2.f32 %v1170_v8  ;;  %v1172_v9 = vmul.f32 1.442695, %v1055_v40  ;;  %v2911_v29 = vpop.eup %2910  ;;  %v1285_v39 = vmul.f32 0.6931472, %v3855_v50  ;;  %v4453_v50 = vld [vmem:[#allocation32_spill] sm:$0xff] }
 0x194   : > { %v3895_v12 = vadd.f32 %v1273_v7, %v4451_v57  ;;  %v1464_v53 = vpack.c.bf16 %v3890_v33, %v3883_v38  ;;  %2926 = vpow2.f32 %v1174_v23  ;;  %v1057_v32 = vsub.f32 0.0, %v993_v42  ;;  %v2913_v24 = vpop.eup %2912  ;;  %v4457_v42 = vld [vmem:[#allocation10_spill] sm:$0xff] }
 0x195   : > { %v1289_v59 = vmul.f32 0.6931472, %v2895_v20  ;;  %v1301_v0 = vmul.f32 0.6931472, %v2897_v46  ;;  %2928 = vlog2.f32 %v1231_v49  ;;  %v998_v7 = vand.u32 2147483647, %v4452_v10  ;;  %v2915_v45 = vpop.eup %2914 }
 0x196   : > { %v1317_v44 = vmul.f32 0.6931472, %v2909_v54  ;;  %2930 = vlog2.f32 %v1233_v48  ;;  %v1238_v21 = vadd.f32 1.0, %v2913_v24  ;;  %v1176_v8 = vmul.f32 1.442695, %v1057_v32  ;;  %v4456_v46 = vld [vmem:[#allocation33_spill] sm:$0xff] }
 0x197   : > { %v1240_v35 = vadd.f32 1.0, %v2915_v45  ;;  %2932 = vpow2.f32 %v1172_v9  ;;  %v1062_v47 = vsub.f32 0.0, %v998_v7  ;;  %v1000_v5 = vand.u32 2147483647, %v4453_v50  ;;  %v2917_v2 = vpop.eup %2916 }
 0x198   : > { %v4455_v23 = vmax.f32 %v4454_v16, 0.0  ;;  %v1321_v40 = vmul.f32 0.6931472, %v2911_v29  ;;  %2934 = vlog2.f32 %v1238_v21  ;;  %v999_v20 = vand.u32 2147483647, %v4456_v46  ;;  %v2919_v49 = vpop.eup %2918 }
 0x199   : > { %v4458_v57 = vmax.f32 %v4457_v42, 0.0  ;;  %2936 = vlog2.f32 %v1240_v35  ;;  %v1239_v48 = vadd.f32 1.0, %v2917_v2  ;;  %v1064_v32 = vsub.f32 0.0, %v1000_v5  ;;  %v4459_v5 = vld [vmem:[#allocation34_spill] sm:$0xff] }
 0x19a   : > { %v1399_v30 = vadd.f32 %v1285_v39, %v4455_v23  ;;  %v3911_v9 = vadd.f32 %v1301_v0, %v895_v1  ;;  %v1241_v24 = vadd.f32 1.0, %v2919_v49  ;;  %2938 = vpow2.f32 %v1176_v8  ;;  %v2921_v45 = vpop.eup %2920  ;;  %v4462_v23 = vld [vmem:[#allocation14_spill] sm:$0xff]  ;;  %v4467_v49 = vld [vmem:[#allocation21_spill] sm:$0xff] }
 0x19b   : > { %v1401_v54 = vadd.f32 %v1289_v59, %v4458_v57  ;;  %v1063_v7 = vsub.f32 0.0, %v999_v20  ;;  %v1305_v39 = vmul.f32 0.6931472, %v2907_v51  ;;  %v1415_v29 = vadd.f32 %v1317_v44, %v903_v63 }
 0x19c   : > { %2940 = vlog2.f32 %v1239_v48  ;;  %v1186_v21 = vmul.f32 1.442695, %v1062_v47  ;;  %v2923_v16 = vpop.eup %2922  ;;  %v1417_v59 = vadd.f32 %v1321_v40, %v905_v22  ;;  %v1190_v35 = vmul.f32 1.442695, %v1064_v32 }
 0x19d   : > { %2942 = vlog2.f32 %v1241_v24  ;;  %v1001_v18 = vand.u32 2147483647, %v4459_v5  ;;  %v2925_v1 = vpop.eup %2924  ;;  %v1188_v0 = vmul.f32 1.442695, %v1063_v7  ;;  %v1475_v8 = vpack.c.bf16 %v3846_v15, %v3833_v19  ;;  %v3929_v19 = vld [vmem:[%s4315_s2] sm:$0xff]  }
 0x19e   : > { %v1477_v51 = vpack.c.bf16 %v3853_v61, %v3837_v13  ;;  %v1455_v17 = vpack.c.bf16 %v1399_v30, %v3870_v26  ;;  %v2927_v63 = vpop.eup %2926  ;;  %v1457_v47 = vpack.c.bf16 %v1401_v54, %v3895_v12  ;;  %v4460_v22 = vmax.f32 %v4422_v4, 0.0  ;;  %v4461_v26 = vld [vmem:[#allocation35_spill] sm:$0xff]  ;;  %v4464_v30 = vld [vmem:[#allocation37_spill] sm:$0xff]  ;;  %v4465_v4 = vld [vmem:[#allocation36_spill] sm:$0xff] }
 0x19f   : > { %v1065_v44 = vsub.f32 0.0, %v1001_v18  ;;  %v2929_v6 = vpop.eup %2928  ;;  %2944 = vpow2.f32 %v1186_v21  ;;  %1541 = vmatprep.subr.bf16.mxu0 %v1475_v8  ;;  %v1463_v13 = vpack.c.bf16 %v1415_v29, %v3911_v9  ;;  %v4463_v12 = vpack.c.bf16 %v4461_v26, %v4462_v23 }
 0x1a0   : > { %v1409_v2 = vadd.f32 %v1305_v39, %v4460_v22  ;;  %1602 = vmatprep.subr.bf16.mxu1 %v1477_v51  ;;  %v2931_v15 = vpop.eup %2930  ;;  %2946 = vpow2.f32 %v1190_v35  ;;  %v4466_v40 = vpack.c.bf16 %v4464_v30, %v4465_v4  ;;  %v910_v42 = vmax.f32 %v4467_v49, 0.0 }
 0x1a1   : > { %v1192_v61 = vmul.f32 1.442695, %v1065_v44  ;;  %1542 = vmatpush1.bf16.msra.mxu0 %v4463_v12  ;;  %v2933_v20 = vpop.eup %2932  ;;  %v1331_v57 = vmul.f32 0.6931472, %v2921_v45  ;;  %2948 = vpow2.f32 %v1188_v0  ;;  %v912_v32 = vmax.f32 %v4429_v43, 0.0 }
 0x1a2   : > { %1603 = vmatpush1.bf16.msra.mxu1 %v4466_v40  ;;  %1657 = vmatprep.subr.bf16.mxu0 %v1455_v17  ;;  %v1465_v54 = vpack.c.bf16 %v1417_v59, %v1409_v2  ;;  %v2935_v48 = vpop.eup %2934  ;;  %v1335_v9 = vmul.f32 0.6931472, %v2923_v16  ;;  %v911_v24 = vmax.f32 %v4431_v31, 0.0  ;;  %v913_v7 = vmax.f32 %v4438_v37, 0.0 }
 0x1a3   : > { %1718 = vmatprep.subr.bf16.mxu1 %v1457_v47  ;;  %v2937_v39 = vpop.eup %2936  ;;  %v918_v29 = vmax.f32 %v4439_v60, 0.0  ;;  %v1347_v21 = vmul.f32 0.6931472, %v2935_v48  ;;  %v920_v35 = vmax.f32 %v4441_v27, 0.0  ;;  %2950 = vpow2.f32 %v1192_v61 }
 0x1a4   : > { %2591 = vmatmul.mubr.msk.bf16.vlgmr.msra.gmra.mrb[32].mxu0 %vm1525_vm2, %v3929_v19  ;;  %v2939_v45 = vpop.eup %2938  ;;  %v1333_v43 = vmul.f32 0.6931472, %v2929_v6  ;;  %v1351_v16 = vmul.f32 0.6931472, %v2937_v39  ;;  %v919_v31 = vmax.f32 %v4442_v28, 0.0  ;;  %v1246_v59 = vadd.f32 1.0, %v2925_v1 }
 0x1a5   : > { %2594 = vmatmul.mubr.msk.bf16.vlgmr.msra.gmra.mrb[32].mxu1 %vm1525_vm2, %v3929_v19  ;;  %v4468_v37 = vpack.c.bf16 %v3810_v34, %v3808_v25  ;;  %v4469_v60 = vpack.c.bf16 %v3825_v3, %v3821_v52  ;;  %v1422_v18 = vadd.f32 %v1331_v57, %v910_v42  ;;  %v1337_v0 = vmul.f32 0.6931472, %v2931_v15 }
 0x1a6   : > { %v2941_v27 = vpop.eup %2940  ;;  %v1430_v8 = vadd.f32 %v1347_v21, %v918_v29  ;;  %v1248_v51 = vadd.f32 1.0, %v2927_v63  ;;  %v1424_v44 = vadd.f32 %v1335_v9, %v912_v32  ;;  %v1432_v47 = vadd.f32 %v1351_v16, %v920_v35  ;;  %v3961_v63 = vld [vmem:[%s4315_s2 + $0x8] sm:$0xff]  }
 0x1a7   : > { %1658 = vmatpush1.bf16.msra.mxu0 %v4468_v37  ;;  %1719 = vmatpush1.bf16.msra.mxu1 %v4469_v60  ;;  %v2943_v17 = vpop.eup %2942  ;;  %v1349_v28 = vmul.f32 0.6931472, %v2941_v27  ;;  %v1247_v1 = vadd.f32 1.0, %v2933_v20  ;;  %v4470_v6 = vmov 0   ;;  %v921_v34 = vmax.f32 %v4444_v36, 0.0 }
 0x1a8   : > { %1659 = vmatprep.subr.bf16.mxu0 %v1463_v13  ;;  %1720 = vmatprep.subr.bf16.mxu1 %v1465_v54  ;;  %v1470_v25 = vpack.c.bf16 %v1430_v8, %v1422_v18  ;;  %v1353_v52 = vmul.f32 0.6931472, %v2943_v17  ;;  %v1249_v3 = vadd.f32 1.0, %v2939_v45  ;;  %v1423_v22 = vadd.f32 %v1333_v43, %v911_v24 }
 0x1a9   : > { %1577 = vmatprep.mubr.bf16.mxu0 %v4470_v6  ;;  %1638 = vmatprep.mubr.bf16.mxu1 %v4470_v6  ;;  %v1472_v2 = vpack.c.bf16 %v1432_v47, %v1424_v44  ;;  %v1431_v13 = vadd.f32 %v1349_v28, %v919_v31  ;;  %2952 = vlog2.f32 %v1246_v59  ;;  %v2945_v36 = vpop.eup %2944  ;;  %v1425_v15 = vadd.f32 %v1337_v0, %v913_v7 }
 0x1aa   : > { %v1433_v61 = vadd.f32 %v1353_v52, %v921_v34  ;;  %2954 = vlog2.f32 %v1248_v51  ;;  %v2947_v26 = vpop.eup %2946  ;;  %v1254_v23 = vadd.f32 1.0, %v2945_v36  ;;  %v926_v54 = vmax.f32 %v3628_v55, 0.0 }
 0x1ab   : > { %1660 = vmatpush1.bf16.msra.mxu0 %v1462_v14  ;;  %1721 = vmatpush1.bf16.msra.mxu1 %v1464_v53  ;;  %2956 = vlog2.f32 %v1247_v1  ;;  %v1471_v12 = vpack.c.bf16 %v1431_v13, %v1423_v22  ;;  %v2949_v30 = vpop.eup %2948  ;;  %v1256_v4 = vadd.f32 1.0, %v2947_v26  ;;  %v2711_v14 = vld [vmem:[%s4315_s2 + $0x10] ss:$0 sps:$4 sm:$0x11]   ;;  %v928_v9 = vmax.f32 %v3630_v56, 0.0 }
 0x1ac   : > { %2958 = vlog2.f32 %v1249_v3  ;;  %2592 = vmatmul.mubr.msk.bf16.gmra.mrb[36].mxu0 %vm1525_vm2, %v3961_v63  ;;  %v1473_v62 = vpack.c.bf16 %v1433_v61, %v1425_v15  ;;  %v1255_v38 = vadd.f32 1.0, %v2949_v30  ;;  %v934_v7 = vmax.f32 %v4452_v10, 0.0 }
 0x1ad   : > { %2595 = vmatmul.mubr.msk.bf16.gmra.mrb[36].mxu1 %vm1525_vm2, %v3961_v63  ;;  %2960 = vlog2.f32 %v1254_v23  ;;  %1661 = vmatprep.subr.bf16.mxu0 %v1471_v12  ;;  %v2951_v11 = vpop.eup %2950  ;;  %v927_v21 = vmax.f32 %v4446_v41, 0.0  ;;  %v936_v35 = vmax.f32 %v4453_v50, 0.0  ;;  %v935_v43 = vmax.f32 %v4456_v46, 0.0 }
 0x1ae   : > { %1587 = vmatprep.mubr.bf16.mxu0 %v4470_v6  ;;  %2962 = vlog2.f32 %v1256_v4  ;;  %1722 = vmatprep.subr.bf16.mxu1 %v1473_v62  ;;  %v1257_v33 = vadd.f32 1.0, %v2951_v11  ;;  %v929_v56 = vmax.f32 %v4450_v58, 0.0  ;;  %v937_v10 = vmax.f32 %v4459_v5, 0.0 }
 0x1af   : > { %1662 = vmatpush1.bf16.msra.mxu0 %v1470_v25  ;;  %2964 = vlog2.f32 %v1255_v38  ;;  %1723 = vmatpush1.bf16.msra.mxu1 %v1472_v2  ;;  %v3205_v2 = vmov 1966171168  }
 0x1b0   : > { %1648 = vmatprep.mubr.bf16.mxu1 %v4470_v6  ;;  %2966 = vlog2.f32 %v1257_v33  ;;  %v4014_v13 = vunpack.c.l.s4 %v3205_v2 }
 0x1b3   : > { %v2953_v53 = vpop.eup %2952 }
 0x1b4   : > { %v2955_v40 = vpop.eup %2954  ;;  %2593 = vmatmul.mubr.msk.bf16.gmra.mrb[40].mxu0 %vm1525_vm2, %v2711_v14  ;;  %v1363_v42 = vmul.f32 0.6931472, %v2953_v53 }
 0x1b5   : > { %2596 = vmatmul.mubr.msk.bf16.gmra.mrb[40].mxu1 %vm1525_vm2, %v2711_v14  ;;  %v2957_v20 = vpop.eup %2956  ;;  %1689 = vmatprep.mubr.bf16.mxu0 %v4470_v6  ;;  %v1367_v48 = vmul.f32 0.6931472, %v2955_v40 }
 0x1b6   : > { %1750 = vmatprep.mubr.bf16.mxu1 %v4470_v6  ;;  %v2959_v49 = vpop.eup %2958  ;;  %v1365_v24 = vmul.f32 0.6931472, %v2957_v20  ;;  %v1438_v16 = vadd.f32 %v1363_v42, %v926_v54 }
 0x1b7   : > { %v2961_v57 = vpop.eup %2960  ;;  %v1369_v31 = vmul.f32 0.6931472, %v2959_v49  ;;  %v1440_v60 = vadd.f32 %v1367_v48, %v928_v9 }
 0x1b8   : > { %v2963_v32 = vpop.eup %2962  ;;  %v1379_v39 = vmul.f32 0.6931472, %v2961_v57  ;;  %v1439_v18 = vadd.f32 %v1365_v24, %v927_v21 }
 0x1b9   : > { %v2965_v29 = vpop.eup %2964  ;;  %v1383_v45 = vmul.f32 0.6931472, %v2963_v32  ;;  %v1441_v50 = vadd.f32 %v1369_v31, %v929_v56 }
 0x1ba   : > { %v1446_v59 = vadd.f32 %v1379_v39, %v934_v7  ;;  %v1381_v55 = vmul.f32 0.6931472, %v2965_v29  ;;  %v2967_v37 = vpop.eup %2966  ;;  %v2049_v7 = vunpack.c.0.s8 %v4014_v13  ;;  %v2050_v39 = vlaneseq }
 0x1bb   : > { %v1448_v27 = vadd.f32 %v1383_v45, %v936_v35  ;;  %v1385_v41 = vmul.f32 0.6931472, %v2967_v37 }
 0x1bc   : > { %v1478_v0 = vpack.c.bf16 %v1446_v59, %v1438_v16  ;;  %v1447_v8 = vadd.f32 %v1381_v55, %v935_v43 }
 0x1bd   : > { %v1480_v51 = vpack.c.bf16 %v1448_v27, %v1440_v60  ;;  %v1449_v17 = vadd.f32 %v1385_v41, %v937_v10  ;;  %v2051_v41 = vshrl.u32 %v2050_v39, 7 }
 0x1be   : > { %v1479_v44 = vpack.c.bf16 %v1447_v8, %v1439_v18 }
 0x1bf   : > { %v1481_v46 = vpack.c.bf16 %v1449_v17, %v1441_v50 }
 0x1c0   : > { %1663 = vmatprep.subr.bf16.mxu0 %v1479_v44 }
 0x1c1   : > { %1664 = vmatpush1.bf16.msra.mxu0 %v1478_v0  ;;  %1724 = vmatprep.subr.bf16.mxu1 %v1481_v46 }
 0x1c2   : > { %1725 = vmatpush1.bf16.msra.mxu1 %v1480_v51 }
 0x1c4   : > { %2597 = vmatmul.mubr.msk.bf16.vlgmr.msra.gmra.mrb[44].mxu0 %vm1525_vm2, %v3929_v19 }
 0x1c5   : > { %1699 = vmatprep.mubr.bf16.mxu0 %v4470_v6  ;;  %2600 = vmatmul.mubr.msk.bf16.vlgmr.msra.gmra.mrb[44].mxu1 %vm1525_vm2, %v3929_v19 }
 0x1c6   : > { %1760 = vmatprep.mubr.bf16.mxu1 %v4470_v6 }
 0x1cc   : > { %2598 = vmatmul.mubr.msk.bf16.gmra.mrb[48].mxu0 %vm1525_vm2, %v3961_v63 }
 0x1cd   : > { %1709 = vmatprep.mubr.bf16.mxu0 %v4470_v6  ;;  %2601 = vmatmul.mubr.msk.bf16.gmra.mrb[48].mxu1 %vm1525_vm2, %v3961_v63 }
 0x1ce   : > { %1770 = vmatprep.mubr.bf16.mxu1 %v4470_v6 }
 0x1d2   : > { %v4004_v58 = vpop.permute.xlu0 %1509 }
 0x1d3   : > { %v4008_v19 = vpop.permute.xlu1 %1494 }
 0x1d4   : > { %2599 = vmatmul.mubr.msk.bf16.gmra.mrb[52].mxu0 %vm1525_vm2, %v2711_v14 }
 0x1d5   : > { %2602 = vmatmul.mubr.msk.bf16.gmra.mrb[52].mxu1 %vm1525_vm2, %v2711_v14 }
 0x1d6   : > { %v4006_v5 = vpop.permute.xlu0 %1489 }
 0x1d7   : > { %v4020_v49 = vpop.permute.xlu1 %1499 }
 0x1da   : > { %v4022_v48 = vpop.permute.xlu0 %1504 }
 0x277   : > { %v1569_v47 = vpop.f32.mrb[32].mxu0 }
 0x278   : > { %v1630_v28 = vpop.f32.mrb[32].mxu1  ;;  %v1571_v1 = vpop.f32.mrb[33].mxu0  ;;  %v1570_v34 = vadd.f32 %v1569_v47, %v4006_v5 }
 0x279   : > { %v1632_v25 = vpop.f32.mrb[33].mxu1  ;;  %v1631_v52 = vadd.f32 %v1630_v28, %v4006_v5  ;;  %v1573_v3 = vpop.f32.mrb[34].mxu0  ;;  %v1572_v63 = vadd.f32 %v1571_v1, %v4006_v5 }
 0x27a   : > { %v1634_v6 = vpop.f32.mrb[34].mxu1  ;;  %v1633_v22 = vadd.f32 %v1632_v25, %v4006_v5  ;;  %v1574_v36 = vadd.f32 %v1573_v3, %v4008_v19  ;;  %v1779_v61 = vsub.f32 0.0, %v1570_v34  ;;  %v1575_v23 = vpop.f32.mrb[35].mxu0  ;;  %v4031_v3 = vsub.s32 %v2049_v7, %v2051_v41 }
 0x27b   : > { %v1635_v15 = vadd.f32 %v1634_v6, %v4008_v19  ;;  %v1781_v26 = vsub.f32 0.0, %v1631_v52  ;;  %v1636_v12 = vpop.f32.mrb[35].mxu1  ;;  %v1780_v30 = vsub.f32 0.0, %v1572_v63  ;;  %v1576_v62 = vadd.f32 %v1575_v23, %v4008_v19 }
 0x27c   : > { %v1782_v4 = vsub.f32 0.0, %v1633_v22  ;;  %v1637_v38 = vadd.f32 %v1636_v12, %v4008_v19  ;;  %v1787_v11 = vsub.f32 0.0, %v1574_v36  ;;  %v1811_v14 = vmul.f32 1.442695, %v1779_v61 }
 0x27d   : > { %v1789_v33 = vsub.f32 0.0, %v1635_v15  ;;  %v1813_v53 = vmul.f32 1.442695, %v1780_v30  ;;  %v1788_v40 = vsub.f32 0.0, %v1576_v62  ;;  %v1815_v54 = vmul.f32 1.442695, %v1781_v26 }
 0x27e   : > { %v1790_v20 = vsub.f32 0.0, %v1637_v38  ;;  %v1827_v42 = vmul.f32 1.442695, %v1787_v11  ;;  %2968 = vpow2.f32 %v1811_v14  ;;  %v1817_v32 = vmul.f32 1.442695, %v1782_v4 }
 0x27f   : > { %v1831_v57 = vmul.f32 1.442695, %v1789_v33  ;;  %2970 = vpow2.f32 %v1813_v53  ;;  %v1579_v9 = vpop.f32.mrb[36].mxu0  ;;  %v1829_v29 = vmul.f32 1.442695, %v1788_v40 }
 0x280   : > { %v1640_v24 = vpop.f32.mrb[36].mxu1  ;;  %2972 = vpow2.f32 %v1827_v42  ;;  %v1581_v21 = vpop.f32.mrb[37].mxu0  ;;  %v1580_v45 = vadd.f32 %v1579_v9, %v4020_v49  ;;  %v1833_v16 = vmul.f32 1.442695, %v1790_v20 }
 0x281   : > { %v1642_v35 = vpop.f32.mrb[37].mxu1  ;;  %v1641_v43 = vadd.f32 %v1640_v24, %v4020_v49  ;;  %2974 = vpow2.f32 %v1831_v57  ;;  %v1583_v31 = vpop.f32.mrb[38].mxu0  ;;  %v1582_v55 = vadd.f32 %v1581_v21, %v4020_v49 }
 0x282   : > { %v1644_v59 = vpop.f32.mrb[38].mxu1  ;;  %v1643_v37 = vadd.f32 %v1642_v35, %v4020_v49  ;;  %2976 = vpow2.f32 %v1815_v54  ;;  %v1795_v60 = vsub.f32 0.0, %v1580_v45  ;;  %v1584_v27 = vadd.f32 %v1583_v31, %v4022_v48  ;;  %v1585_v10 = vpop.f32.mrb[39].mxu0 }
 0x283   : > { %v1797_v56 = vsub.f32 0.0, %v1641_v43  ;;  %v1646_v18 = vpop.f32.mrb[39].mxu1  ;;  %2978 = vpow2.f32 %v1817_v32  ;;  %v1796_v0 = vsub.f32 0.0, %v1582_v55  ;;  %v1645_v23 = vadd.f32 %v1644_v59, %v4022_v48 }
 0x284   : > { %v1798_v8 = vsub.f32 0.0, %v1643_v37  ;;  %2980 = vpow2.f32 %v1829_v29  ;;  %v1843_v51 = vmul.f32 1.442695, %v1795_v60  ;;  %v1803_v17 = vsub.f32 0.0, %v1584_v27 }
 0x285   : > { %v1847_v50 = vmul.f32 1.442695, %v1797_v56  ;;  %2982 = vpow2.f32 %v1833_v16  ;;  %v1845_v44 = vmul.f32 1.442695, %v1796_v0  ;;  %v1586_v53 = vadd.f32 %v1585_v10, %v4022_v48 }
 0x286   : > { %v1849_v46 = vmul.f32 1.442695, %v1798_v8  ;;  %2984 = vpow2.f32 %v1843_v51  ;;  %v1859_v47 = vmul.f32 1.442695, %v1803_v17  ;;  %v1647_v9 = vadd.f32 %v1646_v18, %v4022_v48 }
 0x287   : > { %2986 = vpow2.f32 %v1845_v44  ;;  %v1589_v28 = vpop.f32.mrb[40].mxu0  ;;  %v1805_v39 = vsub.f32 0.0, %v1645_v23  ;;  %v1804_v16 = vsub.f32 0.0, %v1586_v53 }
 0x288   : > { %v1650_v1 = vpop.f32.mrb[40].mxu1  ;;  %v2969_v25 = vpop.eup %2968  ;;  %2988 = vpow2.f32 %v1847_v50  ;;  %v1590_v34 = vadd.f32 %v1589_v28, %v4004_v58  ;;  %v1806_v37 = vsub.f32 0.0, %v1647_v9 }
 0x289   : > { %v1591_v52 = vpop.f32.mrb[41].mxu0  ;;  %v1652_v6 = vpop.f32.mrb[41].mxu1  ;;  %v1875_v22 = vadd.f32 1.0, %v2969_v25  ;;  %2990 = vpow2.f32 %v1849_v46  ;;  %v1651_v2 = vadd.f32 %v1650_v1, %v4004_v58  ;;  %v1863_v27 = vmul.f32 1.442695, %v1805_v39 }
 0x28a   : > { %v2971_v63 = vpop.eup %2970  ;;  %v1592_v13 = vadd.f32 %v1591_v52, %v4004_v58  ;;  %v1593_v36 = vpop.f32.mrb[42].mxu0  ;;  %2992 = vpow2.f32 %v1859_v47  ;;  %v1653_v38 = vadd.f32 %v1652_v6, %v4004_v58  ;;  %v1861_v41 = vmul.f32 1.442695, %v1804_v16 }
 0x28b   : > { %v1654_v15 = vpop.f32.mrb[42].mxu1  ;;  %v2973_v61 = vpop.eup %2972  ;;  %v1876_v26 = vadd.f32 1.0, %v2971_v63  ;;  %2994 = vrcp.f32 %v1875_v22  ;;  %v1865_v17 = vmul.f32 1.442695, %v1806_v37 }
 0x28c   : > { %v1594_v12 = vpop.f32.mrb[43].mxu0  ;;  %v2975_v30 = vpop.eup %2974  ;;  %v1883_v4 = vadd.f32 1.0, %v2973_v61  ;;  %v2043_v62 = vcombine.low %v1590_v34, %v1592_v13  ;;  %v2044_v57 = vcombine.low %v1651_v2, %v1653_v38 }
 0x28d   : > { %v1655_v11 = vpop.f32.mrb[43].mxu1  ;;  %v2977_v33 = vpop.eup %2976  ;;  %v1885_v14 = vadd.f32 1.0, %v2975_v30  ;;  %2996 = vrcp.f32 %v1876_v26 }
 0x28e   : > { %v2979_v40 = vpop.eup %2978  ;;  %2998 = vrcp.f32 %v1883_v4  ;;  %v1877_v20 = vadd.f32 1.0, %v2977_v33  ;;  %v4039_v42 = vrot.slane %v2043_v62, %v4031_v3  ;;  %v4043_v29 = vrot.slane %v2044_v57, %v4031_v3 }
 0x28f   : > { %v2981_v54 = vpop.eup %2980  ;;  %3000 = vrcp.f32 %v1885_v14  ;;  %v1878_v32 = vadd.f32 1.0, %v2979_v40 }
 0x290   : > { %v2983_v24 = vpop.eup %2982  ;;  %3002 = vrcp.f32 %v1877_v20  ;;  %v1884_v7 = vadd.f32 1.0, %v2981_v54  ;;  %v2075_v31 = vcombine.low %v4039_v42, %v4043_v29 }
 0x291   : > { %v2985_v21 = vpop.eup %2984  ;;  %3004 = vrcp.f32 %v1878_v32  ;;  %v1886_v35 = vadd.f32 1.0, %v2983_v24 }
 0x292   : > { %v2987_v45 = vpop.eup %2986  ;;  %3006 = vrcp.f32 %v1884_v7  ;;  %v1891_v43 = vadd.f32 1.0, %v2985_v21 }
 0x293   : > { %v2989_v59 = vpop.eup %2988  ;;  %3008 = vrcp.f32 %v1886_v35  ;;  %v1892_v55 = vadd.f32 1.0, %v2987_v45 }
 0x294   : > { %v2991_v60 = vpop.eup %2990  ;;  %v1893_v56 = vadd.f32 1.0, %v2989_v59  ;;  %3010 = vrcp.f32 %v1891_v43 }
 0x295   : > { %v2993_v10 = vpop.eup %2992  ;;  %v1894_v18 = vadd.f32 1.0, %v2991_v60  ;;  %3012 = vrcp.f32 %v1892_v55 }
 0x296   : > { %v2995_v0 = vpop.eup %2994  ;;  %3014 = vrcp.f32 %v1893_v56  ;;  %v1899_v8 = vadd.f32 1.0, %v2993_v10 }
 0x297   : > { %v2997_v51 = vpop.eup %2996  ;;  %v1939_v50 = vmul.f32 1.002, %v2995_v0  ;;  %3016 = vrcp.f32 %v1894_v18  ;;  %v1691_v47 = vpop.f32.mrb[44].mxu0 }
 0x298   : > { %v2999_v44 = vpop.eup %2998  ;;  %v1940_v46 = vmul.f32 1.002, %v2997_v51  ;;  %3018 = vpow2.f32 %v1863_v27  ;;  %v1692_v34 = vadd.f32 %v1691_v47, %v4006_v5  ;;  %v1693_v52 = vpop.f32.mrb[45].mxu0 }
 0x299   : > { %v3001_v28 = vpop.eup %3000  ;;  %v1947_v1 = vmul.f32 1.002, %v2999_v44  ;;  %v4047_v25 = vadd.f32 -0.001, %v1939_v50  ;;  %3020 = vrcp.f32 %v1899_v8  ;;  %v1752_v2 = vpop.f32.mrb[44].mxu1  ;;  %v1694_v13 = vadd.f32 %v1693_v52, %v4006_v5 }
 0x29a   : > { %v3003_v6 = vpop.eup %3002  ;;  %v1949_v63 = vmul.f32 1.002, %v3001_v28  ;;  %v4050_v22 = vadd.f32 -0.001, %v1940_v46  ;;  %3022 = vpow2.f32 %v1861_v41  ;;  %v1695_v36 = vpop.f32.mrb[46].mxu0  ;;  %v1783_v23 = vsub.f32 0.0, %v1692_v34 }
 0x29b   : > { %v3005_v15 = vpop.eup %3004  ;;  %v2611_v61 = vadd.f32 -0.001, %v1947_v1  ;;  %v1941_v26 = vmul.f32 1.002, %v3003_v6  ;;  %3024 = vpow2.f32 %v1865_v17  ;;  %v1754_v12 = vpop.f32.mrb[45].mxu1  ;;  %v1753_v38 = vadd.f32 %v1752_v2, %v4006_v5 }
 0x29c   : > { %v3007_v30 = vpop.eup %3006  ;;  %v2613_v4 = vadd.f32 -0.001, %v1949_v63  ;;  %v1942_v62 = vmul.f32 1.002, %v3005_v15  ;;  %v1784_v11 = vsub.f32 0.0, %v1694_v13  ;;  %v1756_v33 = vpop.f32.mrb[46].mxu1  ;;  %v1755_v24 = vadd.f32 %v1754_v12, %v4006_v5 }
 0x29d   : > { %v3009_v14 = vpop.eup %3008  ;;  %v2605_v53 = vadd.f32 -0.001, %v1941_v26  ;;  %v1948_v40 = vmul.f32 1.002, %v3007_v30  ;;  %v1819_v20 = vmul.f32 1.442695, %v1783_v23  ;;  %v1696_v17 = vadd.f32 %v1695_v36, %v4008_v19 }
 0x29e   : > { %v3011_v57 = vpop.eup %3010  ;;  %v4054_v54 = vadd.f32 -0.001, %v1942_v62  ;;  %v1950_v32 = vmul.f32 1.002, %v3009_v14  ;;  %v1785_v9 = vsub.f32 0.0, %v1753_v38  ;;  %v1697_v7 = vpop.f32.mrb[47].mxu0  ;;  %v1757_v38 = vadd.f32 %v1756_v33, %v4008_v19 }
 0x29f   : > { %v3013_v39 = vpop.eup %3012  ;;  %v2612_v21 = vadd.f32 -0.001, %v1948_v40  ;;  %v1955_v35 = vmul.f32 1.002, %v3011_v57  ;;  %3026 = vpow2.f32 %v1819_v20  ;;  %v4058_v45 = vadd.f32 %v2605_v53, %v4050_v22  ;;  %v1758_v43 = vpop.f32.mrb[47].mxu1 }
 0x2a0   : > { %v3015_v16 = vpop.eup %3014  ;;  %v4060_v59 = vadd.f32 -0.001, %v1950_v32  ;;  %v1956_v55 = vmul.f32 1.002, %v3013_v39  ;;  %v4063_v37 = vadd.f32 %v4054_v54, %v2605_v53  ;;  %v1823_v60 = vmul.f32 1.442695, %v1785_v9 }
 0x2a1   : > { %v3017_v56 = vpop.eup %3016  ;;  %v4065_v27 = vadd.f32 %v2612_v21, %v2611_v61  ;;  %v4067_v5 = vadd.f32 %v2613_v4, %v2612_v21  ;;  %v1957_v10 = vmul.f32 1.002, %v3015_v16  ;;  %v4069_v18 = vadd.f32 -0.001, %v1955_v35  ;;  %v1701_v0 = vpop.f32.mrb[48].mxu0 }
 0x2a2   : > { %v3019_v8 = vpop.eup %3018  ;;  %v4072_v41 = vadd.f32 %v4060_v59, %v2613_v4  ;;  %v1958_v51 = vmul.f32 1.002, %v3017_v56  ;;  %v4074_v50 = vadd.f32 -0.001, %v1956_v55  ;;  %v1762_v44 = vpop.f32.mrb[48].mxu1  ;;  %v1786_v15 = vsub.f32 0.0, %v1755_v24 }
 0x2a3   : > { %v3021_v46 = vpop.eup %3020  ;;  %v2621_v47 = vadd.f32 -0.001, %v1957_v10  ;;  %v1901_v28 = vadd.f32 1.0, %v3019_v8  ;;  %v1703_v1 = vpop.f32.mrb[49].mxu0  ;;  %v1821_v13 = vmul.f32 1.442695, %v1784_v11  ;;  %v1698_v14 = vadd.f32 %v1697_v7, %v4008_v19 }
 0x2a4   : > { %v3023_v34 = vpop.eup %3022  ;;  %v4077_v52 = vadd.f32 -0.001, %v1958_v51  ;;  %v1963_v6 = vmul.f32 1.002, %v3021_v46  ;;  %v1764_v61 = vpop.f32.mrb[49].mxu1  ;;  %v1791_v36 = vsub.f32 0.0, %v1696_v17  ;;  %v1759_v11 = vadd.f32 %v1758_v43, %v4008_v19 }
 0x2a5   : > { %v3025_v63 = vpop.eup %3024  ;;  %3028 = vrcp.f32 %v1901_v28  ;;  %v1900_v2 = vadd.f32 1.0, %v3023_v34  ;;  %v1705_v26 = vpop.f32.mrb[50].mxu0  ;;  %v1825_v62 = vmul.f32 1.442695, %v1786_v15  ;;  %v1702_v20 = vadd.f32 %v1701_v0, %v4020_v49 }
 0x2a6   : > { %v4079_v23 = vadd.f32 -0.001, %v1963_v6  ;;  %v1902_v12 = vadd.f32 1.0, %v3025_v63  ;;  %3030 = vpow2.f32 %v1823_v60  ;;  %v1766_v30 = vpop.f32.mrb[50].mxu1  ;;  %v1707_v4 = vpop.f32.mrb[51].mxu0  ;;  %v1793_v9 = vsub.f32 0.0, %v1757_v38 }
 0x2a7   : > { %3032 = vrcp.f32 %v1900_v2  ;;  %v1768_v53 = vpop.f32.mrb[51].mxu1  ;;  %v1835_v40 = vmul.f32 1.442695, %v1791_v36  ;;  %v4085_v57 = vpop.f32.mrb[52].mxu0  ;;  %v1792_v24 = vsub.f32 0.0, %v1698_v14  ;;  %v4088_v39 = vadd.f32 %v2621_v47, %v4074_v50 }
 0x2a8   : > { %3034 = vrcp.f32 %v1902_v12  ;;  %v4090_v21 = vpop.f32.mrb[53].mxu0  ;;  %v1794_v7 = vsub.f32 0.0, %v1759_v11  ;;  %v1799_v35 = vsub.f32 0.0, %v1702_v20  ;;  %v4092_v16 = vpop.f32.mrb[52].mxu1  ;;  %v1839_v43 = vmul.f32 1.442695, %v1793_v9 }
 0x2a9   : > { %v3027_v32 = vpop.eup %3026  ;;  %3036 = vpow2.f32 %v1821_v13  ;;  %v1715_v19 = vpop.f32.mrb[54].mxu0  ;;  %v1837_v55 = vmul.f32 1.442695, %v1792_v24  ;;  %v4097_v0 = vadd.f32 %v4077_v52, %v2621_v47  ;;  %v1763_v17 = vadd.f32 %v1762_v44, %v4020_v49 }
 0x2aa   : > { %v1879_v33 = vadd.f32 1.0, %v3027_v32  ;;  %3038 = vpow2.f32 %v1825_v62  ;;  %v4094_v60 = vpop.f32.mrb[53].mxu1  ;;  %v1841_v56 = vmul.f32 1.442695, %v1794_v7  ;;  %v1851_v10 = vmul.f32 1.442695, %v1799_v35 }
 0x2ab   : > { %3040 = vpow2.f32 %v1835_v40  ;;  %v1776_v8 = vpop.f32.mrb[54].mxu1  ;;  %v1716_v51 = vpop.f32.mrb[55].mxu0  ;;  %v1704_v46 = vadd.f32 %v1703_v1, %v4020_v49  ;;  %v1765_v28 = vadd.f32 %v1764_v61, %v4020_v49  ;;  %v1706_v6 = vadd.f32 %v1705_v26, %v4022_v48 }
 0x2ac   : > { %3042 = vrcp.f32 %v1879_v33  ;;  %v1777_v34 = vpop.f32.mrb[55].mxu1  ;;  %v1767_v63 = vadd.f32 %v1766_v30, %v4022_v48  ;;  %v1801_v13 = vsub.f32 0.0, %v1763_v17  ;;  %v1708_v49 = vadd.f32 %v1707_v4, %v4022_v48 }
 0x2ad   : > { %3044 = vpow2.f32 %v1839_v43  ;;  %v1800_v47 = vsub.f32 0.0, %v1704_v46  ;;  %v1802_v15 = vsub.f32 0.0, %v1765_v28  ;;  %v1807_v26 = vsub.f32 0.0, %v1706_v6 }
 0x2ae   : > { %3046 = vpow2.f32 %v1837_v55  ;;  %v1855_v38 = vmul.f32 1.442695, %v1801_v13  ;;  %v1809_v32 = vsub.f32 0.0, %v1767_v63  ;;  %v1769_v7 = vadd.f32 %v1768_v53, %v4022_v48 }
 0x2af   : > { %v3029_v2 = vpop.eup %3028  ;;  %3048 = vpow2.f32 %v1841_v56  ;;  %v1853_v1 = vmul.f32 1.442695, %v1800_v47  ;;  %v1857_v20 = vmul.f32 1.442695, %v1802_v15  ;;  %v1808_v4 = vsub.f32 0.0, %v1708_v49 }
 0x2b0   : > { %v3031_v12 = vpop.eup %3030  ;;  %v1965_v36 = vmul.f32 1.002, %v3029_v2  ;;  %3050 = vpow2.f32 %v1851_v10  ;;  %v1867_v28 = vmul.f32 1.442695, %v1807_v26  ;;  %v1871_v34 = vmul.f32 1.442695, %v1809_v32 }
 0x2b1   : > { %v3033_v62 = vpop.eup %3032  ;;  %v1881_v44 = vadd.f32 1.0, %v3031_v12  ;;  %v1869_v15 = vmul.f32 1.442695, %v1808_v4  ;;  %v1712_v12 = vadd.f32 %v4085_v57, %v4004_v58  ;;  %v4129_v49 = vadd.f32 %v4050_v22, %v4047_v25 }
 0x2b2   : > { %v3035_v61 = vpop.eup %3034  ;;  %v2629_v14 = vadd.f32 -0.001, %v1965_v36  ;;  %v1964_v40 = vmul.f32 1.002, %v3033_v62 }
 0x2b3   : > { %v3037_v11 = vpop.eup %3036  ;;  %v1966_v30 = vmul.f32 1.002, %v3035_v61  ;;  %3052 = vrcp.f32 %v1881_v44  ;;  %v1773_v44 = vadd.f32 %v4092_v16, %v4004_v58 }
 0x2b4   : > { %v3039_v9 = vpop.eup %3038  ;;  %v2628_v24 = vadd.f32 -0.001, %v1964_v40  ;;  %v1880_v33 = vadd.f32 1.0, %v3037_v11  ;;  %3054 = vpow2.f32 %v1855_v38  ;;  %v1714_v38 = vadd.f32 %v4090_v21, %v4004_v58 }
 0x2b5   : > { %v3041_v35 = vpop.eup %3040  ;;  %v4106_v19 = vadd.f32 -0.001, %v1966_v30  ;;  %v1882_v43 = vadd.f32 1.0, %v3039_v9  ;;  %3056 = vpow2.f32 %v1853_v1  ;;  %v1775_v1 = vadd.f32 %v4094_v60, %v4004_v58 }
 0x2b6   : > { %v3043_v55 = vpop.eup %3042  ;;  %v4109_v56 = vadd.f32 %v2628_v24, %v4079_v23  ;;  %v4111_v10 = vadd.f32 %v2629_v14, %v2628_v24  ;;  %3058 = vrcp.f32 %v1880_v33  ;;  %v1887_v8 = vadd.f32 1.0, %v3041_v35 }
 0x2b7   : > { %v3045_v51 = vpop.eup %3044  ;;  %v4114_v17 = vadd.f32 %v4106_v19, %v2629_v14  ;;  %v1943_v46 = vmul.f32 1.002, %v3043_v55  ;;  %3060 = vrcp.f32 %v1882_v43  ;;  %v1810_v23 = vsub.f32 0.0, %v1769_v7 }
 0x2b8   : > { %v3047_v48 = vpop.eup %3046  ;;  %3062 = vrcp.f32 %v1887_v8  ;;  %v1889_v53 = vadd.f32 1.0, %v3045_v51  ;;  %v2045_v16 = vcombine.low %v1712_v12, %v1714_v38  ;;  %v2046_v40 = vcombine.low %v1773_v44, %v1775_v1 }
 0x2b9   : > { %v3049_v6 = vpop.eup %3048  ;;  %v2607_v63 = vadd.f32 -0.001, %v1943_v46  ;;  %v1888_v2 = vadd.f32 1.0, %v3047_v48  ;;  %3064 = vpow2.f32 %v1857_v20  ;;  %v1873_v11 = vmul.f32 1.442695, %v1810_v23 }
 0x2ba   : > { %v3051_v13 = vpop.eup %3050  ;;  %3066 = vrcp.f32 %v1889_v53  ;;  %v1890_v47 = vadd.f32 1.0, %v3049_v6  ;;  %v2067_v25 = vrot.slane %v2045_v16, %v4031_v3  ;;  %v2083_v43 = vrot.slane %v2075_v31, %v4031_v3 }
 0x2bb   : > { %v4119_v36 = vadd.f32 %v2607_v63, %v4054_v54  ;;  %3068 = vrcp.f32 %v1888_v2  ;;  %v1895_v62 = vadd.f32 1.0, %v3051_v13  ;;  %v4133_v54 = vadd.f32 %v4074_v50, %v4069_v18 }
 0x2bc   : > { %3070 = vrcp.f32 %v1890_v47  ;;  %v2074_v18 = vrot.slane %v2046_v40, %v4031_v3 }
 0x2bd   : > { %v3053_v57 = vpop.eup %3052  ;;  %3072 = vrcp.f32 %v1895_v62 }
 0x2be   : > { %v3055_v61 = vpop.eup %3054  ;;  %v1945_v14 = vmul.f32 1.002, %v3053_v57  ;;  %3074 = vpow2.f32 %v1867_v28  ;;  %v2076_v7 = vcombine.low %v2067_v25, %v2074_v18 }
 0x2bf   : > { %v3057_v26 = vpop.eup %3056  ;;  %v1897_v21 = vadd.f32 1.0, %v3055_v61  ;;  %3076 = vpow2.f32 %v1871_v34 }
 0x2c0   : > { %v3059_v58 = vpop.eup %3058  ;;  %v2609_v60 = vadd.f32 -0.001, %v1945_v14  ;;  %v1896_v30 = vadd.f32 1.0, %v3057_v26  ;;  %3078 = vpow2.f32 %v1869_v15  ;;  %v2090_v48 = vrot.slane %v2076_v7, %v4031_v3 }
 0x2c1   : > { %v3061_v22 = vpop.eup %3060  ;;  %v1944_v20 = vmul.f32 1.002, %v3059_v58  ;;  %3080 = vrcp.f32 %v1897_v21 }
 0x2c2   : > { %v3063_v50 = vpop.eup %3062  ;;  %v1946_v32 = vmul.f32 1.002, %v3061_v22  ;;  %3082 = vrcp.f32 %v1896_v30  ;;  %v2091_v13 = vcombine.low %v2083_v43, %v2090_v48 }
 0x2c3   : > { %v3065_v9 = vpop.eup %3064  ;;  %v2608_v24 = vadd.f32 -0.001, %v1944_v20  ;;  %v1951_v33 = vmul.f32 1.002, %v3063_v50  ;;  %3084 = vpow2.f32 %v1873_v11 }
 0x2c4   : > { %v3067_v35 = vpop.eup %3066  ;;  %v2610_v4 = vadd.f32 -0.001, %v1946_v32  ;;  %v1898_v55 = vadd.f32 1.0, %v3065_v9  ;;  %2094 = vst [vmem:[#allocation2 + $0x100] ss:$8 sm:$0xf] %v2091_v13 }
 0x2c5   : > { %v3069_v8 = vpop.eup %3068  ;;  %v2615_v51 = vadd.f32 -0.001, %v1951_v33  ;;  %v1953_v46 = vmul.f32 1.002, %v3067_v35  ;;  %v4142_v53 = vadd.f32 %v2608_v24, %v2607_v63  ;;  %v4144_v6 = vadd.f32 %v2609_v60, %v2608_v24 }
 0x2c6   : > { %v3071_v28 = vpop.eup %3070  ;;  %v1952_v34 = vmul.f32 1.002, %v3069_v8  ;;  %3086 = vrcp.f32 %v1898_v55  ;;  %v4146_v2 = vadd.f32 %v2610_v4, %v2609_v60  ;;  %2095 = vst [vmem:[#allocation2 + $0x100] ss:$8 sm:$0xf0] %v2091_v13 }
 0x2c7   : > { %v3073_v23 = vpop.eup %3072  ;;  %v4149_v42 = vadd.f32 %v2615_v51, %v4060_v59  ;;  %v2617_v29 = vadd.f32 -0.001, %v1953_v46  ;;  %v1954_v31 = vmul.f32 1.002, %v3071_v28 }
 0x2c8   : > { %v3075_v47 = vpop.eup %3074  ;;  %v2616_v15 = vadd.f32 -0.001, %v1952_v34  ;;  %v1959_v12 = vmul.f32 1.002, %v3073_v23 }
 0x2c9   : > { %v3077_v3 = vpop.eup %3076  ;;  %v2618_v63 = vadd.f32 -0.001, %v1954_v31  ;;  %v1903_v62 = vadd.f32 1.0, %v3075_v47 }
 0x2ca   : > { %v3079_v44 = vpop.eup %3078  ;;  %v2623_v38 = vadd.f32 -0.001, %v1959_v12  ;;  %v1905_v1 = vadd.f32 1.0, %v3077_v3  ;;  %v4151_v57 = vadd.f32 %v2616_v15, %v2615_v51  ;;  %v4153_v61 = vadd.f32 %v2617_v29, %v2616_v15 }
 0x2cb   : > { %v3081_v59 = vpop.eup %3080  ;;  %3088 = vrcp.f32 %v1903_v62  ;;  %v1904_v14 = vadd.f32 1.0, %v3079_v44  ;;  %v4155_v16 = vadd.f32 %v2618_v63, %v2617_v29  ;;  %v2100_v20 = vld [vmem:[#allocation2 + $0x100] ss:$0 sm:$0xff]  ;;  %v2105_v18 = vld [vmem:[#allocation2 + $0x108] ss:$0 sm:$0xff] }
 0x2cc   : > { %v3083_v40 = vpop.eup %3082  ;;  %v4158_v26 = vadd.f32 %v2623_v38, %v4077_v52  ;;  %v1961_v21 = vmul.f32 1.002, %v3081_v59  ;;  %3090 = vrcp.f32 %v1905_v1  ;;  %v2148_v50 = vld [vmem:[#allocation2 + $0x110] ss:$0 sm:$0xff]  ;;  %v2114_v9 = vadd.f32 %v2105_v18, %v2100_v20  ;;  %v2193_v33 = vld [vmem:[#allocation2 + $0x118] ss:$0 sm:$0xff] }
 0x2cd   : > { %v3085_v11 = vpop.eup %3084  ;;  %v1960_v58 = vmul.f32 1.002, %v3083_v40  ;;  %3092 = vrcp.f32 %v1904_v14  ;;  %v2157_v24 = vadd.f32 %v2148_v50, %v2105_v18  ;;  %v2238_v7 = vld [vmem:[#allocation2 + $0x120] ss:$0 sm:$0xff]  ;;  %v2202_v35 = vadd.f32 %v2193_v33, %v2148_v50  ;;  %v2283_v4 = vld [vmem:[#allocation2 + $0x128] ss:$0 sm:$0xff] }
 0x2ce   : > { %v2625_v60 = vadd.f32 -0.001, %v1961_v21  ;;  %v1906_v30 = vadd.f32 1.0, %v3085_v11  ;;  %v2247_v43 = vadd.f32 %v2238_v7, %v2193_v33  ;;  %v2328_v55 = vld [vmem:[#allocation2 + $0x130] ss:$0 sm:$0xff]  ;;  %v2115_v46 = vmul.f32 0.5, %v2114_v9 }
 0x2cf   : > { %v2624_v25 = vadd.f32 -0.001, %v1960_v58  ;;  %v2158_v48 = vmul.f32 0.5, %v2157_v24  ;;  %v2292_v28 = vadd.f32 %v2283_v4, %v2238_v7  ;;  %v2203_v34 = vmul.f32 0.5, %v2202_v35  ;;  %v2373_v62 = vld [vmem:[#allocation2 + $0x138] ss:$0 sm:$0xff] }
 0x2d0   : > { %v3087_v22 = vpop.eup %3086  ;;  %3094 = vrcp.f32 %v1906_v30  ;;  %v2248_v23 = vmul.f32 0.5, %v2247_v43  ;;  %v2337_v29 = vadd.f32 %v2328_v55, %v2283_v4  ;;  %v4164_v13 = vadd.f32 -1.0, %v2115_v46 }
 0x2d1   : > { %v1962_v32 = vmul.f32 1.002, %v3087_v22  ;;  %v4160_v52 = vadd.f32 %v2624_v25, %v2623_v38  ;;  %v4162_v8 = vadd.f32 %v2625_v60, %v2624_v25  ;;  %v4166_v47 = vadd.f32 -1.0, %v2158_v48 }
 0x2d2   : > { %v4168_v3 = vadd.f32 -1.0, %v2203_v34  ;;  %v2293_v63 = vmul.f32 0.5, %v2292_v28  ;;  %v2118_v1 = vand.u32 2147483647, %v4164_v13  ;;  %v4171_v59 = vadd.f32 -1.0, %v2248_v23 }
 0x2d3   : > { %v2626_v51 = vadd.f32 -0.001, %v1962_v32  ;;  %v2338_v14 = vmul.f32 0.5, %v2337_v29  ;;  %v2161_v11 = vand.u32 2147483647, %v4166_v47  ;;  %v2382_v9 = vadd.f32 %v2373_v62, %v2328_v55 }
 0x2d4   : > { %v2119_v25 = vsub.f32 0.0, %v2118_v1  ;;  %v2206_v22 = vand.u32 2147483647, %v4168_v3  ;;  %v4180_v35 = vadd.f32 -1.0, %v2293_v63 }
 0x2d5   : > { %v3089_v31 = vpop.eup %3088  ;;  %v4174_v58 = vadd.f32 %v2626_v51, %v2625_v60  ;;  %v2162_v32 = vsub.f32 0.0, %v2161_v11  ;;  %v2251_v60 = vand.u32 2147483647, %v4171_v59  ;;  %v4183_v4 = vadd.f32 -1.0, %v2338_v14 }
 0x2d6   : > { %v3091_v15 = vpop.eup %3090  ;;  %v1967_v12 = vmul.f32 1.002, %v3089_v31  ;;  %v2120_v33 = vmul.f32 1.442695, %v2119_v25  ;;  %v2207_v7 = vsub.f32 0.0, %v2206_v22  ;;  %v2383_v28 = vmul.f32 0.5, %v2382_v9 }
 0x2d7   : > { %v3093_v44 = vpop.eup %3092  ;;  %v1969_v38 = vmul.f32 1.002, %v3091_v15  ;;  %v2163_v43 = vmul.f32 1.442695, %v2162_v32  ;;  %v2252_v48 = vsub.f32 0.0, %v2251_v60 }
 0x2d8   : > { %v2631_v40 = vadd.f32 -0.001, %v1967_v12  ;;  %v1968_v21 = vmul.f32 1.002, %v3093_v44  ;;  %3096 = vpow2.f32 %v2120_v33  ;;  %v2208_v46 = vmul.f32 1.442695, %v2207_v7 }
 0x2d9   : > { %v2633_v30 = vadd.f32 -0.001, %v1969_v38  ;;  %3098 = vpow2.f32 %v2163_v43  ;;  %v2341_v55 = vand.u32 2147483647, %v4183_v4  ;;  %v2253_v23 = vmul.f32 1.442695, %v2252_v48 }
 0x2da   : > { %v3095_v20 = vpop.eup %3094  ;;  %v4178_v18 = vadd.f32 %v2631_v40, %v4106_v19  ;;  %v2632_v50 = vadd.f32 -0.001, %v1968_v21  ;;  %v2296_v19 = vand.u32 2147483647, %v4180_v35  ;;  %3100 = vpow2.f32 %v2208_v46 }
 0x2db   : > { %v1970_v24 = vmul.f32 1.002, %v3095_v20  ;;  %v2342_v15 = vsub.f32 0.0, %v2341_v55  ;;  %v4191_v12 = vadd.f32 -1.0, %v2383_v28  ;;  %3102 = vpow2.f32 %v2253_v23 }
 0x2dc   : > { %v4187_v34 = vadd.f32 %v2632_v50, %v2631_v40  ;;  %v2297_v29 = vsub.f32 0.0, %v2296_v19  ;;  %v4189_v31 = vadd.f32 %v2633_v30, %v2632_v50  ;;  %v2117_v46 = vmax.f32 %v4164_v13, 0.0 }
 0x2dd   : > { %v2634_v51 = vadd.f32 -0.001, %v1970_v24  ;;  %v2343_v44 = vmul.f32 1.442695, %v2342_v15  ;;  %v2386_v38 = vand.u32 2147483647, %v4191_v12 }
 0x2de   : > { %v2298_v62 = vmul.f32 1.442695, %v2297_v29  ;;  %v2160_v55 = vmax.f32 %v4166_v47, 0.0  ;;  %v2205_v29 = vmax.f32 %v4168_v3, 0.0  ;;  %v2340_v3 = vmax.f32 %v4183_v4, 0.0 }
 0x2df   : > { %v4193_v63 = vadd.f32 %v2634_v51, %v2633_v30  ;;  %v2387_v1 = vsub.f32 0.0, %v2386_v38 }
 0x2e0   : > { %3104 = vpow2.f32 %v2298_v62 }
 0x2e1   : > { %3106 = vpow2.f32 %v2343_v44  ;;  %v2388_v40 = vmul.f32 1.442695, %v2387_v1 }
 0x2e2   : > { %v3097_v14 = vpop.eup %3096 }
 0x2e3   : > { %v3099_v21 = vpop.eup %3098  ;;  %v2122_v11 = vadd.f32 1.0, %v3097_v14  ;;  %3108 = vpow2.f32 %v2388_v40  ;;  %v2250_v40 = vmax.f32 %v4171_v59, 0.0 }
 0x2e4   : > { %v3101_v25 = vpop.eup %3100  ;;  %v2165_v22 = vadd.f32 1.0, %v3099_v21 }
 0x2e5   : > { %3110 = vlog2.f32 %v2122_v11  ;;  %v2210_v20 = vadd.f32 1.0, %v3101_v25  ;;  %v3103_v30 = vpop.eup %3102 }
 0x2e6   : > { %3112 = vlog2.f32 %v2165_v22  ;;  %v2255_v50 = vadd.f32 1.0, %v3103_v30  ;;  %v2295_v22 = vmax.f32 %v4180_v35, 0.0 }
 0x2e7   : > { %3114 = vlog2.f32 %v2210_v20 }
 0x2e8   : > { %3116 = vlog2.f32 %v2255_v50 }
 0x2ea   : > { %v3105_v32 = vpop.eup %3104 }
 0x2eb   : > { %v3107_v9 = vpop.eup %3106  ;;  %v2300_v24 = vadd.f32 1.0, %v3105_v32 }
 0x2ec   : > { %v2345_v33 = vadd.f32 1.0, %v3107_v9 }
 0x2ed   : > { %3118 = vlog2.f32 %v2300_v24  ;;  %v3109_v7 = vpop.eup %3108 }
 0x2ee   : > { %3120 = vlog2.f32 %v2345_v33  ;;  %v2390_v60 = vadd.f32 1.0, %v3109_v7 }
 0x2ef   : > { %v3111_v43 = vpop.eup %3110 }
 0x2f0   : > { %v3113_v51 = vpop.eup %3112  ;;  %v2124_v48 = vmul.f32 0.6931472, %v3111_v43  ;;  %3122 = vlog2.f32 %v2390_v60 }
 0x2f1   : > { %v3115_v19 = vpop.eup %3114  ;;  %v2167_v28 = vmul.f32 0.6931472, %v3113_v51 }
 0x2f2   : > { %v2125_v23 = vadd.f32 %v2124_v48, %v2117_v46  ;;  %v2212_v15 = vmul.f32 0.6931472, %v3115_v19  ;;  %v3117_v44 = vpop.eup %3116  ;;  %v2385_v19 = vmax.f32 %v4191_v12, 0.0  ;;  %v2113_v12 = vmul.f32 0.5, %v4109_v56 }
 0x2f3   : > { %v2168_v62 = vadd.f32 %v2167_v28, %v2160_v55  ;;  %v2257_v21 = vmul.f32 0.6931472, %v3117_v44  ;;  %v2110_v56 = vmul.f32 0.5, %v4129_v49 }
 0x2f4   : > { %v2126_v38 = vsub.f32 0.0, %v2125_v23  ;;  %v2213_v1 = vadd.f32 %v2212_v15, %v2205_v29 }
 0x2f5   : > { %v2169_v14 = vsub.f32 0.0, %v2168_v62  ;;  %v2258_v30 = vadd.f32 %v2257_v21, %v2250_v40  ;;  %v2153_v40 = vmul.f32 0.5, %v4058_v45  ;;  %v2243_v45 = vmul.f32 0.5, %v4119_v36 }
 0x2f6   : > { %v2127_v13 = vmul.f32 0.15, %v2126_v38  ;;  %v2214_v25 = vsub.f32 0.0, %v2213_v1  ;;  %v2111_v38 = vmul.f32 0.5, %v4065_v27  ;;  %v2154_v1 = vmul.f32 0.5, %v4067_v5 }
 0x2f7   : > { %v3119_v11 = vpop.eup %3118  ;;  %v2170_v20 = vmul.f32 0.15, %v2169_v14  ;;  %v2259_v7 = vsub.f32 0.0, %v2258_v30  ;;  %v2199_v14 = vmul.f32 0.5, %v4072_v41  ;;  %v2201_v27 = vmul.f32 0.5, %v4114_v17 }
 0x2f8   : > { %v3121_v47 = vpop.eup %3120  ;;  %v2302_v50 = vmul.f32 0.6931472, %v3119_v11  ;;  %v2128_v32 = vmul.f32 1.442695, %v2127_v13  ;;  %v2215_v9 = vmul.f32 0.15, %v2214_v25 }
 0x2f9   : > { %v2347_v24 = vmul.f32 0.6931472, %v3121_v47  ;;  %v2171_v33 = vmul.f32 1.442695, %v2170_v20  ;;  %v2260_v46 = vmul.f32 0.15, %v2259_v7 }
 0x2fa   : > { %v2303_v43 = vadd.f32 %v2302_v50, %v2295_v22  ;;  %3124 = vpow2.f32 %v2128_v32  ;;  %v2216_v59 = vmul.f32 1.442695, %v2215_v9  ;;  %v3123_v51 = vpop.eup %3122  ;;  %v2198_v11 = vmul.f32 0.5, %v4063_v37 }
 0x2fb   : > { %v2348_v60 = vadd.f32 %v2347_v24, %v2340_v3  ;;  %3126 = vpow2.f32 %v2171_v33  ;;  %v2392_v55 = vmul.f32 0.6931472, %v3123_v51  ;;  %v2261_v28 = vmul.f32 1.442695, %v2260_v46 }
 0x2fc   : > { %v2304_v48 = vsub.f32 0.0, %v2303_v43  ;;  %3128 = vpow2.f32 %v2216_v59  ;;  %v2155_v13 = vmul.f32 0.5, %v4088_v39  ;;  %v2200_v25 = vmul.f32 0.5, %v4097_v0 }
 0x2fd   : > { %v2349_v35 = vsub.f32 0.0, %v2348_v60  ;;  %v2393_v29 = vadd.f32 %v2392_v55, %v2385_v19  ;;  %3130 = vpow2.f32 %v2261_v28  ;;  %v2156_v47 = vmul.f32 0.5, %v4111_v10 }
 0x2fe   : > { %v2305_v4 = vmul.f32 0.15, %v2304_v48  ;;  %v2112_v0 = vmul.f32 0.5, %v4133_v54  ;;  %v4220_v50 = vmul.f32 0.5, %v4142_v53  ;;  %v2244_v10 = vmul.f32 0.5, %v4149_v42 }
 0x2ff   : > { %v2350_v23 = vmul.f32 0.15, %v2349_v35  ;;  %v2394_v44 = vsub.f32 0.0, %v2393_v29  ;;  %v4224_v3 = vmul.f32 0.5, %v4144_v6  ;;  %v4227_v36 = vmul.f32 0.5, %v4146_v2 }
 0x300   : > { %v2306_v15 = vmul.f32 1.442695, %v2305_v4  ;;  %v4230_v24 = vmul.f32 0.5, %v4151_v57  ;;  %v4233_v54 = vmul.f32 0.5, %v4153_v61  ;;  %v2245_v53 = vmul.f32 0.5, %v4158_v26 }
 0x301   : > { %v2351_v62 = vmul.f32 1.442695, %v2350_v23  ;;  %v2395_v30 = vmul.f32 0.15, %v2394_v44  ;;  %v4237_v7 = vmul.f32 0.5, %v4155_v16  ;;  %v2290_v60 = vmul.f32 0.5, %v4160_v52 }
 0x302   : > { %3132 = vpow2.f32 %v2306_v15 }
 0x303   : > { %3134 = vpow2.f32 %v2351_v62  ;;  %v2396_v42 = vmul.f32 1.442695, %v2395_v30 }
 0x304   : > { %v3125_v21 = vpop.eup %3124 }
 0x305   : > { %v3127_v22 = vpop.eup %3126  ;;  %v4213_v20 = vsub.f32 1.0, %v3125_v21  ;;  %3136 = vpow2.f32 %v2396_v42 }
 0x306   : > { %v3129_v5 = vpop.eup %3128  ;;  %v2173_v41 = vsub.f32 1.0, %v3127_v22 }
 0x307   : > { %v2142_v37 = vsub.f32 1.0, %v4213_v20  ;;  %v2218_v39 = vsub.f32 1.0, %v3129_v5  ;;  %v3131_v32 = vpop.eup %3130  ;;  %v2131_v2 = vmul.f32 %v4213_v20, %v2110_v56  ;;  %v2132_v59 = vmul.f32 %v4213_v20, %v2111_v38 }
 0x308   : > { %v2186_v17 = vsub.f32 1.0, %v2173_v41  ;;  %v2263_v46 = vsub.f32 1.0, %v3131_v32  ;;  %v2133_v48 = vmul.f32 %v4213_v20, %v2112_v0  ;;  %v2134_v28 = vmul.f32 %v4213_v20, %v2113_v12 }
 0x309   : > { %v2143_v9 = vadd.f32 1e-10, %v2142_v37  ;;  %v2231_v49 = vsub.f32 1.0, %v2218_v39 }
 0x30a   : > { %v2187_v33 = vadd.f32 1e-10, %v2186_v17  ;;  %v2276_v44 = vsub.f32 1.0, %v2263_v46 }
 0x30b   : > { %v2174_v43 = vmul.f32 %v2173_v41, %v2143_v9  ;;  %v2232_v51 = vadd.f32 1e-10, %v2231_v49 }
 0x30c   : > { %v3133_v6 = vpop.eup %3132  ;;  %v2188_v57 = vmul.f32 %v2187_v33, %v2143_v9  ;;  %v2277_v0 = vadd.f32 1e-10, %v2276_v44 }
 0x30d   : > { %v2308_v61 = vsub.f32 1.0, %v3133_v6  ;;  %v2175_v26 = vmul.f32 %v2174_v43, %v2153_v40  ;;  %v2176_v35 = vmul.f32 %v2174_v43, %v2154_v1  ;;  %v2177_v19 = vmul.f32 %v2174_v43, %v2155_v13  ;;  %v3135_v4 = vpop.eup %3134 }
 0x30e   : > { %v2219_v55 = vmul.f32 %v2218_v39, %v2188_v57  ;;  %v2233_v16 = vmul.f32 %v2232_v51, %v2188_v57  ;;  %v2178_v23 = vmul.f32 %v2174_v43, %v2156_v47  ;;  %v2185_v21 = vadd.f32 %v2174_v43, %v4213_v20 }
 0x30f   : > { %v2179_v29 = vadd.f32 %v2175_v26, %v2131_v2  ;;  %v2180_v15 = vadd.f32 %v2176_v35, %v2132_v59  ;;  %v2181_v62 = vadd.f32 %v2177_v19, %v2133_v48  ;;  %v2321_v38 = vsub.f32 1.0, %v2308_v61  ;;  %v3137_v51 = vpop.eup %3136 }
 0x310   : > { %v2264_v52 = vmul.f32 %v2263_v46, %v2233_v16  ;;  %v2182_v22 = vadd.f32 %v2178_v23, %v2134_v28  ;;  %v2220_v5 = vmul.f32 %v2219_v55, %v2198_v11  ;;  %v2221_v40 = vmul.f32 %v2219_v55, %v2199_v14 }
 0x311   : > { %v2222_v1 = vmul.f32 %v2219_v55, %v2200_v25  ;;  %v2246_v13 = vmul.f32 0.5, %v4178_v18  ;;  %v2353_v41 = vsub.f32 1.0, %v3135_v4  ;;  %v2223_v30 = vmul.f32 %v2219_v55, %v2201_v27 }
 0x312   : > { %v2230_v56 = vadd.f32 %v2219_v55, %v2185_v21  ;;  %v2224_v12 = vadd.f32 %v2220_v5, %v2179_v29  ;;  %v2225_v37 = vadd.f32 %v2221_v40, %v2180_v15  ;;  %v2265_v39 = vmul.f32 %v2264_v52, %v2243_v45 }
 0x313   : > { %v2226_v47 = vadd.f32 %v2222_v1, %v2181_v62  ;;  %v2227_v17 = vadd.f32 %v2223_v30, %v2182_v22  ;;  %v2266_v32 = vmul.f32 %v2264_v52, %v2244_v10  ;;  %v2267_v9 = vmul.f32 %v2264_v52, %v2245_v53 }
 0x314   : > { %v2322_v49 = vadd.f32 1e-10, %v2321_v38  ;;  %v2183_v33 = vmul.f32 2.475, %v2174_v43  ;;  %v2268_v42 = vmul.f32 %v2264_v52, %v2246_v13  ;;  %v2269_v6 = vadd.f32 %v2265_v39, %v2224_v12 }
 0x315   : > { %v2270_v11 = vadd.f32 %v2266_v32, %v2225_v37  ;;  %v2271_v14 = vadd.f32 %v2267_v9, %v2226_v47  ;;  %v2278_v25 = vmul.f32 %v2277_v0, %v2233_v16  ;;  %v2366_v2 = vsub.f32 1.0, %v2353_v41 }
 0x316   : > { %v2139_v18 = vmul.f32 2.325, %v4213_v20  ;;  %v2272_v27 = vadd.f32 %v2268_v42, %v2227_v17  ;;  %v2275_v59 = vadd.f32 %v2264_v52, %v2230_v56  ;;  %v2335_v57 = vmul.f32 0.5, %v4162_v8 }
 0x317   : > { %v2291_v45 = vmul.f32 0.5, %v4187_v34  ;;  %v2309_v46 = vmul.f32 %v2308_v61, %v2278_v25  ;;  %v2323_v10 = vmul.f32 %v2322_v49, %v2278_v25  ;;  %v2336_v53 = vmul.f32 0.5, %v4189_v31 }
 0x318   : > { %v2184_v43 = vadd.f32 %v2183_v33, %v2139_v18  ;;  %v2228_v48 = vmul.f32 2.625, %v2219_v55  ;;  %v2367_v26 = vadd.f32 1e-10, %v2366_v2  ;;  %v2380_v35 = vmul.f32 0.5, %v4174_v58 }
 0x319   : > { %v2310_v19 = vmul.f32 %v2309_v46, %v4220_v50  ;;  %v2311_v20 = vmul.f32 %v2309_v46, %v4230_v24  ;;  %v2312_v16 = vmul.f32 %v2309_v46, %v2290_v60  ;;  %v2313_v28 = vmul.f32 %v2309_v46, %v2291_v45 }
 0x31a   : > { %v2320_v8 = vadd.f32 %v2309_v46, %v2275_v59  ;;  %v2354_v4 = vmul.f32 %v2353_v41, %v2323_v10  ;;  %v2368_v23 = vmul.f32 %v2367_v26, %v2323_v10  ;;  %v2398_v34 = vsub.f32 1.0, %v3137_v51 }
 0x31b   : > { %v2314_v61 = vadd.f32 %v2310_v19, %v2269_v6  ;;  %v2315_v29 = vadd.f32 %v2311_v20, %v2270_v11  ;;  %v2316_v15 = vadd.f32 %v2312_v16, %v2271_v14  ;;  %v2317_v31 = vadd.f32 %v2313_v28, %v2272_v27 }
 0x31c   : > { %v2229_v62 = vadd.f32 %v2228_v48, %v2184_v43  ;;  %v2355_v55 = vmul.f32 %v2354_v4, %v4224_v3  ;;  %v2356_v58 = vmul.f32 %v2354_v4, %v4233_v54  ;;  %v2357_v50 = vmul.f32 %v2354_v4, %v2335_v57 }
 0x31d   : > { %v2273_v44 = vmul.f32 2.775, %v2264_v52  ;;  %v2358_v24 = vmul.f32 %v2354_v4, %v2336_v53  ;;  %v2365_v60 = vadd.f32 %v2354_v4, %v2320_v8  ;;  %v2399_v38 = vmul.f32 %v2398_v34, %v2368_v23 }
 0x31e   : > { %v2359_v21 = vadd.f32 %v2355_v55, %v2314_v61  ;;  %v2360_v22 = vadd.f32 %v2356_v58, %v2315_v29  ;;  %v2361_v5 = vadd.f32 %v2357_v50, %v2316_v15  ;;  %v2381_v40 = vmul.f32 0.5, %v4193_v63 }
 0x31f   : > { %v2362_v1 = vadd.f32 %v2358_v24, %v2317_v31  ;;  %v2400_v13 = vmul.f32 %v2399_v38, %v4227_v36  ;;  %v2401_v41 = vmul.f32 %v2399_v38, %v4237_v7  ;;  %v2402_v3 = vmul.f32 %v2399_v38, %v2380_v35 }
 0x320   : > { %v2403_v54 = vmul.f32 %v2399_v38, %v2381_v40  ;;  %v2410_v30 = vadd.f32 %v2399_v38, %v2365_v60  ;;  %v2274_v56 = vadd.f32 %v2273_v44, %v2229_v62  ;;  %v2318_v52 = vmul.f32 2.925, %v2309_v46 }
 0x321   : > { %v2404_v12 = vadd.f32 %v2400_v13, %v2359_v21  ;;  %v2405_v37 = vadd.f32 %v2401_v41, %v2360_v22  ;;  %v2406_v47 = vadd.f32 %v2402_v3, %v2361_v5  ;;  %v2363_v7 = vmul.f32 3.075, %v2354_v4 }
 0x322   : > { %v2407_v39 = vadd.f32 %v2403_v54, %v2362_v1  ;;  %v2411_v0 = vmax.f32 %v2410_v30, 1e-10  ;;  %v2319_v36 = vadd.f32 %v2318_v52, %v2274_v56  ;;  %v2408_v14 = vmul.f32 3.225, %v2399_v38 }
 0x323   : > { %v2416_v17 = vmul.f32 2.0, %v2404_v12  ;;  %v2417_v32 = vmul.f32 2.0, %v2405_v37  ;;  %v2418_v63 = vmul.f32 2.0, %v2406_v47 }
 0x324   : > { %3138 = vrcp.f32 %v2411_v0  ;;  %v2419_v9 = vmul.f32 2.0, %v2407_v39  ;;  %v2364_v11 = vadd.f32 %v2363_v7, %v2319_v36 }
 0x325   : > { %v2642_v49 = vadd.f32 -1.0, %v2416_v17  ;;  %v2643_v33 = vadd.f32 -1.0, %v2417_v32  ;;  %v2644_v42 = vadd.f32 -1.0, %v2418_v63 }
 0x326   : > { %v2645_v6 = vadd.f32 -1.0, %v2419_v9  ;;  %v2409_v25 = vadd.f32 %v2408_v14, %v2364_v11 }
 0x327   : > { %2424 = vst [vmem:[%s190_s20] sm:$0xff] %v2642_v49  ;;  %2425 = vst [vmem:[%s190_s20 + $0x8] sm:$0xff] %v2643_v33 }
 0x328   : > { %2426 = vst [vmem:[%s190_s20 + $0x10] sm:$0xff] %v2644_v42  ;;  %2427 = vst [vmem:[%s190_s20 + $0x18] sm:$0xff] %v2645_v6 }
 0x32e   : > { %v3139_v2 = vpop.eup %3138 }
 0x32f   : > { %v2413_v18 = vmul.f32 %v3139_v2, %v2409_v25 }
 0x331   : > { %v2414_v27 = vmax.f32 %v2413_v18, 2.25 }
 0x333   : > { %v2415_v59 = vmin.f32 %v2414_v27, 3.3 }
 0x335   : > { %v2428_v57 = vsel %vm555_vm0, %v2415_v59, %v2410_v30 }
 0x336   : > { %v2430_v51 = vsel %vm2429_vm3, %v2428_v57, 0.0 }
 0x337   : > { %2431 = vst [vmem:[%s190_s20 + $0x20] sm:$0xff] %v2430_v51 }
 0x338   : > { %3153 = shalt.err (!%p3150_p3)
}
 0x339   : > { %s3154_s8 = scalar_lea.hbm %s4265_s29, 640  ;;  %s3158_s11 = scalar_lea.hbm %s4317_s4, 2560 }
 0x33a   : > { %p3155_p4 = scmp.ne.s32.totalorder %s4265_s29, %s3154_s8  ;;  %p3159_p9 = scmp.lt.u32.totalorder %s4265_s29, %s4317_s4 }
 0x33b   : > { %p3160_p10 = scmp.lt.u32.totalorder %s3158_s11, %s3154_s8  ;;  %p3162_p12 = scmp.lt.u32.totalorder %s3154_s8, %s4265_s29 }
 0x33c   : > { %p3156_p7 = pnand %p3155_p4, %p3273_p5 }
 0x33d   : > { %p3161_p11 = por %p3160_p10, %p3159_p9 }
 0x33e   : > { %p3157_p8 = pneg %p3156_p7 }
 0x33f   : > { %p3163_p13 = por %p3162_p12, %p3161_p11 }
 0x341   : > { %p3164_p0 = pnand %p3163_p13, %p3157_p8 }
 0x343   : > { %3167 = shalt.err (!%p3164_p0)
}
 0x344   : > { %s3207_s14 = smov 128   ;;  %s3208_s20 = smov 512  }
 0x345   : > { %s3209_s22 = smov 8  }
 0x346   : > { %2651 = dma.vmem_to_hbm [thread:$0]  (%p3273_p5), %s4267_s23, 640, %s4265_s29, %s4272_s19, %s3207_s14, %s3208_s20, %s3209_s22  }
 0x347 PF: > { %p2657_p1 = scmp.ge.s32.totalorder %s3202_s18, 2  ;;  %s2460_s27 = sand.u32 1, %s3190_s15  }
 0x348   : > { %s2461_s28 = scalar_lea.sflag [#allocation4], %s2460_s27 }
 0x349   : > { %p2654_p2 = pnand %p2657_p1, %p3277_p6 }
 0x34b   : > { %3185 = dma.done.wait (!%p2654_p2), %s2461_s28, 640  }
 0x34c   : > { %3187 = vsyncadd (!%p2654_p2), %s2461_s28, 4294966656  ;;  %p14_p3 = scmp.ge.s32.totalorder %s3260_s21, 6   ;;  %s4471_s15 = smov %s3194_s16 }
 0x34d   : > { %s4472_s16 = smov %s3198_s17  ;;  %s4473_s17 = smov %s3271_s24 }
 0x34e   : > { %s4474_s18 = smov %s3260_s21  ;;  %16 = sbr.rel (!%p14_p3) target bundleno = 3 (0x3), region = 72 }
 0x355   :  { %2466 = vsyncpa [#allocation4], 1 }
 0x356   :  { %2468 = vsyncpa [#allocation4 + $0x1], 1 }

</bundles_post_ra>
